<compile_context>
chip_gen: v6e
topology: v6e:2x2x1
jax: 0.10.0
libtpu: 0.0.40
codegen_flags: <defaults>
</compile_context>

<pallas_src>
import jax
import jax.numpy as jnp
import numpy as np
from jax.experimental import pallas as pl
from jax.experimental.pallas import tpu as pltpu

NEG_SLOPE = 0.01   # PyTorch nn.LeakyReLU default negative slope
CPAD = 16          # every channel dim zero-padded to 16 (one bf16 sublane tile)
FRONT = 128        # activation interiors start at lane 128 (aligned stores)


# ---------------------------------------------------------------------------
# Host-side, ONE-TIME parameter packing (hoisted out of the jitted forward)
# ---------------------------------------------------------------------------
def _prep_conv_weight(w):
    """torch (Cout,Cin,3,3) -> (16, 144) bf16; column = (kh*3+kw)*16 + cin,
    matching the im2col patch row order; channel dims zero-padded to 16."""
    w = np.asarray(w, np.float32)
    cout, cin = w.shape[:2]
    wp = np.zeros((CPAD, CPAD, 3, 3), np.float32)
    wp[:cout, :cin] = w
    wk = wp.transpose(0, 2, 3, 1).reshape(CPAD, 9 * CPAD)
    return jnp.asarray(wk, jnp.bfloat16)


def _prep_bias(b):
    b = np.asarray(b, np.float32)
    bp = np.zeros((CPAD, 1), np.float32)
    bp[: b.shape[0], 0] = b
    return jnp.asarray(bp, jnp.float32)


def _pool_select(H, W):
    """(L2, Ho*Wo) bf16 0/1 matrix compacting the dense 2x2-window-max field."""
    Ho, Wo = H // 2, W // 2
    L2 = H * W - W - 1
    S = np.zeros((L2, Ho * Wo), np.float32)
    for q in range(Ho * Wo):
        S[2 * W * (q // Wo) + 2 * (q % Wo), q] = 1.0
    return jnp.asarray(S, jnp.bfloat16)


def prepare_encoder(params, H, W):
    """params: list of (w1,b1,w2,b2) in torch layout.  Returns static per-block
    config + MXU-ready resident-kernel-input arrays (built once)."""
    blocks, prepped = [], []
    h, w = H, W
    for (w1, b1, w2, b2) in params:
        cout, cin = int(w1.shape[0]), int(w1.shape[1])
        has_S = (h // 2) * (w // 2) > 1
        blocks.append(dict(real_cin=cin, real_cout=cout, H=h, W=w,
                           HW=h * w, has_S=has_S))
        prepped.append((_prep_conv_weight(w1), _prep_bias(b1),
                        _prep_conv_weight(w2), _prep_bias(b2),
                        _pool_select(h, w) if has_S else None))
        h, w = h // 2, w // 2
    return blocks, prepped


# ---------------------------------------------------------------------------
# Fused encoder kernel (all blocks, one sample per grid step)
# ---------------------------------------------------------------------------
def _make_encoder_kernel(blocks):
    nb = len(blocks)

    def kernel(*refs):
        it = iter(refs)
        x_ref = next(it)
        wparams = []
        for blk in blocks:
            w1, b1, w2, b2 = next(it), next(it), next(it), next(it)
            S = next(it) if blk["has_S"] else None
            wparams.append((w1, b1, w2, b2, S))
        skip_refs = [next(it) for _ in range(nb)]
        y_ref = next(it)
        buf_in = next(it)     # pooled inter-block activations (padded-flat)
        buf_h1 = next(it)     # conv1-output staging (padded-flat)
        patch = next(it)      # (144, HW0) im2col patch

        def zero_pads(ref, W, hw):
            # zero only the pad strips the conv taps actually read
            z = jnp.zeros((CPAD, W + 1), ref.dtype)
            ref[:, FRONT - W - 1:FRONT] = z
            ref[:, FRONT + hw:FRONT + hw + W + 1] = z

        def conv3x3_lrelu(read, w_ref, b_ref, W, hw, masks):
            base = FRONT - W - 1
            left_ok, right_ok = masks
            for kh in range(3):
                for kw in range(3):
                    sl = read(base + kh * W + kw, hw)          # (16, hw) bf16
                    if kw == 0:     # tap reads column w-1: invalid at w == 0
                        sl = jnp.where(left_ok, sl, jnp.zeros_like(sl))
                    elif kw == 2:   # tap reads column w+1: invalid at w == W-1
                        sl = jnp.where(right_ok, sl, jnp.zeros_like(sl))
                    k = kh * 3 + kw
                    patch[k * CPAD:(k + 1) * CPAD, 0:hw] = sl
            acc = jnp.dot(w_ref[...], patch[:, 0:hw],           # K = 144
                          preferred_element_type=jnp.float32)   # (16, hw) f32
            acc = acc + b_ref[...]
            return jnp.where(acc > 0, acc, NEG_SLOPE * acc)

        for j, blk in enumerate(blocks):
            H, W, hw = blk["H"], blk["W"], blk["HW"]
            Ho, Wo = H // 2, W // 2
            w1, b1, w2, b2, S = wparams[j]

            # wrap-around column masks of the flat layout (tiny 1-D iota)
            col = jax.lax.broadcasted_iota(jnp.int32, (1, hw), 1) % W
            masks = (col != 0, col != W - 1)

            # ---- conv1 + LeakyReLU ----
            if j == 0:
                read1 = lambda off, n: x_ref[0, :, off:off + n]
            else:
                read1 = lambda off, n: buf_in[:, off:off + n]
            h1 = conv3x3_lrelu(read1, w1, b1, W, hw, masks)

            # stage conv1 output (bf16, padded-flat) for conv2's taps
            zero_pads(buf_h1, W, hw)
            buf_h1[:, FRONT:FRONT + hw] = h1.astype(jnp.bfloat16)

            # ---- conv2 + LeakyReLU -> skip connection ----
            read2 = lambda off, n: buf_h1[:, off:off + n]
            h2 = conv3x3_lrelu(read2, w2, b2, W, hw, masks)
            skip_refs[j][0] = h2[0:blk["real_cout"], :]

            # ---- fused 2x2 / stride-2 max pool ----
            L2 = hw - W - 1
            m = jnp.maximum(
                jnp.maximum(h2[:, 0:L2], h2[:, 1:1 + L2]),
                jnp.maximum(h2[:, W:W + L2], h2[:, W + 1:W + 1 + L2]))
            if Ho == 1 and Wo == 1:
                pooled = m                                      # (16, 1)
            else:
                pooled = jnp.dot(m.astype(jnp.bfloat16), S[...],
                                 preferred_element_type=jnp.float32)

            if j + 1 < nb:
                Wn, hwn = blocks[j + 1]["W"], blocks[j + 1]["HW"]
                zero_pads(buf_in, Wn, hwn)
                buf_in[:, FRONT:FRONT + hwn] = pooled.astype(jnp.bfloat16)
            else:
                cl = blk["real_cout"]
                y_ref[0] = pooled[0:cl, :].astype(jnp.bfloat16).astype(jnp.float32)

    return kernel


# ---------------------------------------------------------------------------
# Encoder forward: one pallas_call for the whole encoder
# ---------------------------------------------------------------------------
def encoder_forward(blocks, prepped, x):
    """x: (B, 1, C, H, W).  Returns (y NCHW, reversed list of NCHW skips)."""
    B = x.shape[0]
    H0, W0 = blocks[0]["H"], blocks[0]["W"]
    hw0 = H0 * W0
    lbuf = FRONT + hw0 + FRONT

    # channel-pad to 16, flatten H*W, 128-lane-aligned interior, bf16
    xin = x[:, 0]
    xin = jnp.pad(xin, ((0, 0), (0, CPAD - xin.shape[1]), (0, 0), (0, 0)))
    xin = xin.reshape(B, CPAD, hw0)
    xin = jnp.pad(xin, ((0, 0), (0, 0), (FRONT, lbuf - FRONT - hw0)))
    xin = xin.astype(jnp.bfloat16)

    inputs = [xin]
    in_specs = [pl.BlockSpec((1, CPAD, lbuf), lambda i: (i, 0, 0))]
    for (w1k, b1k, w2k, b2k, Sk) in prepped:
        for arr in (w1k, b1k, w2k, b2k):
            inputs.append(arr)
            in_specs.append(pl.BlockSpec(arr.shape, lambda i: (0, 0)))
        if Sk is not None:
            inputs.append(Sk)
            in_specs.append(pl.BlockSpec(Sk.shape, lambda i: (0, 0)))

    out_shapes, out_specs = [], []
    for blk in blocks:
        c, hw = blk["real_cout"], blk["HW"]
        out_shapes.append(jax.ShapeDtypeStruct((B, c, hw), jnp.float32))
        out_specs.append(pl.BlockSpec((1, c, hw), lambda i: (i, 0, 0)))
    cl = blocks[-1]["real_cout"]
    hwy = (blocks[-1]["H"] // 2) * (blocks[-1]["W"] // 2)
    out_shapes.append(jax.ShapeDtypeStruct((B, cl, hwy), jnp.float32))
    out_specs.append(pl.BlockSpec((1, cl, hwy), lambda i: (i, 0, 0)))

    outs = pl.pallas_call(
        _make_encoder_kernel(blocks),
        out_shape=tuple(out_shapes),
        grid=(B,),
        in_specs=in_specs,
        out_specs=tuple(out_specs),
        scratch_shapes=[
            pltpu.VMEM((CPAD, lbuf), jnp.bfloat16),        # pooled inter-block act
            pltpu.VMEM((CPAD, lbuf), jnp.bfloat16),        # conv1 staging
            pltpu.VMEM((9 * CPAD, hw0), jnp.bfloat16),     # im2col patch
        ],
        compiler_params=pltpu.CompilerParams(
            dimension_semantics=("parallel",)),
    )(*inputs)

    skips = [s.reshape(B, blk["real_cout"], blk["H"], blk["W"])
             for blk, s in zip(blocks, outs[:-1])]
    y = outs[-1].reshape(B, cl, blocks[-1]["H"] // 2, blocks[-1]["W"] // 2)
    skips.reverse()
    return y, skips


# ---------------------------------------------------------------------------
# Encoder parameters (torch Conv2d layout), matching the module's channel plan
# ---------------------------------------------------------------------------
def init_encoder_params(key, in_channel, first_conv_depth, max_conv_depth, depth):
    params = []
    for j in range(depth):
        if j == 0:
            block_in = in_channel
            block_out = min(first_conv_depth, max_conv_depth)
        else:
            block_in = min(first_conv_depth * 2 ** (j - 1), max_conv_depth)
            block_out = min(first_conv_depth * 2 ** j, max_conv_depth)
        key, k1, k2, k3, k4 = jax.random.split(key, 5)
        s1 = (2.0 / (9 * block_in)) ** 0.5
        s2 = (2.0 / (9 * block_out)) ** 0.5
        w1 = s1 * jax.random.normal(k1, (block_out, block_in, 3, 3), jnp.float32)
        b1 = 0.05 * jax.random.normal(k2, (block_out,), jnp.float32)
        w2 = s2 * jax.random.normal(k3, (block_out, block_out, 3, 3), jnp.float32)
        b2 = 0.05 * jax.random.normal(k4, (block_out,), jnp.float32)
        params.append((w1, b1, w2, b2))
    return params


# ---------------------------------------------------------------------------
# Pure-XLA reference with the same numerics (bf16 operands, f32 accumulate)
# ---------------------------------------------------------------------------
def reference_forward(params, x):
    h = x[:, 0].astype(jnp.bfloat16)
    skips = []
    for (w1, b1, w2, b2) in params:
        def conv(v, w, b):
            out = jax.lax.conv_general_dilated(
                v, w.astype(jnp.bfloat16), window_strides=(1, 1),
                padding=((1, 1), (1, 1)),
                dimension_numbers=("NCHW", "OIHW", "NCHW"),
                preferred_element_type=jnp.float32)
            out = out + b.reshape(1, -1, 1, 1)
            return jnp.where(out > 0, out, NEG_SLOPE * out)
        h1 = conv(h, w1, b1).astype(jnp.bfloat16)
        h2 = conv(h1, w2, b2)
        skips.append(h2)
        b_, c_, hh, ww = h2.shape
        pooled = h2.reshape(b_, c_, hh // 2, 2, ww // 2, 2).max(axis=(3, 5))
        h = pooled.astype(jnp.bfloat16)
    y = h.astype(jnp.float32)
    skips.reverse()
    return y, skips


# ---------------------------------------------------------------------------
if __name__ == "__main__":
    key = jax.random.PRNGKey(0)
    kx, kp = jax.random.split(key)

    # Encoder(in_channel=4, first_conv_depth=8, max_conv_depth=16,
    #         data_num=1, normalization=False, depth=4);  x: B x 1 x C x H x W
    B, C, H, W = 2, 4, 16, 16
    x = jax.random.normal(kx, (B, 1, C, H, W), jnp.float32)
    params = init_encoder_params(kp, in_channel=C, first_conv_depth=8,
                                 max_conv_depth=16, depth=4)

    # One-time weight packing (hoisted out of the jitted forward).
    blocks, prepped = prepare_encoder(params, H, W)
    fwd = jax.jit(lambda p, xx: encoder_forward(blocks, p, xx))

    y, skips = fwd(prepped, x)
    y = jax.block_until_ready(y)
    skips = [jax.block_until_ready(s) for s in skips]

    # Shapes implied by the module semantics.
    assert y.shape == (B, 16, 1, 1), y.shape
    assert [s.shape for s in skips] == [(B, 16, 2, 2), (B, 16, 4, 4),
                                        (B, 16, 8, 8), (B, 8, 16, 16)]

    # Numerical cross-check against the pure-XLA reference (same bf16-operand /
    # f32-accumulate numerics; loose tolerance covers accumulation-order diffs).
    y_ref, skips_ref = reference_forward(params, x)
    np.testing.assert_allclose(np.asarray(y), np.asarray(y_ref),
                               rtol=5e-2, atol=5e-2)
    for s, s_ref in zip(skips, skips_ref):
        np.testing.assert_allclose(np.asarray(s), np.asarray(s_ref),
                                   rtol=5e-2, atol=5e-2)

    print("KERNEL_OK")
</pallas_src>

<mosaic_0001>
module attributes {stable_mosaic.version = 11 : i64} {
  func.func @kernel(%arg0: i32, %arg1: memref<1x16x512xbf16, #tpu.memory_space<vmem>>, %arg2: memref<16x144xbf16, #tpu.memory_space<vmem>>, %arg3: memref<16x1xf32, #tpu.memory_space<vmem>>, %arg4: memref<16x144xbf16, #tpu.memory_space<vmem>>, %arg5: memref<16x1xf32, #tpu.memory_space<vmem>>, %arg6: memref<239x64xbf16, #tpu.memory_space<vmem>>, %arg7: memref<16x144xbf16, #tpu.memory_space<vmem>>, %arg8: memref<16x1xf32, #tpu.memory_space<vmem>>, %arg9: memref<16x144xbf16, #tpu.memory_space<vmem>>, %arg10: memref<16x1xf32, #tpu.memory_space<vmem>>, %arg11: memref<55x16xbf16, #tpu.memory_space<vmem>>, %arg12: memref<16x144xbf16, #tpu.memory_space<vmem>>, %arg13: memref<16x1xf32, #tpu.memory_space<vmem>>, %arg14: memref<16x144xbf16, #tpu.memory_space<vmem>>, %arg15: memref<16x1xf32, #tpu.memory_space<vmem>>, %arg16: memref<11x4xbf16, #tpu.memory_space<vmem>>, %arg17: memref<16x144xbf16, #tpu.memory_space<vmem>>, %arg18: memref<16x1xf32, #tpu.memory_space<vmem>>, %arg19: memref<16x144xbf16, #tpu.memory_space<vmem>>, %arg20: memref<16x1xf32, #tpu.memory_space<vmem>>, %arg21: memref<1x8x256xf32, #tpu.memory_space<vmem>>, %arg22: memref<1x16x64xf32, #tpu.memory_space<vmem>>, %arg23: memref<1x16x16xf32, #tpu.memory_space<vmem>>, %arg24: memref<1x16x4xf32, #tpu.memory_space<vmem>>, %arg25: memref<1x16x1xf32, #tpu.memory_space<vmem>>, %arg26: memref<16x512xbf16, #tpu.memory_space<vmem>>, %arg27: memref<16x512xbf16, #tpu.memory_space<vmem>>, %arg28: memref<144x256xbf16, #tpu.memory_space<vmem>>) attributes {dimension_semantics = [#tpu.dimension_semantics<parallel>], iteration_bounds = array<i64: 2>, scalar_prefetch = 0 : i64, scratch_operands = 3 : i64, tpu.core_type = #tpu.core_type<tc>, window_params = [{transform_indices = @transform_0, window_bounds = array<i64: 1, 16, 512>}, {pipeline_mode = #tpu.pipeline_mode<synchronous>, transform_indices = @transform_1, window_bounds = array<i64: 16, 144>}, {pipeline_mode = #tpu.pipeline_mode<synchronous>, transform_indices = @transform_2, window_bounds = array<i64: 16, 1>}, {pipeline_mode = #tpu.pipeline_mode<synchronous>, transform_indices = @transform_3, window_bounds = array<i64: 16, 144>}, {pipeline_mode = #tpu.pipeline_mode<synchronous>, transform_indices = @transform_4, window_bounds = array<i64: 16, 1>}, {pipeline_mode = #tpu.pipeline_mode<synchronous>, transform_indices = @transform_5, window_bounds = array<i64: 239, 64>}, {pipeline_mode = #tpu.pipeline_mode<synchronous>, transform_indices = @transform_6, window_bounds = array<i64: 16, 144>}, {pipeline_mode = #tpu.pipeline_mode<synchronous>, transform_indices = @transform_7, window_bounds = array<i64: 16, 1>}, {pipeline_mode = #tpu.pipeline_mode<synchronous>, transform_indices = @transform_8, window_bounds = array<i64: 16, 144>}, {pipeline_mode = #tpu.pipeline_mode<synchronous>, transform_indices = @transform_9, window_bounds = array<i64: 16, 1>}, {pipeline_mode = #tpu.pipeline_mode<synchronous>, transform_indices = @transform_10, window_bounds = array<i64: 55, 16>}, {pipeline_mode = #tpu.pipeline_mode<synchronous>, transform_indices = @transform_11, window_bounds = array<i64: 16, 144>}, {pipeline_mode = #tpu.pipeline_mode<synchronous>, transform_indices = @transform_12, window_bounds = array<i64: 16, 1>}, {pipeline_mode = #tpu.pipeline_mode<synchronous>, transform_indices = @transform_13, window_bounds = array<i64: 16, 144>}, {pipeline_mode = #tpu.pipeline_mode<synchronous>, transform_indices = @transform_14, window_bounds = array<i64: 16, 1>}, {pipeline_mode = #tpu.pipeline_mode<synchronous>, transform_indices = @transform_15, window_bounds = array<i64: 11, 4>}, {pipeline_mode = #tpu.pipeline_mode<synchronous>, transform_indices = @transform_16, window_bounds = array<i64: 16, 144>}, {pipeline_mode = #tpu.pipeline_mode<synchronous>, transform_indices = @transform_17, window_bounds = array<i64: 16, 1>}, {pipeline_mode = #tpu.pipeline_mode<synchronous>, transform_indices = @transform_18, window_bounds = array<i64: 16, 144>}, {pipeline_mode = #tpu.pipeline_mode<synchronous>, transform_indices = @transform_19, window_bounds = array<i64: 16, 1>}, {transform_indices = @transform_20, window_bounds = array<i64: 1, 8, 256>}, {transform_indices = @transform_21, window_bounds = array<i64: 1, 16, 64>}, {transform_indices = @transform_22, window_bounds = array<i64: 1, 16, 16>}, {transform_indices = @transform_23, window_bounds = array<i64: 1, 16, 4>}, {transform_indices = @transform_24, window_bounds = array<i64: 1, 16, 1>}]} {
    %0 = tpu.iota {dimensions = array<i32: 1>} : vector<1x256xi32>
    %c16_i32 = arith.constant 16 : i32
    %c0_i32 = arith.constant 0 : i32
    %1 = arith.cmpi eq, %c16_i32, %c0_i32 : i32
    %c1_i32 = arith.constant 1 : i32
    %2 = arith.select %1, %c1_i32, %c16_i32 : i32
    %3 = vector.broadcast %2 : i32 to vector<1x256xi32>
    %4 = arith.remsi %0, %3 : vector<1x256xi32>
    %c0_i32_0 = arith.constant 0 : i32
    %5 = vector.broadcast %c0_i32_0 : i32 to vector<1x256xi32>
    %6 = arith.cmpi ne, %4, %5 : vector<1x256xi32>
    %c0_i32_1 = arith.constant 0 : i32
    %7 = vector.broadcast %c0_i32_1 : i32 to vector<1x256xi32>
    %8 = arith.cmpi slt, %4, %7 : vector<1x256xi32>
    %c0_i32_2 = arith.constant 0 : i32
    %9 = arith.cmpi slt, %2, %c0_i32_2 : i32
    %10 = vector.broadcast %9 : i1 to vector<1x256xi1>
    %11 = vector.broadcast %10 : vector<1x256xi1> to vector<1x256xi1>
    %12 = arith.xori %8, %11 : vector<1x256xi1>
    %13 = arith.andi %12, %6 : vector<1x256xi1>
    %14 = vector.broadcast %2 : i32 to vector<1x256xi32>
    %15 = arith.addi %4, %14 : vector<1x256xi32>
    %16 = arith.select %13, %15, %4 : vector<1x256xi1>, vector<1x256xi32>
    %c0_i32_3 = arith.constant 0 : i32
    %17 = vector.broadcast %c0_i32_3 : i32 to vector<1x256xi32>
    %18 = arith.cmpi ne, %16, %17 : vector<1x256xi32>
    %c15_i32 = arith.constant 15 : i32
    %19 = vector.broadcast %c15_i32 : i32 to vector<1x256xi32>
    %20 = arith.cmpi ne, %16, %19 : vector<1x256xi32>
    %c0 = arith.constant 0 : index
    %c0_4 = arith.constant 0 : index
    %c111 = arith.constant 111 : index
    %21 = vector.load %arg1[%c0, %c0_4, %c111] : memref<1x16x512xbf16, #tpu.memory_space<vmem>>, vector<1x16x256xbf16>
    %22 = vector.shape_cast %21 : vector<1x16x256xbf16> to vector<16x256xbf16>
    %cst = arith.constant 0.000000e+00 : bf16
    %23 = vector.broadcast %cst : bf16 to vector<16x256xbf16>
    %24 = vector.shape_cast %18 : vector<1x256xi1> to vector<1x256xi1>
    %25 = vector.broadcast %24 : vector<1x256xi1> to vector<16x256xi1>
    %26 = arith.select %25, %22, %23 : vector<16x256xi1>, vector<16x256xbf16>
    %c0_5 = arith.constant 0 : index
    %c0_6 = arith.constant 0 : index
    %27 = vector.load %arg28[%c0_5, %c0_6] : memref<144x256xbf16, #tpu.memory_space<vmem>>, vector<16x256xbf16>
    tpu.vector_store %arg28[%c0_5, %c0_6], %26 {strides = array<i32>} : memref<144x256xbf16, #tpu.memory_space<vmem>>, vector<16x256xbf16>,
    %c0_7 = arith.constant 0 : index
    %c0_8 = arith.constant 0 : index
    %c112 = arith.constant 112 : index
    %28 = vector.load %arg1[%c0_7, %c0_8, %c112] : memref<1x16x512xbf16, #tpu.memory_space<vmem>>, vector<1x16x256xbf16>
    %29 = vector.shape_cast %28 : vector<1x16x256xbf16> to vector<16x256xbf16>
    %c16 = arith.constant 16 : index
    %c0_9 = arith.constant 0 : index
    %30 = vector.load %arg28[%c16, %c0_9] : memref<144x256xbf16, #tpu.memory_space<vmem>>, vector<16x256xbf16>
    tpu.vector_store %arg28[%c16, %c0_9], %29 {strides = array<i32>} : memref<144x256xbf16, #tpu.memory_space<vmem>>, vector<16x256xbf16>,
    %c0_10 = arith.constant 0 : index
    %c0_11 = arith.constant 0 : index
    %c113 = arith.constant 113 : index
    %31 = vector.load %arg1[%c0_10, %c0_11, %c113] : memref<1x16x512xbf16, #tpu.memory_space<vmem>>, vector<1x16x256xbf16>
    %32 = vector.shape_cast %31 : vector<1x16x256xbf16> to vector<16x256xbf16>
    %cst_12 = arith.constant 0.000000e+00 : bf16
    %33 = vector.broadcast %cst_12 : bf16 to vector<16x256xbf16>
    %34 = vector.shape_cast %20 : vector<1x256xi1> to vector<1x256xi1>
    %35 = vector.broadcast %34 : vector<1x256xi1> to vector<16x256xi1>
    %36 = arith.select %35, %32, %33 : vector<16x256xi1>, vector<16x256xbf16>
    %c32 = arith.constant 32 : index
    %c0_13 = arith.constant 0 : index
    %37 = vector.load %arg28[%c32, %c0_13] : memref<144x256xbf16, #tpu.memory_space<vmem>>, vector<16x256xbf16>
    tpu.vector_store %arg28[%c32, %c0_13], %36 {strides = array<i32>} : memref<144x256xbf16, #tpu.memory_space<vmem>>, vector<16x256xbf16>,
    %c0_14 = arith.constant 0 : index
    %c0_15 = arith.constant 0 : index
    %c127 = arith.constant 127 : index
    %38 = vector.load %arg1[%c0_14, %c0_15, %c127] : memref<1x16x512xbf16, #tpu.memory_space<vmem>>, vector<1x16x256xbf16>
    %39 = vector.shape_cast %38 : vector<1x16x256xbf16> to vector<16x256xbf16>
    %cst_16 = arith.constant 0.000000e+00 : bf16
    %40 = vector.broadcast %cst_16 : bf16 to vector<16x256xbf16>
    %41 = vector.shape_cast %18 : vector<1x256xi1> to vector<1x256xi1>
    %42 = vector.broadcast %41 : vector<1x256xi1> to vector<16x256xi1>
    %43 = arith.select %42, %39, %40 : vector<16x256xi1>, vector<16x256xbf16>
    %c48 = arith.constant 48 : index
    %c0_17 = arith.constant 0 : index
    %44 = vector.load %arg28[%c48, %c0_17] : memref<144x256xbf16, #tpu.memory_space<vmem>>, vector<16x256xbf16>
    tpu.vector_store %arg28[%c48, %c0_17], %43 {strides = array<i32>} : memref<144x256xbf16, #tpu.memory_space<vmem>>, vector<16x256xbf16>,
    %c0_18 = arith.constant 0 : index
    %c0_19 = arith.constant 0 : index
    %c128 = arith.constant 128 : index
    %45 = vector.load %arg1[%c0_18, %c0_19, %c128] : memref<1x16x512xbf16, #tpu.memory_space<vmem>>, vector<1x16x256xbf16>
    %46 = vector.shape_cast %45 : vector<1x16x256xbf16> to vector<16x256xbf16>
    %c64 = arith.constant 64 : index
    %c0_20 = arith.constant 0 : index
    %47 = vector.load %arg28[%c64, %c0_20] : memref<144x256xbf16, #tpu.memory_space<vmem>>, vector<16x256xbf16>
    tpu.vector_store %arg28[%c64, %c0_20], %46 {strides = array<i32>} : memref<144x256xbf16, #tpu.memory_space<vmem>>, vector<16x256xbf16>,
    %c0_21 = arith.constant 0 : index
    %c0_22 = arith.constant 0 : index
    %c129 = arith.constant 129 : index
    %48 = vector.load %arg1[%c0_21, %c0_22, %c129] : memref<1x16x512xbf16, #tpu.memory_space<vmem>>, vector<1x16x256xbf16>
    %49 = vector.shape_cast %48 : vector<1x16x256xbf16> to vector<16x256xbf16>
    %cst_23 = arith.constant 0.000000e+00 : bf16
    %50 = vector.broadcast %cst_23 : bf16 to vector<16x256xbf16>
    %51 = vector.shape_cast %20 : vector<1x256xi1> to vector<1x256xi1>
    %52 = vector.broadcast %51 : vector<1x256xi1> to vector<16x256xi1>
    %53 = arith.select %52, %49, %50 : vector<16x256xi1>, vector<16x256xbf16>
    %c80 = arith.constant 80 : index
    %c0_24 = arith.constant 0 : index
    %54 = vector.load %arg28[%c80, %c0_24] : memref<144x256xbf16, #tpu.memory_space<vmem>>, vector<16x256xbf16>
    tpu.vector_store %arg28[%c80, %c0_24], %53 {strides = array<i32>} : memref<144x256xbf16, #tpu.memory_space<vmem>>, vector<16x256xbf16>,
    %c0_25 = arith.constant 0 : index
    %c0_26 = arith.constant 0 : index
    %c143 = arith.constant 143 : index
    %55 = vector.load %arg1[%c0_25, %c0_26, %c143] : memref<1x16x512xbf16, #tpu.memory_space<vmem>>, vector<1x16x256xbf16>
    %56 = vector.shape_cast %55 : vector<1x16x256xbf16> to vector<16x256xbf16>
    %cst_27 = arith.constant 0.000000e+00 : bf16
    %57 = vector.broadcast %cst_27 : bf16 to vector<16x256xbf16>
    %58 = vector.shape_cast %18 : vector<1x256xi1> to vector<1x256xi1>
    %59 = vector.broadcast %58 : vector<1x256xi1> to vector<16x256xi1>
    %60 = arith.select %59, %56, %57 : vector<16x256xi1>, vector<16x256xbf16>
    %c96 = arith.constant 96 : index
    %c0_28 = arith.constant 0 : index
    %61 = vector.load %arg28[%c96, %c0_28] : memref<144x256xbf16, #tpu.memory_space<vmem>>, vector<16x256xbf16>
    tpu.vector_store %arg28[%c96, %c0_28], %60 {strides = array<i32>} : memref<144x256xbf16, #tpu.memory_space<vmem>>, vector<16x256xbf16>,
    %c0_29 = arith.constant 0 : index
    %c0_30 = arith.constant 0 : index
    %c144 = arith.constant 144 : index
    %62 = vector.load %arg1[%c0_29, %c0_30, %c144] : memref<1x16x512xbf16, #tpu.memory_space<vmem>>, vector<1x16x256xbf16>
    %63 = vector.shape_cast %62 : vector<1x16x256xbf16> to vector<16x256xbf16>
    %c112_31 = arith.constant 112 : index
    %c0_32 = arith.constant 0 : index
    %64 = vector.load %arg28[%c112_31, %c0_32] : memref<144x256xbf16, #tpu.memory_space<vmem>>, vector<16x256xbf16>
    tpu.vector_store %arg28[%c112_31, %c0_32], %63 {strides = array<i32>} : memref<144x256xbf16, #tpu.memory_space<vmem>>, vector<16x256xbf16>,
    %c0_33 = arith.constant 0 : index
    %c0_34 = arith.constant 0 : index
    %c145 = arith.constant 145 : index
    %65 = vector.load %arg1[%c0_33, %c0_34, %c145] : memref<1x16x512xbf16, #tpu.memory_space<vmem>>, vector<1x16x256xbf16>
    %66 = vector.shape_cast %65 : vector<1x16x256xbf16> to vector<16x256xbf16>
    %cst_35 = arith.constant 0.000000e+00 : bf16
    %67 = vector.broadcast %cst_35 : bf16 to vector<16x256xbf16>
    %68 = vector.shape_cast %20 : vector<1x256xi1> to vector<1x256xi1>
    %69 = vector.broadcast %68 : vector<1x256xi1> to vector<16x256xi1>
    %70 = arith.select %69, %66, %67 : vector<16x256xi1>, vector<16x256xbf16>
    %c128_36 = arith.constant 128 : index
    %c0_37 = arith.constant 0 : index
    %71 = vector.load %arg28[%c128_36, %c0_37] : memref<144x256xbf16, #tpu.memory_space<vmem>>, vector<16x256xbf16>
    tpu.vector_store %arg28[%c128_36, %c0_37], %70 {strides = array<i32>} : memref<144x256xbf16, #tpu.memory_space<vmem>>, vector<16x256xbf16>,
    %c0_38 = arith.constant 0 : index
    %c0_39 = arith.constant 0 : index
    %72 = vector.load %arg2[%c0_38, %c0_39] : memref<16x144xbf16, #tpu.memory_space<vmem>>, vector<16x144xbf16>
    %c0_40 = arith.constant 0 : index
    %c0_41 = arith.constant 0 : index
    %73 = vector.load %arg28[%c0_40, %c0_41] : memref<144x256xbf16, #tpu.memory_space<vmem>>, vector<144x256xbf16>
    %cst_42 = arith.constant dense<0.000000e+00> : vector<16x256xf32>
    %74 = tpu.matmul %72, %73, %cst_42 {dimension_numbers = #tpu.dot_dimension_numbers<[1], [0], [0], [1], [0, 0, 1, 1], [], []>} : vector<16x144xbf16>, vector<144x256xbf16>, vector<16x256xf32> -> vector<16x256xf32>
    %c0_43 = arith.constant 0 : index
    %c0_44 = arith.constant 0 : index
    %75 = vector.load %arg3[%c0_43, %c0_44] : memref<16x1xf32, #tpu.memory_space<vmem>>, vector<16x1xf32>
    %76 = vector.broadcast %75 : vector<16x1xf32> to vector<16x256xf32>
    %77 = arith.addf %74, %76 : vector<16x256xf32>
    %cst_45 = arith.constant 0.000000e+00 : f32
    %78 = vector.broadcast %cst_45 : f32 to vector<16x256xf32>
    %79 = arith.cmpf ogt, %77, %78 : vector<16x256xf32>
    %cst_46 = arith.constant 0.00999999977 : f32
    %80 = vector.broadcast %cst_46 : f32 to vector<16x256xf32>
    %81 = arith.mulf %80, %77 : vector<16x256xf32>
    %82 = arith.select %79, %77, %81 : vector<16x256xi1>, vector<16x256xf32>
    %cst_47 = arith.constant 0.000000e+00 : bf16
    %83 = vector.broadcast %cst_47 : bf16 to vector<16x17xbf16>
    %c0_48 = arith.constant 0 : index
    %c111_49 = arith.constant 111 : index
    %84 = vector.load %arg27[%c0_48, %c111_49] : memref<16x512xbf16, #tpu.memory_space<vmem>>, vector<16x17xbf16>
    tpu.vector_store %arg27[%c0_48, %c111_49], %83 {strides = array<i32>} : memref<16x512xbf16, #tpu.memory_space<vmem>>, vector<16x17xbf16>,
    %c0_50 = arith.constant 0 : index
    %c384 = arith.constant 384 : index
    %85 = vector.load %arg27[%c0_50, %c384] : memref<16x512xbf16, #tpu.memory_space<vmem>>, vector<16x17xbf16>
    tpu.vector_store %arg27[%c0_50, %c384], %83 {strides = array<i32>} : memref<16x512xbf16, #tpu.memory_space<vmem>>, vector<16x17xbf16>,
    %86 = arith.truncf %82 : vector<16x256xf32> to vector<16x256xbf16>
    %c0_51 = arith.constant 0 : index
    %c128_52 = arith.constant 128 : index
    %87 = vector.load %arg27[%c0_51, %c128_52] : memref<16x512xbf16, #tpu.memory_space<vmem>>, vector<16x256xbf16>
    tpu.vector_store %arg27[%c0_51, %c128_52], %86 {strides = array<i32>} : memref<16x512xbf16, #tpu.memory_space<vmem>>, vector<16x256xbf16>,
    %c0_53 = arith.constant 0 : index
    %c111_54 = arith.constant 111 : index
    %88 = vector.load %arg27[%c0_53, %c111_54] : memref<16x512xbf16, #tpu.memory_space<vmem>>, vector<16x256xbf16>
    %cst_55 = arith.constant 0.000000e+00 : bf16
    %89 = vector.broadcast %cst_55 : bf16 to vector<16x256xbf16>
    %90 = vector.shape_cast %18 : vector<1x256xi1> to vector<1x256xi1>
    %91 = vector.broadcast %90 : vector<1x256xi1> to vector<16x256xi1>
    %92 = arith.select %91, %88, %89 : vector<16x256xi1>, vector<16x256xbf16>
    %c0_56 = arith.constant 0 : index
    %c0_57 = arith.constant 0 : index
    %93 = vector.load %arg28[%c0_56, %c0_57] : memref<144x256xbf16, #tpu.memory_space<vmem>>, vector<16x256xbf16>
    tpu.vector_store %arg28[%c0_56, %c0_57], %92 {strides = array<i32>} : memref<144x256xbf16, #tpu.memory_space<vmem>>, vector<16x256xbf16>,
    %c0_58 = arith.constant 0 : index
    %c112_59 = arith.constant 112 : index
    %94 = vector.load %arg27[%c0_58, %c112_59] : memref<16x512xbf16, #tpu.memory_space<vmem>>, vector<16x256xbf16>
    %c16_60 = arith.constant 16 : index
    %c0_61 = arith.constant 0 : index
    %95 = vector.load %arg28[%c16_60, %c0_61] : memref<144x256xbf16, #tpu.memory_space<vmem>>, vector<16x256xbf16>
    tpu.vector_store %arg28[%c16_60, %c0_61], %94 {strides = array<i32>} : memref<144x256xbf16, #tpu.memory_space<vmem>>, vector<16x256xbf16>,
    %c0_62 = arith.constant 0 : index
    %c113_63 = arith.constant 113 : index
    %96 = vector.load %arg27[%c0_62, %c113_63] : memref<16x512xbf16, #tpu.memory_space<vmem>>, vector<16x256xbf16>
    %cst_64 = arith.constant 0.000000e+00 : bf16
    %97 = vector.broadcast %cst_64 : bf16 to vector<16x256xbf16>
    %98 = vector.shape_cast %20 : vector<1x256xi1> to vector<1x256xi1>
    %99 = vector.broadcast %98 : vector<1x256xi1> to vector<16x256xi1>
    %100 = arith.select %99, %96, %97 : vector<16x256xi1>, vector<16x256xbf16>
    %c32_65 = arith.constant 32 : index
    %c0_66 = arith.constant 0 : index
    %101 = vector.load %arg28[%c32_65, %c0_66] : memref<144x256xbf16, #tpu.memory_space<vmem>>, vector<16x256xbf16>
    tpu.vector_store %arg28[%c32_65, %c0_66], %100 {strides = array<i32>} : memref<144x256xbf16, #tpu.memory_space<vmem>>, vector<16x256xbf16>,
    %c0_67 = arith.constant 0 : index
    %c127_68 = arith.constant 127 : index
    %102 = vector.load %arg27[%c0_67, %c127_68] : memref<16x512xbf16, #tpu.memory_space<vmem>>, vector<16x256xbf16>
    %cst_69 = arith.constant 0.000000e+00 : bf16
    %103 = vector.broadcast %cst_69 : bf16 to vector<16x256xbf16>
    %104 = vector.shape_cast %18 : vector<1x256xi1> to vector<1x256xi1>
    %105 = vector.broadcast %104 : vector<1x256xi1> to vector<16x256xi1>
    %106 = arith.select %105, %102, %103 : vector<16x256xi1>, vector<16x256xbf16>
    %c48_70 = arith.constant 48 : index
    %c0_71 = arith.constant 0 : index
    %107 = vector.load %arg28[%c48_70, %c0_71] : memref<144x256xbf16, #tpu.memory_space<vmem>>, vector<16x256xbf16>
    tpu.vector_store %arg28[%c48_70, %c0_71], %106 {strides = array<i32>} : memref<144x256xbf16, #tpu.memory_space<vmem>>, vector<16x256xbf16>,
    %c0_72 = arith.constant 0 : index
    %c128_73 = arith.constant 128 : index
    %108 = vector.load %arg27[%c0_72, %c128_73] : memref<16x512xbf16, #tpu.memory_space<vmem>>, vector<16x256xbf16>
    %c64_74 = arith.constant 64 : index
    %c0_75 = arith.constant 0 : index
    %109 = vector.load %arg28[%c64_74, %c0_75] : memref<144x256xbf16, #tpu.memory_space<vmem>>, vector<16x256xbf16>
    tpu.vector_store %arg28[%c64_74, %c0_75], %108 {strides = array<i32>} : memref<144x256xbf16, #tpu.memory_space<vmem>>, vector<16x256xbf16>,
    %c0_76 = arith.constant 0 : index
    %c129_77 = arith.constant 129 : index
    %110 = vector.load %arg27[%c0_76, %c129_77] : memref<16x512xbf16, #tpu.memory_space<vmem>>, vector<16x256xbf16>
    %cst_78 = arith.constant 0.000000e+00 : bf16
    %111 = vector.broadcast %cst_78 : bf16 to vector<16x256xbf16>
    %112 = vector.shape_cast %20 : vector<1x256xi1> to vector<1x256xi1>
    %113 = vector.broadcast %112 : vector<1x256xi1> to vector<16x256xi1>
    %114 = arith.select %113, %110, %111 : vector<16x256xi1>, vector<16x256xbf16>
    %c80_79 = arith.constant 80 : index
    %c0_80 = arith.constant 0 : index
    %115 = vector.load %arg28[%c80_79, %c0_80] : memref<144x256xbf16, #tpu.memory_space<vmem>>, vector<16x256xbf16>
    tpu.vector_store %arg28[%c80_79, %c0_80], %114 {strides = array<i32>} : memref<144x256xbf16, #tpu.memory_space<vmem>>, vector<16x256xbf16>,
    %c0_81 = arith.constant 0 : index
    %c143_82 = arith.constant 143 : index
    %116 = vector.load %arg27[%c0_81, %c143_82] : memref<16x512xbf16, #tpu.memory_space<vmem>>, vector<16x256xbf16>
    %cst_83 = arith.constant 0.000000e+00 : bf16
    %117 = vector.broadcast %cst_83 : bf16 to vector<16x256xbf16>
    %118 = vector.shape_cast %18 : vector<1x256xi1> to vector<1x256xi1>
    %119 = vector.broadcast %118 : vector<1x256xi1> to vector<16x256xi1>
    %120 = arith.select %119, %116, %117 : vector<16x256xi1>, vector<16x256xbf16>
    %c96_84 = arith.constant 96 : index
    %c0_85 = arith.constant 0 : index
    %121 = vector.load %arg28[%c96_84, %c0_85] : memref<144x256xbf16, #tpu.memory_space<vmem>>, vector<16x256xbf16>
    tpu.vector_store %arg28[%c96_84, %c0_85], %120 {strides = array<i32>} : memref<144x256xbf16, #tpu.memory_space<vmem>>, vector<16x256xbf16>,
    %c0_86 = arith.constant 0 : index
    %c144_87 = arith.constant 144 : index
    %122 = vector.load %arg27[%c0_86, %c144_87] : memref<16x512xbf16, #tpu.memory_space<vmem>>, vector<16x256xbf16>
    %c112_88 = arith.constant 112 : index
    %c0_89 = arith.constant 0 : index
    %123 = vector.load %arg28[%c112_88, %c0_89] : memref<144x256xbf16, #tpu.memory_space<vmem>>, vector<16x256xbf16>
    tpu.vector_store %arg28[%c112_88, %c0_89], %122 {strides = array<i32>} : memref<144x256xbf16, #tpu.memory_space<vmem>>, vector<16x256xbf16>,
    %c0_90 = arith.constant 0 : index
    %c145_91 = arith.constant 145 : index
    %124 = vector.load %arg27[%c0_90, %c145_91] : memref<16x512xbf16, #tpu.memory_space<vmem>>, vector<16x256xbf16>
    %cst_92 = arith.constant 0.000000e+00 : bf16
    %125 = vector.broadcast %cst_92 : bf16 to vector<16x256xbf16>
    %126 = vector.shape_cast %20 : vector<1x256xi1> to vector<1x256xi1>
    %127 = vector.broadcast %126 : vector<1x256xi1> to vector<16x256xi1>
    %128 = arith.select %127, %124, %125 : vector<16x256xi1>, vector<16x256xbf16>
    %c128_93 = arith.constant 128 : index
    %c0_94 = arith.constant 0 : index
    %129 = vector.load %arg28[%c128_93, %c0_94] : memref<144x256xbf16, #tpu.memory_space<vmem>>, vector<16x256xbf16>
    tpu.vector_store %arg28[%c128_93, %c0_94], %128 {strides = array<i32>} : memref<144x256xbf16, #tpu.memory_space<vmem>>, vector<16x256xbf16>,
    %c0_95 = arith.constant 0 : index
    %c0_96 = arith.constant 0 : index
    %130 = vector.load %arg4[%c0_95, %c0_96] : memref<16x144xbf16, #tpu.memory_space<vmem>>, vector<16x144xbf16>
    %c0_97 = arith.constant 0 : index
    %c0_98 = arith.constant 0 : index
    %131 = vector.load %arg28[%c0_97, %c0_98] : memref<144x256xbf16, #tpu.memory_space<vmem>>, vector<144x256xbf16>
    %cst_99 = arith.constant dense<0.000000e+00> : vector<16x256xf32>
    %132 = tpu.matmul %130, %131, %cst_99 {dimension_numbers = #tpu.dot_dimension_numbers<[1], [0], [0], [1], [0, 0, 1, 1], [], []>} : vector<16x144xbf16>, vector<144x256xbf16>, vector<16x256xf32> -> vector<16x256xf32>
    %c0_100 = arith.constant 0 : index
    %c0_101 = arith.constant 0 : index
    %133 = vector.load %arg5[%c0_100, %c0_101] : memref<16x1xf32, #tpu.memory_space<vmem>>, vector<16x1xf32>
    %134 = vector.broadcast %133 : vector<16x1xf32> to vector<16x256xf32>
    %135 = arith.addf %132, %134 : vector<16x256xf32>
    %cst_102 = arith.constant 0.000000e+00 : f32
    %136 = vector.broadcast %cst_102 : f32 to vector<16x256xf32>
    %137 = arith.cmpf ogt, %135, %136 : vector<16x256xf32>
    %cst_103 = arith.constant 0.00999999977 : f32
    %138 = vector.broadcast %cst_103 : f32 to vector<16x256xf32>
    %139 = arith.mulf %138, %135 : vector<16x256xf32>
    %140 = arith.select %137, %135, %139 : vector<16x256xi1>, vector<16x256xf32>
    %141 = vector.extract_strided_slice %140 {offsets = [0, 0], sizes = [8, 256], strides = [1, 1]} : vector<16x256xf32> to vector<8x256xf32>
    %c0_104 = arith.constant 0 : index
    %c0_105 = arith.constant 0 : index
    %c0_106 = arith.constant 0 : index
    %142 = vector.load %arg21[%c0_104, %c0_105, %c0_106] : memref<1x8x256xf32, #tpu.memory_space<vmem>>, vector<1x8x256xf32>
    %143 = vector.shape_cast %142 : vector<1x8x256xf32> to vector<8x256xf32>
    %144 = vector.shape_cast %141 : vector<8x256xf32> to vector<1x8x256xf32>
    tpu.vector_store %arg21[%c0_104, %c0_105, %c0_106], %144 {strides = array<i32>} : memref<1x8x256xf32, #tpu.memory_space<vmem>>, vector<1x8x256xf32>,
    %145 = vector.extract_strided_slice %140 {offsets = [0, 0], sizes = [16, 239], strides = [1, 1]} : vector<16x256xf32> to vector<16x239xf32>
    %146 = vector.extract_strided_slice %140 {offsets = [0, 1], sizes = [16, 239], strides = [1, 1]} : vector<16x256xf32> to vector<16x239xf32>
    %147 = arith.maximumf %145, %146 : vector<16x239xf32>
    %148 = vector.extract_strided_slice %140 {offsets = [0, 16], sizes = [16, 239], strides = [1, 1]} : vector<16x256xf32> to vector<16x239xf32>
    %149 = vector.extract_strided_slice %140 {offsets = [0, 17], sizes = [16, 239], strides = [1, 1]} : vector<16x256xf32> to vector<16x239xf32>
    %150 = arith.maximumf %148, %149 : vector<16x239xf32>
    %151 = arith.maximumf %147, %150 : vector<16x239xf32>
    %152 = arith.truncf %151 : vector<16x239xf32> to vector<16x239xbf16>
    %c0_107 = arith.constant 0 : index
    %c0_108 = arith.constant 0 : index
    %153 = vector.load %arg6[%c0_107, %c0_108] : memref<239x64xbf16, #tpu.memory_space<vmem>>, vector<239x64xbf16>
    %cst_109 = arith.constant dense<0.000000e+00> : vector<16x64xf32>
    %154 = tpu.matmul %152, %153, %cst_109 {dimension_numbers = #tpu.dot_dimension_numbers<[1], [0], [0], [1], [0, 0, 1, 1], [], []>} : vector<16x239xbf16>, vector<239x64xbf16>, vector<16x64xf32> -> vector<16x64xf32>
    %cst_110 = arith.constant 0.000000e+00 : bf16
    %155 = vector.broadcast %cst_110 : bf16 to vector<16x9xbf16>
    %c0_111 = arith.constant 0 : index
    %c119 = arith.constant 119 : index
    %156 = vector.load %arg26[%c0_111, %c119] : memref<16x512xbf16, #tpu.memory_space<vmem>>, vector<16x9xbf16>
    tpu.vector_store %arg26[%c0_111, %c119], %155 {strides = array<i32>} : memref<16x512xbf16, #tpu.memory_space<vmem>>, vector<16x9xbf16>,
    %c0_112 = arith.constant 0 : index
    %c192 = arith.constant 192 : index
    %157 = vector.load %arg26[%c0_112, %c192] : memref<16x512xbf16, #tpu.memory_space<vmem>>, vector<16x9xbf16>
    tpu.vector_store %arg26[%c0_112, %c192], %155 {strides = array<i32>} : memref<16x512xbf16, #tpu.memory_space<vmem>>, vector<16x9xbf16>,
    %158 = arith.truncf %154 : vector<16x64xf32> to vector<16x64xbf16>
    %c0_113 = arith.constant 0 : index
    %c128_114 = arith.constant 128 : index
    %159 = vector.load %arg26[%c0_113, %c128_114] : memref<16x512xbf16, #tpu.memory_space<vmem>>, vector<16x64xbf16>
    tpu.vector_store %arg26[%c0_113, %c128_114], %158 {strides = array<i32>} : memref<16x512xbf16, #tpu.memory_space<vmem>>, vector<16x64xbf16>,
    %160 = tpu.iota {dimensions = array<i32: 1>} : vector<1x64xi32>
    %c8_i32 = arith.constant 8 : i32
    %c0_i32_115 = arith.constant 0 : i32
    %161 = arith.cmpi eq, %c8_i32, %c0_i32_115 : i32
    %c1_i32_116 = arith.constant 1 : i32
    %162 = arith.select %161, %c1_i32_116, %c8_i32 : i32
    %163 = vector.broadcast %162 : i32 to vector<1x64xi32>
    %164 = arith.remsi %160, %163 : vector<1x64xi32>
    %c0_i32_117 = arith.constant 0 : i32
    %165 = vector.broadcast %c0_i32_117 : i32 to vector<1x64xi32>
    %166 = arith.cmpi ne, %164, %165 : vector<1x64xi32>
    %c0_i32_118 = arith.constant 0 : i32
    %167 = vector.broadcast %c0_i32_118 : i32 to vector<1x64xi32>
    %168 = arith.cmpi slt, %164, %167 : vector<1x64xi32>
    %c0_i32_119 = arith.constant 0 : i32
    %169 = arith.cmpi slt, %162, %c0_i32_119 : i32
    %170 = vector.broadcast %169 : i1 to vector<1x64xi1>
    %171 = vector.broadcast %170 : vector<1x64xi1> to vector<1x64xi1>
    %172 = arith.xori %168, %171 : vector<1x64xi1>
    %173 = arith.andi %172, %166 : vector<1x64xi1>
    %174 = vector.broadcast %162 : i32 to vector<1x64xi32>
    %175 = arith.addi %164, %174 : vector<1x64xi32>
    %176 = arith.select %173, %175, %164 : vector<1x64xi1>, vector<1x64xi32>
    %c0_i32_120 = arith.constant 0 : i32
    %177 = vector.broadcast %c0_i32_120 : i32 to vector<1x64xi32>
    %178 = arith.cmpi ne, %176, %177 : vector<1x64xi32>
    %c7_i32 = arith.constant 7 : i32
    %179 = vector.broadcast %c7_i32 : i32 to vector<1x64xi32>
    %180 = arith.cmpi ne, %176, %179 : vector<1x64xi32>
    %c0_121 = arith.constant 0 : index
    %c119_122 = arith.constant 119 : index
    %181 = vector.load %arg26[%c0_121, %c119_122] : memref<16x512xbf16, #tpu.memory_space<vmem>>, vector<16x64xbf16>
    %cst_123 = arith.constant 0.000000e+00 : bf16
    %182 = vector.broadcast %cst_123 : bf16 to vector<16x64xbf16>
    %183 = vector.shape_cast %178 : vector<1x64xi1> to vector<1x64xi1>
    %184 = vector.broadcast %183 : vector<1x64xi1> to vector<16x64xi1>
    %185 = arith.select %184, %181, %182 : vector<16x64xi1>, vector<16x64xbf16>
    %c0_124 = arith.constant 0 : index
    %c0_125 = arith.constant 0 : index
    %186 = vector.load %arg28[%c0_124, %c0_125] : memref<144x256xbf16, #tpu.memory_space<vmem>>, vector<16x64xbf16>
    tpu.vector_store %arg28[%c0_124, %c0_125], %185 {strides = array<i32>} : memref<144x256xbf16, #tpu.memory_space<vmem>>, vector<16x64xbf16>,
    %c0_126 = arith.constant 0 : index
    %c120 = arith.constant 120 : index
    %187 = vector.load %arg26[%c0_126, %c120] : memref<16x512xbf16, #tpu.memory_space<vmem>>, vector<16x64xbf16>
    %c16_127 = arith.constant 16 : index
    %c0_128 = arith.constant 0 : index
    %188 = vector.load %arg28[%c16_127, %c0_128] : memref<144x256xbf16, #tpu.memory_space<vmem>>, vector<16x64xbf16>
    tpu.vector_store %arg28[%c16_127, %c0_128], %187 {strides = array<i32>} : memref<144x256xbf16, #tpu.memory_space<vmem>>, vector<16x64xbf16>,
    %c0_129 = arith.constant 0 : index
    %c121 = arith.constant 121 : index
    %189 = vector.load %arg26[%c0_129, %c121] : memref<16x512xbf16, #tpu.memory_space<vmem>>, vector<16x64xbf16>
    %cst_130 = arith.constant 0.000000e+00 : bf16
    %190 = vector.broadcast %cst_130 : bf16 to vector<16x64xbf16>
    %191 = vector.shape_cast %180 : vector<1x64xi1> to vector<1x64xi1>
    %192 = vector.broadcast %191 : vector<1x64xi1> to vector<16x64xi1>
    %193 = arith.select %192, %189, %190 : vector<16x64xi1>, vector<16x64xbf16>
    %c32_131 = arith.constant 32 : index
    %c0_132 = arith.constant 0 : index
    %194 = vector.load %arg28[%c32_131, %c0_132] : memref<144x256xbf16, #tpu.memory_space<vmem>>, vector<16x64xbf16>
    tpu.vector_store %arg28[%c32_131, %c0_132], %193 {strides = array<i32>} : memref<144x256xbf16, #tpu.memory_space<vmem>>, vector<16x64xbf16>,
    %c0_133 = arith.constant 0 : index
    %c127_134 = arith.constant 127 : index
    %195 = vector.load %arg26[%c0_133, %c127_134] : memref<16x512xbf16, #tpu.memory_space<vmem>>, vector<16x64xbf16>
    %cst_135 = arith.constant 0.000000e+00 : bf16
    %196 = vector.broadcast %cst_135 : bf16 to vector<16x64xbf16>
    %197 = vector.shape_cast %178 : vector<1x64xi1> to vector<1x64xi1>
    %198 = vector.broadcast %197 : vector<1x64xi1> to vector<16x64xi1>
    %199 = arith.select %198, %195, %196 : vector<16x64xi1>, vector<16x64xbf16>
    %c48_136 = arith.constant 48 : index
    %c0_137 = arith.constant 0 : index
    %200 = vector.load %arg28[%c48_136, %c0_137] : memref<144x256xbf16, #tpu.memory_space<vmem>>, vector<16x64xbf16>
    tpu.vector_store %arg28[%c48_136, %c0_137], %199 {strides = array<i32>} : memref<144x256xbf16, #tpu.memory_space<vmem>>, vector<16x64xbf16>,
    %c0_138 = arith.constant 0 : index
    %c128_139 = arith.constant 128 : index
    %201 = vector.load %arg26[%c0_138, %c128_139] : memref<16x512xbf16, #tpu.memory_space<vmem>>, vector<16x64xbf16>
    %c64_140 = arith.constant 64 : index
    %c0_141 = arith.constant 0 : index
    %202 = vector.load %arg28[%c64_140, %c0_141] : memref<144x256xbf16, #tpu.memory_space<vmem>>, vector<16x64xbf16>
    tpu.vector_store %arg28[%c64_140, %c0_141], %201 {strides = array<i32>} : memref<144x256xbf16, #tpu.memory_space<vmem>>, vector<16x64xbf16>,
    %c0_142 = arith.constant 0 : index
    %c129_143 = arith.constant 129 : index
    %203 = vector.load %arg26[%c0_142, %c129_143] : memref<16x512xbf16, #tpu.memory_space<vmem>>, vector<16x64xbf16>
    %cst_144 = arith.constant 0.000000e+00 : bf16
    %204 = vector.broadcast %cst_144 : bf16 to vector<16x64xbf16>
    %205 = vector.shape_cast %180 : vector<1x64xi1> to vector<1x64xi1>
    %206 = vector.broadcast %205 : vector<1x64xi1> to vector<16x64xi1>
    %207 = arith.select %206, %203, %204 : vector<16x64xi1>, vector<16x64xbf16>
    %c80_145 = arith.constant 80 : index
    %c0_146 = arith.constant 0 : index
    %208 = vector.load %arg28[%c80_145, %c0_146] : memref<144x256xbf16, #tpu.memory_space<vmem>>, vector<16x64xbf16>
    tpu.vector_store %arg28[%c80_145, %c0_146], %207 {strides = array<i32>} : memref<144x256xbf16, #tpu.memory_space<vmem>>, vector<16x64xbf16>,
    %c0_147 = arith.constant 0 : index
    %c135 = arith.constant 135 : index
    %209 = vector.load %arg26[%c0_147, %c135] : memref<16x512xbf16, #tpu.memory_space<vmem>>, vector<16x64xbf16>
    %cst_148 = arith.constant 0.000000e+00 : bf16
    %210 = vector.broadcast %cst_148 : bf16 to vector<16x64xbf16>
    %211 = vector.shape_cast %178 : vector<1x64xi1> to vector<1x64xi1>
    %212 = vector.broadcast %211 : vector<1x64xi1> to vector<16x64xi1>
    %213 = arith.select %212, %209, %210 : vector<16x64xi1>, vector<16x64xbf16>
    %c96_149 = arith.constant 96 : index
    %c0_150 = arith.constant 0 : index
    %214 = vector.load %arg28[%c96_149, %c0_150] : memref<144x256xbf16, #tpu.memory_space<vmem>>, vector<16x64xbf16>
    tpu.vector_store %arg28[%c96_149, %c0_150], %213 {strides = array<i32>} : memref<144x256xbf16, #tpu.memory_space<vmem>>, vector<16x64xbf16>,
    %c0_151 = arith.constant 0 : index
    %c136 = arith.constant 136 : index
    %215 = vector.load %arg26[%c0_151, %c136] : memref<16x512xbf16, #tpu.memory_space<vmem>>, vector<16x64xbf16>
    %c112_152 = arith.constant 112 : index
    %c0_153 = arith.constant 0 : index
    %216 = vector.load %arg28[%c112_152, %c0_153] : memref<144x256xbf16, #tpu.memory_space<vmem>>, vector<16x64xbf16>
    tpu.vector_store %arg28[%c112_152, %c0_153], %215 {strides = array<i32>} : memref<144x256xbf16, #tpu.memory_space<vmem>>, vector<16x64xbf16>,
    %c0_154 = arith.constant 0 : index
    %c137 = arith.constant 137 : index
    %217 = vector.load %arg26[%c0_154, %c137] : memref<16x512xbf16, #tpu.memory_space<vmem>>, vector<16x64xbf16>
    %cst_155 = arith.constant 0.000000e+00 : bf16
    %218 = vector.broadcast %cst_155 : bf16 to vector<16x64xbf16>
    %219 = vector.shape_cast %180 : vector<1x64xi1> to vector<1x64xi1>
    %220 = vector.broadcast %219 : vector<1x64xi1> to vector<16x64xi1>
    %221 = arith.select %220, %217, %218 : vector<16x64xi1>, vector<16x64xbf16>
    %c128_156 = arith.constant 128 : index
    %c0_157 = arith.constant 0 : index
    %222 = vector.load %arg28[%c128_156, %c0_157] : memref<144x256xbf16, #tpu.memory_space<vmem>>, vector<16x64xbf16>
    tpu.vector_store %arg28[%c128_156, %c0_157], %221 {strides = array<i32>} : memref<144x256xbf16, #tpu.memory_space<vmem>>, vector<16x64xbf16>,
    %c0_158 = arith.constant 0 : index
    %c0_159 = arith.constant 0 : index
    %223 = vector.load %arg7[%c0_158, %c0_159] : memref<16x144xbf16, #tpu.memory_space<vmem>>, vector<16x144xbf16>
    %c0_160 = arith.constant 0 : index
    %c0_161 = arith.constant 0 : index
    %224 = vector.load %arg28[%c0_160, %c0_161] : memref<144x256xbf16, #tpu.memory_space<vmem>>, vector<144x64xbf16>
    %cst_162 = arith.constant dense<0.000000e+00> : vector<16x64xf32>
    %225 = tpu.matmul %223, %224, %cst_162 {dimension_numbers = #tpu.dot_dimension_numbers<[1], [0], [0], [1], [0, 0, 1, 1], [], []>} : vector<16x144xbf16>, vector<144x64xbf16>, vector<16x64xf32> -> vector<16x64xf32>
    %c0_163 = arith.constant 0 : index
    %c0_164 = arith.constant 0 : index
    %226 = vector.load %arg8[%c0_163, %c0_164] : memref<16x1xf32, #tpu.memory_space<vmem>>, vector<16x1xf32>
    %227 = vector.broadcast %226 : vector<16x1xf32> to vector<16x64xf32>
    %228 = arith.addf %225, %227 : vector<16x64xf32>
    %cst_165 = arith.constant 0.000000e+00 : f32
    %229 = vector.broadcast %cst_165 : f32 to vector<16x64xf32>
    %230 = arith.cmpf ogt, %228, %229 : vector<16x64xf32>
    %cst_166 = arith.constant 0.00999999977 : f32
    %231 = vector.broadcast %cst_166 : f32 to vector<16x64xf32>
    %232 = arith.mulf %231, %228 : vector<16x64xf32>
    %233 = arith.select %230, %228, %232 : vector<16x64xi1>, vector<16x64xf32>
    %cst_167 = arith.constant 0.000000e+00 : bf16
    %234 = vector.broadcast %cst_167 : bf16 to vector<16x9xbf16>
    %c0_168 = arith.constant 0 : index
    %c119_169 = arith.constant 119 : index
    %235 = vector.load %arg27[%c0_168, %c119_169] : memref<16x512xbf16, #tpu.memory_space<vmem>>, vector<16x9xbf16>
    tpu.vector_store %arg27[%c0_168, %c119_169], %234 {strides = array<i32>} : memref<16x512xbf16, #tpu.memory_space<vmem>>, vector<16x9xbf16>,
    %c0_170 = arith.constant 0 : index
    %c192_171 = arith.constant 192 : index
    %236 = vector.load %arg27[%c0_170, %c192_171] : memref<16x512xbf16, #tpu.memory_space<vmem>>, vector<16x9xbf16>
    tpu.vector_store %arg27[%c0_170, %c192_171], %234 {strides = array<i32>} : memref<16x512xbf16, #tpu.memory_space<vmem>>, vector<16x9xbf16>,
    %237 = arith.truncf %233 : vector<16x64xf32> to vector<16x64xbf16>
    %c0_172 = arith.constant 0 : index
    %c128_173 = arith.constant 128 : index
    %238 = vector.load %arg27[%c0_172, %c128_173] : memref<16x512xbf16, #tpu.memory_space<vmem>>, vector<16x64xbf16>
    tpu.vector_store %arg27[%c0_172, %c128_173], %237 {strides = array<i32>} : memref<16x512xbf16, #tpu.memory_space<vmem>>, vector<16x64xbf16>,
    %c0_174 = arith.constant 0 : index
    %c119_175 = arith.constant 119 : index
    %239 = vector.load %arg27[%c0_174, %c119_175] : memref<16x512xbf16, #tpu.memory_space<vmem>>, vector<16x64xbf16>
    %cst_176 = arith.constant 0.000000e+00 : bf16
    %240 = vector.broadcast %cst_176 : bf16 to vector<16x64xbf16>
    %241 = vector.shape_cast %178 : vector<1x64xi1> to vector<1x64xi1>
    %242 = vector.broadcast %241 : vector<1x64xi1> to vector<16x64xi1>
    %243 = arith.select %242, %239, %240 : vector<16x64xi1>, vector<16x64xbf16>
    %c0_177 = arith.constant 0 : index
    %c0_178 = arith.constant 0 : index
    %244 = vector.load %arg28[%c0_177, %c0_178] : memref<144x256xbf16, #tpu.memory_space<vmem>>, vector<16x64xbf16>
    tpu.vector_store %arg28[%c0_177, %c0_178], %243 {strides = array<i32>} : memref<144x256xbf16, #tpu.memory_space<vmem>>, vector<16x64xbf16>,
    %c0_179 = arith.constant 0 : index
    %c120_180 = arith.constant 120 : index
    %245 = vector.load %arg27[%c0_179, %c120_180] : memref<16x512xbf16, #tpu.memory_space<vmem>>, vector<16x64xbf16>
    %c16_181 = arith.constant 16 : index
    %c0_182 = arith.constant 0 : index
    %246 = vector.load %arg28[%c16_181, %c0_182] : memref<144x256xbf16, #tpu.memory_space<vmem>>, vector<16x64xbf16>
    tpu.vector_store %arg28[%c16_181, %c0_182], %245 {strides = array<i32>} : memref<144x256xbf16, #tpu.memory_space<vmem>>, vector<16x64xbf16>,
    %c0_183 = arith.constant 0 : index
    %c121_184 = arith.constant 121 : index
    %247 = vector.load %arg27[%c0_183, %c121_184] : memref<16x512xbf16, #tpu.memory_space<vmem>>, vector<16x64xbf16>
    %cst_185 = arith.constant 0.000000e+00 : bf16
    %248 = vector.broadcast %cst_185 : bf16 to vector<16x64xbf16>
    %249 = vector.shape_cast %180 : vector<1x64xi1> to vector<1x64xi1>
    %250 = vector.broadcast %249 : vector<1x64xi1> to vector<16x64xi1>
    %251 = arith.select %250, %247, %248 : vector<16x64xi1>, vector<16x64xbf16>
    %c32_186 = arith.constant 32 : index
    %c0_187 = arith.constant 0 : index
    %252 = vector.load %arg28[%c32_186, %c0_187] : memref<144x256xbf16, #tpu.memory_space<vmem>>, vector<16x64xbf16>
    tpu.vector_store %arg28[%c32_186, %c0_187], %251 {strides = array<i32>} : memref<144x256xbf16, #tpu.memory_space<vmem>>, vector<16x64xbf16>,
    %c0_188 = arith.constant 0 : index
    %c127_189 = arith.constant 127 : index
    %253 = vector.load %arg27[%c0_188, %c127_189] : memref<16x512xbf16, #tpu.memory_space<vmem>>, vector<16x64xbf16>
    %cst_190 = arith.constant 0.000000e+00 : bf16
    %254 = vector.broadcast %cst_190 : bf16 to vector<16x64xbf16>
    %255 = vector.shape_cast %178 : vector<1x64xi1> to vector<1x64xi1>
    %256 = vector.broadcast %255 : vector<1x64xi1> to vector<16x64xi1>
    %257 = arith.select %256, %253, %254 : vector<16x64xi1>, vector<16x64xbf16>
    %c48_191 = arith.constant 48 : index
    %c0_192 = arith.constant 0 : index
    %258 = vector.load %arg28[%c48_191, %c0_192] : memref<144x256xbf16, #tpu.memory_space<vmem>>, vector<16x64xbf16>
    tpu.vector_store %arg28[%c48_191, %c0_192], %257 {strides = array<i32>} : memref<144x256xbf16, #tpu.memory_space<vmem>>, vector<16x64xbf16>,
    %c0_193 = arith.constant 0 : index
    %c128_194 = arith.constant 128 : index
    %259 = vector.load %arg27[%c0_193, %c128_194] : memref<16x512xbf16, #tpu.memory_space<vmem>>, vector<16x64xbf16>
    %c64_195 = arith.constant 64 : index
    %c0_196 = arith.constant 0 : index
    %260 = vector.load %arg28[%c64_195, %c0_196] : memref<144x256xbf16, #tpu.memory_space<vmem>>, vector<16x64xbf16>
    tpu.vector_store %arg28[%c64_195, %c0_196], %259 {strides = array<i32>} : memref<144x256xbf16, #tpu.memory_space<vmem>>, vector<16x64xbf16>,
    %c0_197 = arith.constant 0 : index
    %c129_198 = arith.constant 129 : index
    %261 = vector.load %arg27[%c0_197, %c129_198] : memref<16x512xbf16, #tpu.memory_space<vmem>>, vector<16x64xbf16>
    %cst_199 = arith.constant 0.000000e+00 : bf16
    %262 = vector.broadcast %cst_199 : bf16 to vector<16x64xbf16>
    %263 = vector.shape_cast %180 : vector<1x64xi1> to vector<1x64xi1>
    %264 = vector.broadcast %263 : vector<1x64xi1> to vector<16x64xi1>
    %265 = arith.select %264, %261, %262 : vector<16x64xi1>, vector<16x64xbf16>
    %c80_200 = arith.constant 80 : index
    %c0_201 = arith.constant 0 : index
    %266 = vector.load %arg28[%c80_200, %c0_201] : memref<144x256xbf16, #tpu.memory_space<vmem>>, vector<16x64xbf16>
    tpu.vector_store %arg28[%c80_200, %c0_201], %265 {strides = array<i32>} : memref<144x256xbf16, #tpu.memory_space<vmem>>, vector<16x64xbf16>,
    %c0_202 = arith.constant 0 : index
    %c135_203 = arith.constant 135 : index
    %267 = vector.load %arg27[%c0_202, %c135_203] : memref<16x512xbf16, #tpu.memory_space<vmem>>, vector<16x64xbf16>
    %cst_204 = arith.constant 0.000000e+00 : bf16
    %268 = vector.broadcast %cst_204 : bf16 to vector<16x64xbf16>
    %269 = vector.shape_cast %178 : vector<1x64xi1> to vector<1x64xi1>
    %270 = vector.broadcast %269 : vector<1x64xi1> to vector<16x64xi1>
    %271 = arith.select %270, %267, %268 : vector<16x64xi1>, vector<16x64xbf16>
    %c96_205 = arith.constant 96 : index
    %c0_206 = arith.constant 0 : index
    %272 = vector.load %arg28[%c96_205, %c0_206] : memref<144x256xbf16, #tpu.memory_space<vmem>>, vector<16x64xbf16>
    tpu.vector_store %arg28[%c96_205, %c0_206], %271 {strides = array<i32>} : memref<144x256xbf16, #tpu.memory_space<vmem>>, vector<16x64xbf16>,
    %c0_207 = arith.constant 0 : index
    %c136_208 = arith.constant 136 : index
    %273 = vector.load %arg27[%c0_207, %c136_208] : memref<16x512xbf16, #tpu.memory_space<vmem>>, vector<16x64xbf16>
    %c112_209 = arith.constant 112 : index
    %c0_210 = arith.constant 0 : index
    %274 = vector.load %arg28[%c112_209, %c0_210] : memref<144x256xbf16, #tpu.memory_space<vmem>>, vector<16x64xbf16>
    tpu.vector_store %arg28[%c112_209, %c0_210], %273 {strides = array<i32>} : memref<144x256xbf16, #tpu.memory_space<vmem>>, vector<16x64xbf16>,
    %c0_211 = arith.constant 0 : index
    %c137_212 = arith.constant 137 : index
    %275 = vector.load %arg27[%c0_211, %c137_212] : memref<16x512xbf16, #tpu.memory_space<vmem>>, vector<16x64xbf16>
    %cst_213 = arith.constant 0.000000e+00 : bf16
    %276 = vector.broadcast %cst_213 : bf16 to vector<16x64xbf16>
    %277 = vector.shape_cast %180 : vector<1x64xi1> to vector<1x64xi1>
    %278 = vector.broadcast %277 : vector<1x64xi1> to vector<16x64xi1>
    %279 = arith.select %278, %275, %276 : vector<16x64xi1>, vector<16x64xbf16>
    %c128_214 = arith.constant 128 : index
    %c0_215 = arith.constant 0 : index
    %280 = vector.load %arg28[%c128_214, %c0_215] : memref<144x256xbf16, #tpu.memory_space<vmem>>, vector<16x64xbf16>
    tpu.vector_store %arg28[%c128_214, %c0_215], %279 {strides = array<i32>} : memref<144x256xbf16, #tpu.memory_space<vmem>>, vector<16x64xbf16>,
    %c0_216 = arith.constant 0 : index
    %c0_217 = arith.constant 0 : index
    %281 = vector.load %arg9[%c0_216, %c0_217] : memref<16x144xbf16, #tpu.memory_space<vmem>>, vector<16x144xbf16>
    %c0_218 = arith.constant 0 : index
    %c0_219 = arith.constant 0 : index
    %282 = vector.load %arg28[%c0_218, %c0_219] : memref<144x256xbf16, #tpu.memory_space<vmem>>, vector<144x64xbf16>
    %cst_220 = arith.constant dense<0.000000e+00> : vector<16x64xf32>
    %283 = tpu.matmul %281, %282, %cst_220 {dimension_numbers = #tpu.dot_dimension_numbers<[1], [0], [0], [1], [0, 0, 1, 1], [], []>} : vector<16x144xbf16>, vector<144x64xbf16>, vector<16x64xf32> -> vector<16x64xf32>
    %c0_221 = arith.constant 0 : index
    %c0_222 = arith.constant 0 : index
    %284 = vector.load %arg10[%c0_221, %c0_222] : memref<16x1xf32, #tpu.memory_space<vmem>>, vector<16x1xf32>
    %285 = vector.broadcast %284 : vector<16x1xf32> to vector<16x64xf32>
    %286 = arith.addf %283, %285 : vector<16x64xf32>
    %cst_223 = arith.constant 0.000000e+00 : f32
    %287 = vector.broadcast %cst_223 : f32 to vector<16x64xf32>
    %288 = arith.cmpf ogt, %286, %287 : vector<16x64xf32>
    %cst_224 = arith.constant 0.00999999977 : f32
    %289 = vector.broadcast %cst_224 : f32 to vector<16x64xf32>
    %290 = arith.mulf %289, %286 : vector<16x64xf32>
    %291 = arith.select %288, %286, %290 : vector<16x64xi1>, vector<16x64xf32>
    %c0_225 = arith.constant 0 : index
    %c0_226 = arith.constant 0 : index
    %c0_227 = arith.constant 0 : index
    %292 = vector.load %arg22[%c0_225, %c0_226, %c0_227] : memref<1x16x64xf32, #tpu.memory_space<vmem>>, vector<1x16x64xf32>
    %293 = vector.shape_cast %292 : vector<1x16x64xf32> to vector<16x64xf32>
    %294 = vector.shape_cast %291 : vector<16x64xf32> to vector<1x16x64xf32>
    tpu.vector_store %arg22[%c0_225, %c0_226, %c0_227], %294 {strides = array<i32>} : memref<1x16x64xf32, #tpu.memory_space<vmem>>, vector<1x16x64xf32>,
    %295 = vector.extract_strided_slice %291 {offsets = [0, 0], sizes = [16, 55], strides = [1, 1]} : vector<16x64xf32> to vector<16x55xf32>
    %296 = vector.extract_strided_slice %291 {offsets = [0, 1], sizes = [16, 55], strides = [1, 1]} : vector<16x64xf32> to vector<16x55xf32>
    %297 = arith.maximumf %295, %296 : vector<16x55xf32>
    %298 = vector.extract_strided_slice %291 {offsets = [0, 8], sizes = [16, 55], strides = [1, 1]} : vector<16x64xf32> to vector<16x55xf32>
    %299 = vector.extract_strided_slice %291 {offsets = [0, 9], sizes = [16, 55], strides = [1, 1]} : vector<16x64xf32> to vector<16x55xf32>
    %300 = arith.maximumf %298, %299 : vector<16x55xf32>
    %301 = arith.maximumf %297, %300 : vector<16x55xf32>
    %302 = arith.truncf %301 : vector<16x55xf32> to vector<16x55xbf16>
    %c0_228 = arith.constant 0 : index
    %c0_229 = arith.constant 0 : index
    %303 = vector.load %arg11[%c0_228, %c0_229] : memref<55x16xbf16, #tpu.memory_space<vmem>>, vector<55x16xbf16>
    %cst_230 = arith.constant dense<0.000000e+00> : vector<16x16xf32>
    %304 = tpu.matmul %302, %303, %cst_230 {dimension_numbers = #tpu.dot_dimension_numbers<[1], [0], [0], [1], [0, 0, 1, 1], [], []>} : vector<16x55xbf16>, vector<55x16xbf16>, vector<16x16xf32> -> vector<16x16xf32>
    %cst_231 = arith.constant 0.000000e+00 : bf16
    %305 = vector.broadcast %cst_231 : bf16 to vector<16x5xbf16>
    %c0_232 = arith.constant 0 : index
    %c123 = arith.constant 123 : index
    %306 = vector.load %arg26[%c0_232, %c123] : memref<16x512xbf16, #tpu.memory_space<vmem>>, vector<16x5xbf16>
    tpu.vector_store %arg26[%c0_232, %c123], %305 {strides = array<i32>} : memref<16x512xbf16, #tpu.memory_space<vmem>>, vector<16x5xbf16>,
    %c0_233 = arith.constant 0 : index
    %c144_234 = arith.constant 144 : index
    %307 = vector.load %arg26[%c0_233, %c144_234] : memref<16x512xbf16, #tpu.memory_space<vmem>>, vector<16x5xbf16>
    tpu.vector_store %arg26[%c0_233, %c144_234], %305 {strides = array<i32>} : memref<16x512xbf16, #tpu.memory_space<vmem>>, vector<16x5xbf16>,
    %308 = arith.truncf %304 : vector<16x16xf32> to vector<16x16xbf16>
    %c0_235 = arith.constant 0 : index
    %c128_236 = arith.constant 128 : index
    %309 = vector.load %arg26[%c0_235, %c128_236] : memref<16x512xbf16, #tpu.memory_space<vmem>>, vector<16x16xbf16>
    tpu.vector_store %arg26[%c0_235, %c128_236], %308 {strides = array<i32>} : memref<16x512xbf16, #tpu.memory_space<vmem>>, vector<16x16xbf16>,
    %310 = tpu.iota {dimensions = array<i32: 1>} : vector<1x16xi32>
    %c4_i32 = arith.constant 4 : i32
    %c0_i32_237 = arith.constant 0 : i32
    %311 = arith.cmpi eq, %c4_i32, %c0_i32_237 : i32
    %c1_i32_238 = arith.constant 1 : i32
    %312 = arith.select %311, %c1_i32_238, %c4_i32 : i32
    %313 = vector.broadcast %312 : i32 to vector<1x16xi32>
    %314 = arith.remsi %310, %313 : vector<1x16xi32>
    %c0_i32_239 = arith.constant 0 : i32
    %315 = vector.broadcast %c0_i32_239 : i32 to vector<1x16xi32>
    %316 = arith.cmpi ne, %314, %315 : vector<1x16xi32>
    %c0_i32_240 = arith.constant 0 : i32
    %317 = vector.broadcast %c0_i32_240 : i32 to vector<1x16xi32>
    %318 = arith.cmpi slt, %314, %317 : vector<1x16xi32>
    %c0_i32_241 = arith.constant 0 : i32
    %319 = arith.cmpi slt, %312, %c0_i32_241 : i32
    %320 = vector.broadcast %319 : i1 to vector<1x16xi1>
    %321 = vector.broadcast %320 : vector<1x16xi1> to vector<1x16xi1>
    %322 = arith.xori %318, %321 : vector<1x16xi1>
    %323 = arith.andi %322, %316 : vector<1x16xi1>
    %324 = vector.broadcast %312 : i32 to vector<1x16xi32>
    %325 = arith.addi %314, %324 : vector<1x16xi32>
    %326 = arith.select %323, %325, %314 : vector<1x16xi1>, vector<1x16xi32>
    %c0_i32_242 = arith.constant 0 : i32
    %327 = vector.broadcast %c0_i32_242 : i32 to vector<1x16xi32>
    %328 = arith.cmpi ne, %326, %327 : vector<1x16xi32>
    %c3_i32 = arith.constant 3 : i32
    %329 = vector.broadcast %c3_i32 : i32 to vector<1x16xi32>
    %330 = arith.cmpi ne, %326, %329 : vector<1x16xi32>
    %c0_243 = arith.constant 0 : index
    %c123_244 = arith.constant 123 : index
    %331 = vector.load %arg26[%c0_243, %c123_244] : memref<16x512xbf16, #tpu.memory_space<vmem>>, vector<16x16xbf16>
    %cst_245 = arith.constant 0.000000e+00 : bf16
    %332 = vector.broadcast %cst_245 : bf16 to vector<16x16xbf16>
    %333 = vector.shape_cast %328 : vector<1x16xi1> to vector<1x16xi1>
    %334 = vector.broadcast %333 : vector<1x16xi1> to vector<16x16xi1>
    %335 = arith.select %334, %331, %332 : vector<16x16xi1>, vector<16x16xbf16>
    %c0_246 = arith.constant 0 : index
    %c0_247 = arith.constant 0 : index
    %336 = vector.load %arg28[%c0_246, %c0_247] : memref<144x256xbf16, #tpu.memory_space<vmem>>, vector<16x16xbf16>
    tpu.vector_store %arg28[%c0_246, %c0_247], %335 {strides = array<i32>} : memref<144x256xbf16, #tpu.memory_space<vmem>>, vector<16x16xbf16>,
    %c0_248 = arith.constant 0 : index
    %c124 = arith.constant 124 : index
    %337 = vector.load %arg26[%c0_248, %c124] : memref<16x512xbf16, #tpu.memory_space<vmem>>, vector<16x16xbf16>
    %c16_249 = arith.constant 16 : index
    %c0_250 = arith.constant 0 : index
    %338 = vector.load %arg28[%c16_249, %c0_250] : memref<144x256xbf16, #tpu.memory_space<vmem>>, vector<16x16xbf16>
    tpu.vector_store %arg28[%c16_249, %c0_250], %337 {strides = array<i32>} : memref<144x256xbf16, #tpu.memory_space<vmem>>, vector<16x16xbf16>,
    %c0_251 = arith.constant 0 : index
    %c125 = arith.constant 125 : index
    %339 = vector.load %arg26[%c0_251, %c125] : memref<16x512xbf16, #tpu.memory_space<vmem>>, vector<16x16xbf16>
    %cst_252 = arith.constant 0.000000e+00 : bf16
    %340 = vector.broadcast %cst_252 : bf16 to vector<16x16xbf16>
    %341 = vector.shape_cast %330 : vector<1x16xi1> to vector<1x16xi1>
    %342 = vector.broadcast %341 : vector<1x16xi1> to vector<16x16xi1>
    %343 = arith.select %342, %339, %340 : vector<16x16xi1>, vector<16x16xbf16>
    %c32_253 = arith.constant 32 : index
    %c0_254 = arith.constant 0 : index
    %344 = vector.load %arg28[%c32_253, %c0_254] : memref<144x256xbf16, #tpu.memory_space<vmem>>, vector<16x16xbf16>
    tpu.vector_store %arg28[%c32_253, %c0_254], %343 {strides = array<i32>} : memref<144x256xbf16, #tpu.memory_space<vmem>>, vector<16x16xbf16>,
    %c0_255 = arith.constant 0 : index
    %c127_256 = arith.constant 127 : index
    %345 = vector.load %arg26[%c0_255, %c127_256] : memref<16x512xbf16, #tpu.memory_space<vmem>>, vector<16x16xbf16>
    %cst_257 = arith.constant 0.000000e+00 : bf16
    %346 = vector.broadcast %cst_257 : bf16 to vector<16x16xbf16>
    %347 = vector.shape_cast %328 : vector<1x16xi1> to vector<1x16xi1>
    %348 = vector.broadcast %347 : vector<1x16xi1> to vector<16x16xi1>
    %349 = arith.select %348, %345, %346 : vector<16x16xi1>, vector<16x16xbf16>
    %c48_258 = arith.constant 48 : index
    %c0_259 = arith.constant 0 : index
    %350 = vector.load %arg28[%c48_258, %c0_259] : memref<144x256xbf16, #tpu.memory_space<vmem>>, vector<16x16xbf16>
    tpu.vector_store %arg28[%c48_258, %c0_259], %349 {strides = array<i32>} : memref<144x256xbf16, #tpu.memory_space<vmem>>, vector<16x16xbf16>,
    %c0_260 = arith.constant 0 : index
    %c128_261 = arith.constant 128 : index
    %351 = vector.load %arg26[%c0_260, %c128_261] : memref<16x512xbf16, #tpu.memory_space<vmem>>, vector<16x16xbf16>
    %c64_262 = arith.constant 64 : index
    %c0_263 = arith.constant 0 : index
    %352 = vector.load %arg28[%c64_262, %c0_263] : memref<144x256xbf16, #tpu.memory_space<vmem>>, vector<16x16xbf16>
    tpu.vector_store %arg28[%c64_262, %c0_263], %351 {strides = array<i32>} : memref<144x256xbf16, #tpu.memory_space<vmem>>, vector<16x16xbf16>,
    %c0_264 = arith.constant 0 : index
    %c129_265 = arith.constant 129 : index
    %353 = vector.load %arg26[%c0_264, %c129_265] : memref<16x512xbf16, #tpu.memory_space<vmem>>, vector<16x16xbf16>
    %cst_266 = arith.constant 0.000000e+00 : bf16
    %354 = vector.broadcast %cst_266 : bf16 to vector<16x16xbf16>
    %355 = vector.shape_cast %330 : vector<1x16xi1> to vector<1x16xi1>
    %356 = vector.broadcast %355 : vector<1x16xi1> to vector<16x16xi1>
    %357 = arith.select %356, %353, %354 : vector<16x16xi1>, vector<16x16xbf16>
    %c80_267 = arith.constant 80 : index
    %c0_268 = arith.constant 0 : index
    %358 = vector.load %arg28[%c80_267, %c0_268] : memref<144x256xbf16, #tpu.memory_space<vmem>>, vector<16x16xbf16>
    tpu.vector_store %arg28[%c80_267, %c0_268], %357 {strides = array<i32>} : memref<144x256xbf16, #tpu.memory_space<vmem>>, vector<16x16xbf16>,
    %c0_269 = arith.constant 0 : index
    %c131 = arith.constant 131 : index
    %359 = vector.load %arg26[%c0_269, %c131] : memref<16x512xbf16, #tpu.memory_space<vmem>>, vector<16x16xbf16>
    %cst_270 = arith.constant 0.000000e+00 : bf16
    %360 = vector.broadcast %cst_270 : bf16 to vector<16x16xbf16>
    %361 = vector.shape_cast %328 : vector<1x16xi1> to vector<1x16xi1>
    %362 = vector.broadcast %361 : vector<1x16xi1> to vector<16x16xi1>
    %363 = arith.select %362, %359, %360 : vector<16x16xi1>, vector<16x16xbf16>
    %c96_271 = arith.constant 96 : index
    %c0_272 = arith.constant 0 : index
    %364 = vector.load %arg28[%c96_271, %c0_272] : memref<144x256xbf16, #tpu.memory_space<vmem>>, vector<16x16xbf16>
    tpu.vector_store %arg28[%c96_271, %c0_272], %363 {strides = array<i32>} : memref<144x256xbf16, #tpu.memory_space<vmem>>, vector<16x16xbf16>,
    %c0_273 = arith.constant 0 : index
    %c132 = arith.constant 132 : index
    %365 = vector.load %arg26[%c0_273, %c132] : memref<16x512xbf16, #tpu.memory_space<vmem>>, vector<16x16xbf16>
    %c112_274 = arith.constant 112 : index
    %c0_275 = arith.constant 0 : index
    %366 = vector.load %arg28[%c112_274, %c0_275] : memref<144x256xbf16, #tpu.memory_space<vmem>>, vector<16x16xbf16>
    tpu.vector_store %arg28[%c112_274, %c0_275], %365 {strides = array<i32>} : memref<144x256xbf16, #tpu.memory_space<vmem>>, vector<16x16xbf16>,
    %c0_276 = arith.constant 0 : index
    %c133 = arith.constant 133 : index
    %367 = vector.load %arg26[%c0_276, %c133] : memref<16x512xbf16, #tpu.memory_space<vmem>>, vector<16x16xbf16>
    %cst_277 = arith.constant 0.000000e+00 : bf16
    %368 = vector.broadcast %cst_277 : bf16 to vector<16x16xbf16>
    %369 = vector.shape_cast %330 : vector<1x16xi1> to vector<1x16xi1>
    %370 = vector.broadcast %369 : vector<1x16xi1> to vector<16x16xi1>
    %371 = arith.select %370, %367, %368 : vector<16x16xi1>, vector<16x16xbf16>
    %c128_278 = arith.constant 128 : index
    %c0_279 = arith.constant 0 : index
    %372 = vector.load %arg28[%c128_278, %c0_279] : memref<144x256xbf16, #tpu.memory_space<vmem>>, vector<16x16xbf16>
    tpu.vector_store %arg28[%c128_278, %c0_279], %371 {strides = array<i32>} : memref<144x256xbf16, #tpu.memory_space<vmem>>, vector<16x16xbf16>,
    %c0_280 = arith.constant 0 : index
    %c0_281 = arith.constant 0 : index
    %373 = vector.load %arg12[%c0_280, %c0_281] : memref<16x144xbf16, #tpu.memory_space<vmem>>, vector<16x144xbf16>
    %c0_282 = arith.constant 0 : index
    %c0_283 = arith.constant 0 : index
    %374 = vector.load %arg28[%c0_282, %c0_283] : memref<144x256xbf16, #tpu.memory_space<vmem>>, vector<144x16xbf16>
    %cst_284 = arith.constant dense<0.000000e+00> : vector<16x16xf32>
    %375 = tpu.matmul %373, %374, %cst_284 {dimension_numbers = #tpu.dot_dimension_numbers<[1], [0], [0], [1], [0, 0, 1, 1], [], []>} : vector<16x144xbf16>, vector<144x16xbf16>, vector<16x16xf32> -> vector<16x16xf32>
    %c0_285 = arith.constant 0 : index
    %c0_286 = arith.constant 0 : index
    %376 = vector.load %arg13[%c0_285, %c0_286] : memref<16x1xf32, #tpu.memory_space<vmem>>, vector<16x1xf32>
    %377 = vector.broadcast %376 : vector<16x1xf32> to vector<16x16xf32>
    %378 = arith.addf %375, %377 : vector<16x16xf32>
    %cst_287 = arith.constant 0.000000e+00 : f32
    %379 = vector.broadcast %cst_287 : f32 to vector<16x16xf32>
    %380 = arith.cmpf ogt, %378, %379 : vector<16x16xf32>
    %cst_288 = arith.constant 0.00999999977 : f32
    %381 = vector.broadcast %cst_288 : f32 to vector<16x16xf32>
    %382 = arith.mulf %381, %378 : vector<16x16xf32>
    %383 = arith.select %380, %378, %382 : vector<16x16xi1>, vector<16x16xf32>
    %cst_289 = arith.constant 0.000000e+00 : bf16
    %384 = vector.broadcast %cst_289 : bf16 to vector<16x5xbf16>
    %c0_290 = arith.constant 0 : index
    %c123_291 = arith.constant 123 : index
    %385 = vector.load %arg27[%c0_290, %c123_291] : memref<16x512xbf16, #tpu.memory_space<vmem>>, vector<16x5xbf16>
    tpu.vector_store %arg27[%c0_290, %c123_291], %384 {strides = array<i32>} : memref<16x512xbf16, #tpu.memory_space<vmem>>, vector<16x5xbf16>,
    %c0_292 = arith.constant 0 : index
    %c144_293 = arith.constant 144 : index
    %386 = vector.load %arg27[%c0_292, %c144_293] : memref<16x512xbf16, #tpu.memory_space<vmem>>, vector<16x5xbf16>
    tpu.vector_store %arg27[%c0_292, %c144_293], %384 {strides = array<i32>} : memref<16x512xbf16, #tpu.memory_space<vmem>>, vector<16x5xbf16>,
    %387 = arith.truncf %383 : vector<16x16xf32> to vector<16x16xbf16>
    %c0_294 = arith.constant 0 : index
    %c128_295 = arith.constant 128 : index
    %388 = vector.load %arg27[%c0_294, %c128_295] : memref<16x512xbf16, #tpu.memory_space<vmem>>, vector<16x16xbf16>
    tpu.vector_store %arg27[%c0_294, %c128_295], %387 {strides = array<i32>} : memref<16x512xbf16, #tpu.memory_space<vmem>>, vector<16x16xbf16>,
    %c0_296 = arith.constant 0 : index
    %c123_297 = arith.constant 123 : index
    %389 = vector.load %arg27[%c0_296, %c123_297] : memref<16x512xbf16, #tpu.memory_space<vmem>>, vector<16x16xbf16>
    %cst_298 = arith.constant 0.000000e+00 : bf16
    %390 = vector.broadcast %cst_298 : bf16 to vector<16x16xbf16>
    %391 = vector.shape_cast %328 : vector<1x16xi1> to vector<1x16xi1>
    %392 = vector.broadcast %391 : vector<1x16xi1> to vector<16x16xi1>
    %393 = arith.select %392, %389, %390 : vector<16x16xi1>, vector<16x16xbf16>
    %c0_299 = arith.constant 0 : index
    %c0_300 = arith.constant 0 : index
    %394 = vector.load %arg28[%c0_299, %c0_300] : memref<144x256xbf16, #tpu.memory_space<vmem>>, vector<16x16xbf16>
    tpu.vector_store %arg28[%c0_299, %c0_300], %393 {strides = array<i32>} : memref<144x256xbf16, #tpu.memory_space<vmem>>, vector<16x16xbf16>,
    %c0_301 = arith.constant 0 : index
    %c124_302 = arith.constant 124 : index
    %395 = vector.load %arg27[%c0_301, %c124_302] : memref<16x512xbf16, #tpu.memory_space<vmem>>, vector<16x16xbf16>
    %c16_303 = arith.constant 16 : index
    %c0_304 = arith.constant 0 : index
    %396 = vector.load %arg28[%c16_303, %c0_304] : memref<144x256xbf16, #tpu.memory_space<vmem>>, vector<16x16xbf16>
    tpu.vector_store %arg28[%c16_303, %c0_304], %395 {strides = array<i32>} : memref<144x256xbf16, #tpu.memory_space<vmem>>, vector<16x16xbf16>,
    %c0_305 = arith.constant 0 : index
    %c125_306 = arith.constant 125 : index
    %397 = vector.load %arg27[%c0_305, %c125_306] : memref<16x512xbf16, #tpu.memory_space<vmem>>, vector<16x16xbf16>
    %cst_307 = arith.constant 0.000000e+00 : bf16
    %398 = vector.broadcast %cst_307 : bf16 to vector<16x16xbf16>
    %399 = vector.shape_cast %330 : vector<1x16xi1> to vector<1x16xi1>
    %400 = vector.broadcast %399 : vector<1x16xi1> to vector<16x16xi1>
    %401 = arith.select %400, %397, %398 : vector<16x16xi1>, vector<16x16xbf16>
    %c32_308 = arith.constant 32 : index
    %c0_309 = arith.constant 0 : index
    %402 = vector.load %arg28[%c32_308, %c0_309] : memref<144x256xbf16, #tpu.memory_space<vmem>>, vector<16x16xbf16>
    tpu.vector_store %arg28[%c32_308, %c0_309], %401 {strides = array<i32>} : memref<144x256xbf16, #tpu.memory_space<vmem>>, vector<16x16xbf16>,
    %c0_310 = arith.constant 0 : index
    %c127_311 = arith.constant 127 : index
    %403 = vector.load %arg27[%c0_310, %c127_311] : memref<16x512xbf16, #tpu.memory_space<vmem>>, vector<16x16xbf16>
    %cst_312 = arith.constant 0.000000e+00 : bf16
    %404 = vector.broadcast %cst_312 : bf16 to vector<16x16xbf16>
    %405 = vector.shape_cast %328 : vector<1x16xi1> to vector<1x16xi1>
    %406 = vector.broadcast %405 : vector<1x16xi1> to vector<16x16xi1>
    %407 = arith.select %406, %403, %404 : vector<16x16xi1>, vector<16x16xbf16>
    %c48_313 = arith.constant 48 : index
    %c0_314 = arith.constant 0 : index
    %408 = vector.load %arg28[%c48_313, %c0_314] : memref<144x256xbf16, #tpu.memory_space<vmem>>, vector<16x16xbf16>
    tpu.vector_store %arg28[%c48_313, %c0_314], %407 {strides = array<i32>} : memref<144x256xbf16, #tpu.memory_space<vmem>>, vector<16x16xbf16>,
    %c0_315 = arith.constant 0 : index
    %c128_316 = arith.constant 128 : index
    %409 = vector.load %arg27[%c0_315, %c128_316] : memref<16x512xbf16, #tpu.memory_space<vmem>>, vector<16x16xbf16>
    %c64_317 = arith.constant 64 : index
    %c0_318 = arith.constant 0 : index
    %410 = vector.load %arg28[%c64_317, %c0_318] : memref<144x256xbf16, #tpu.memory_space<vmem>>, vector<16x16xbf16>
    tpu.vector_store %arg28[%c64_317, %c0_318], %409 {strides = array<i32>} : memref<144x256xbf16, #tpu.memory_space<vmem>>, vector<16x16xbf16>,
    %c0_319 = arith.constant 0 : index
    %c129_320 = arith.constant 129 : index
    %411 = vector.load %arg27[%c0_319, %c129_320] : memref<16x512xbf16, #tpu.memory_space<vmem>>, vector<16x16xbf16>
    %cst_321 = arith.constant 0.000000e+00 : bf16
    %412 = vector.broadcast %cst_321 : bf16 to vector<16x16xbf16>
    %413 = vector.shape_cast %330 : vector<1x16xi1> to vector<1x16xi1>
    %414 = vector.broadcast %413 : vector<1x16xi1> to vector<16x16xi1>
    %415 = arith.select %414, %411, %412 : vector<16x16xi1>, vector<16x16xbf16>
    %c80_322 = arith.constant 80 : index
    %c0_323 = arith.constant 0 : index
    %416 = vector.load %arg28[%c80_322, %c0_323] : memref<144x256xbf16, #tpu.memory_space<vmem>>, vector<16x16xbf16>
    tpu.vector_store %arg28[%c80_322, %c0_323], %415 {strides = array<i32>} : memref<144x256xbf16, #tpu.memory_space<vmem>>, vector<16x16xbf16>,
    %c0_324 = arith.constant 0 : index
    %c131_325 = arith.constant 131 : index
    %417 = vector.load %arg27[%c0_324, %c131_325] : memref<16x512xbf16, #tpu.memory_space<vmem>>, vector<16x16xbf16>
    %cst_326 = arith.constant 0.000000e+00 : bf16
    %418 = vector.broadcast %cst_326 : bf16 to vector<16x16xbf16>
    %419 = vector.shape_cast %328 : vector<1x16xi1> to vector<1x16xi1>
    %420 = vector.broadcast %419 : vector<1x16xi1> to vector<16x16xi1>
    %421 = arith.select %420, %417, %418 : vector<16x16xi1>, vector<16x16xbf16>
    %c96_327 = arith.constant 96 : index
    %c0_328 = arith.constant 0 : index
    %422 = vector.load %arg28[%c96_327, %c0_328] : memref<144x256xbf16, #tpu.memory_space<vmem>>, vector<16x16xbf16>
    tpu.vector_store %arg28[%c96_327, %c0_328], %421 {strides = array<i32>} : memref<144x256xbf16, #tpu.memory_space<vmem>>, vector<16x16xbf16>,
    %c0_329 = arith.constant 0 : index
    %c132_330 = arith.constant 132 : index
    %423 = vector.load %arg27[%c0_329, %c132_330] : memref<16x512xbf16, #tpu.memory_space<vmem>>, vector<16x16xbf16>
    %c112_331 = arith.constant 112 : index
    %c0_332 = arith.constant 0 : index
    %424 = vector.load %arg28[%c112_331, %c0_332] : memref<144x256xbf16, #tpu.memory_space<vmem>>, vector<16x16xbf16>
    tpu.vector_store %arg28[%c112_331, %c0_332], %423 {strides = array<i32>} : memref<144x256xbf16, #tpu.memory_space<vmem>>, vector<16x16xbf16>,
    %c0_333 = arith.constant 0 : index
    %c133_334 = arith.constant 133 : index
    %425 = vector.load %arg27[%c0_333, %c133_334] : memref<16x512xbf16, #tpu.memory_space<vmem>>, vector<16x16xbf16>
    %cst_335 = arith.constant 0.000000e+00 : bf16
    %426 = vector.broadcast %cst_335 : bf16 to vector<16x16xbf16>
    %427 = vector.shape_cast %330 : vector<1x16xi1> to vector<1x16xi1>
    %428 = vector.broadcast %427 : vector<1x16xi1> to vector<16x16xi1>
    %429 = arith.select %428, %425, %426 : vector<16x16xi1>, vector<16x16xbf16>
    %c128_336 = arith.constant 128 : index
    %c0_337 = arith.constant 0 : index
    %430 = vector.load %arg28[%c128_336, %c0_337] : memref<144x256xbf16, #tpu.memory_space<vmem>>, vector<16x16xbf16>
    tpu.vector_store %arg28[%c128_336, %c0_337], %429 {strides = array<i32>} : memref<144x256xbf16, #tpu.memory_space<vmem>>, vector<16x16xbf16>,
    %c0_338 = arith.constant 0 : index
    %c0_339 = arith.constant 0 : index
    %431 = vector.load %arg14[%c0_338, %c0_339] : memref<16x144xbf16, #tpu.memory_space<vmem>>, vector<16x144xbf16>
    %c0_340 = arith.constant 0 : index
    %c0_341 = arith.constant 0 : index
    %432 = vector.load %arg28[%c0_340, %c0_341] : memref<144x256xbf16, #tpu.memory_space<vmem>>, vector<144x16xbf16>
    %cst_342 = arith.constant dense<0.000000e+00> : vector<16x16xf32>
    %433 = tpu.matmul %431, %432, %cst_342 {dimension_numbers = #tpu.dot_dimension_numbers<[1], [0], [0], [1], [0, 0, 1, 1], [], []>} : vector<16x144xbf16>, vector<144x16xbf16>, vector<16x16xf32> -> vector<16x16xf32>
    %c0_343 = arith.constant 0 : index
    %c0_344 = arith.constant 0 : index
    %434 = vector.load %arg15[%c0_343, %c0_344] : memref<16x1xf32, #tpu.memory_space<vmem>>, vector<16x1xf32>
    %435 = vector.broadcast %434 : vector<16x1xf32> to vector<16x16xf32>
    %436 = arith.addf %433, %435 : vector<16x16xf32>
    %cst_345 = arith.constant 0.000000e+00 : f32
    %437 = vector.broadcast %cst_345 : f32 to vector<16x16xf32>
    %438 = arith.cmpf ogt, %436, %437 : vector<16x16xf32>
    %cst_346 = arith.constant 0.00999999977 : f32
    %439 = vector.broadcast %cst_346 : f32 to vector<16x16xf32>
    %440 = arith.mulf %439, %436 : vector<16x16xf32>
    %441 = arith.select %438, %436, %440 : vector<16x16xi1>, vector<16x16xf32>
    %c0_347 = arith.constant 0 : index
    %c0_348 = arith.constant 0 : index
    %c0_349 = arith.constant 0 : index
    %442 = vector.load %arg23[%c0_347, %c0_348, %c0_349] : memref<1x16x16xf32, #tpu.memory_space<vmem>>, vector<1x16x16xf32>
    %443 = vector.shape_cast %442 : vector<1x16x16xf32> to vector<16x16xf32>
    %444 = vector.shape_cast %441 : vector<16x16xf32> to vector<1x16x16xf32>
    tpu.vector_store %arg23[%c0_347, %c0_348, %c0_349], %444 {strides = array<i32>} : memref<1x16x16xf32, #tpu.memory_space<vmem>>, vector<1x16x16xf32>,
    %445 = vector.extract_strided_slice %441 {offsets = [0, 0], sizes = [16, 11], strides = [1, 1]} : vector<16x16xf32> to vector<16x11xf32>
    %446 = vector.extract_strided_slice %441 {offsets = [0, 1], sizes = [16, 11], strides = [1, 1]} : vector<16x16xf32> to vector<16x11xf32>
    %447 = arith.maximumf %445, %446 : vector<16x11xf32>
    %448 = vector.extract_strided_slice %441 {offsets = [0, 4], sizes = [16, 11], strides = [1, 1]} : vector<16x16xf32> to vector<16x11xf32>
    %449 = vector.extract_strided_slice %441 {offsets = [0, 5], sizes = [16, 11], strides = [1, 1]} : vector<16x16xf32> to vector<16x11xf32>
    %450 = arith.maximumf %448, %449 : vector<16x11xf32>
    %451 = arith.maximumf %447, %450 : vector<16x11xf32>
    %452 = arith.truncf %451 : vector<16x11xf32> to vector<16x11xbf16>
    %c0_350 = arith.constant 0 : index
    %c0_351 = arith.constant 0 : index
    %453 = vector.load %arg16[%c0_350, %c0_351] : memref<11x4xbf16, #tpu.memory_space<vmem>>, vector<11x4xbf16>
    %cst_352 = arith.constant dense<0.000000e+00> : vector<16x4xf32>
    %454 = tpu.matmul %452, %453, %cst_352 {dimension_numbers = #tpu.dot_dimension_numbers<[1], [0], [0], [1], [0, 0, 1, 1], [], []>} : vector<16x11xbf16>, vector<11x4xbf16>, vector<16x4xf32> -> vector<16x4xf32>
    %cst_353 = arith.constant 0.000000e+00 : bf16
    %455 = vector.broadcast %cst_353 : bf16 to vector<16x3xbf16>
    %c0_354 = arith.constant 0 : index
    %c125_355 = arith.constant 125 : index
    %456 = vector.load %arg26[%c0_354, %c125_355] : memref<16x512xbf16, #tpu.memory_space<vmem>>, vector<16x3xbf16>
    tpu.vector_store %arg26[%c0_354, %c125_355], %455 {strides = array<i32>} : memref<16x512xbf16, #tpu.memory_space<vmem>>, vector<16x3xbf16>,
    %c0_356 = arith.constant 0 : index
    %c132_357 = arith.constant 132 : index
    %457 = vector.load %arg26[%c0_356, %c132_357] : memref<16x512xbf16, #tpu.memory_space<vmem>>, vector<16x3xbf16>
    tpu.vector_store %arg26[%c0_356, %c132_357], %455 {strides = array<i32>} : memref<16x512xbf16, #tpu.memory_space<vmem>>, vector<16x3xbf16>,
    %458 = arith.truncf %454 : vector<16x4xf32> to vector<16x4xbf16>
    %c0_358 = arith.constant 0 : index
    %c128_359 = arith.constant 128 : index
    %459 = vector.load %arg26[%c0_358, %c128_359] : memref<16x512xbf16, #tpu.memory_space<vmem>>, vector<16x4xbf16>
    tpu.vector_store %arg26[%c0_358, %c128_359], %458 {strides = array<i32>} : memref<16x512xbf16, #tpu.memory_space<vmem>>, vector<16x4xbf16>,
    %460 = tpu.iota {dimensions = array<i32: 1>} : vector<1x4xi32>
    %c2_i32 = arith.constant 2 : i32
    %c0_i32_360 = arith.constant 0 : i32
    %461 = arith.cmpi eq, %c2_i32, %c0_i32_360 : i32
    %c1_i32_361 = arith.constant 1 : i32
    %462 = arith.select %461, %c1_i32_361, %c2_i32 : i32
    %463 = vector.broadcast %462 : i32 to vector<1x4xi32>
    %464 = arith.remsi %460, %463 : vector<1x4xi32>
    %c0_i32_362 = arith.constant 0 : i32
    %465 = vector.broadcast %c0_i32_362 : i32 to vector<1x4xi32>
    %466 = arith.cmpi ne, %464, %465 : vector<1x4xi32>
    %c0_i32_363 = arith.constant 0 : i32
    %467 = vector.broadcast %c0_i32_363 : i32 to vector<1x4xi32>
    %468 = arith.cmpi slt, %464, %467 : vector<1x4xi32>
    %c0_i32_364 = arith.constant 0 : i32
    %469 = arith.cmpi slt, %462, %c0_i32_364 : i32
    %470 = vector.broadcast %469 : i1 to vector<1x4xi1>
    %471 = vector.broadcast %470 : vector<1x4xi1> to vector<1x4xi1>
    %472 = arith.xori %468, %471 : vector<1x4xi1>
    %473 = arith.andi %472, %466 : vector<1x4xi1>
    %474 = vector.broadcast %462 : i32 to vector<1x4xi32>
    %475 = arith.addi %464, %474 : vector<1x4xi32>
    %476 = arith.select %473, %475, %464 : vector<1x4xi1>, vector<1x4xi32>
    %c0_i32_365 = arith.constant 0 : i32
    %477 = vector.broadcast %c0_i32_365 : i32 to vector<1x4xi32>
    %478 = arith.cmpi ne, %476, %477 : vector<1x4xi32>
    %c1_i32_366 = arith.constant 1 : i32
    %479 = vector.broadcast %c1_i32_366 : i32 to vector<1x4xi32>
    %480 = arith.cmpi ne, %476, %479 : vector<1x4xi32>
    %c0_367 = arith.constant 0 : index
    %c125_368 = arith.constant 125 : index
    %481 = vector.load %arg26[%c0_367, %c125_368] : memref<16x512xbf16, #tpu.memory_space<vmem>>, vector<16x4xbf16>
    %cst_369 = arith.constant 0.000000e+00 : bf16
    %482 = vector.broadcast %cst_369 : bf16 to vector<16x4xbf16>
    %483 = vector.shape_cast %478 : vector<1x4xi1> to vector<1x4xi1>
    %484 = vector.broadcast %483 : vector<1x4xi1> to vector<16x4xi1>
    %485 = arith.select %484, %481, %482 : vector<16x4xi1>, vector<16x4xbf16>
    %c0_370 = arith.constant 0 : index
    %c0_371 = arith.constant 0 : index
    %486 = vector.load %arg28[%c0_370, %c0_371] : memref<144x256xbf16, #tpu.memory_space<vmem>>, vector<16x4xbf16>
    tpu.vector_store %arg28[%c0_370, %c0_371], %485 {strides = array<i32>} : memref<144x256xbf16, #tpu.memory_space<vmem>>, vector<16x4xbf16>,
    %c0_372 = arith.constant 0 : index
    %c126 = arith.constant 126 : index
    %487 = vector.load %arg26[%c0_372, %c126] : memref<16x512xbf16, #tpu.memory_space<vmem>>, vector<16x4xbf16>
    %c16_373 = arith.constant 16 : index
    %c0_374 = arith.constant 0 : index
    %488 = vector.load %arg28[%c16_373, %c0_374] : memref<144x256xbf16, #tpu.memory_space<vmem>>, vector<16x4xbf16>
    tpu.vector_store %arg28[%c16_373, %c0_374], %487 {strides = array<i32>} : memref<144x256xbf16, #tpu.memory_space<vmem>>, vector<16x4xbf16>,
    %c0_375 = arith.constant 0 : index
    %c127_376 = arith.constant 127 : index
    %489 = vector.load %arg26[%c0_375, %c127_376] : memref<16x512xbf16, #tpu.memory_space<vmem>>, vector<16x4xbf16>
    %cst_377 = arith.constant 0.000000e+00 : bf16
    %490 = vector.broadcast %cst_377 : bf16 to vector<16x4xbf16>
    %491 = vector.shape_cast %480 : vector<1x4xi1> to vector<1x4xi1>
    %492 = vector.broadcast %491 : vector<1x4xi1> to vector<16x4xi1>
    %493 = arith.select %492, %489, %490 : vector<16x4xi1>, vector<16x4xbf16>
    %c32_378 = arith.constant 32 : index
    %c0_379 = arith.constant 0 : index
    %494 = vector.load %arg28[%c32_378, %c0_379] : memref<144x256xbf16, #tpu.memory_space<vmem>>, vector<16x4xbf16>
    tpu.vector_store %arg28[%c32_378, %c0_379], %493 {strides = array<i32>} : memref<144x256xbf16, #tpu.memory_space<vmem>>, vector<16x4xbf16>,
    %c0_380 = arith.constant 0 : index
    %c127_381 = arith.constant 127 : index
    %495 = vector.load %arg26[%c0_380, %c127_381] : memref<16x512xbf16, #tpu.memory_space<vmem>>, vector<16x4xbf16>
    %cst_382 = arith.constant 0.000000e+00 : bf16
    %496 = vector.broadcast %cst_382 : bf16 to vector<16x4xbf16>
    %497 = vector.shape_cast %478 : vector<1x4xi1> to vector<1x4xi1>
    %498 = vector.broadcast %497 : vector<1x4xi1> to vector<16x4xi1>
    %499 = arith.select %498, %495, %496 : vector<16x4xi1>, vector<16x4xbf16>
    %c48_383 = arith.constant 48 : index
    %c0_384 = arith.constant 0 : index
    %500 = vector.load %arg28[%c48_383, %c0_384] : memref<144x256xbf16, #tpu.memory_space<vmem>>, vector<16x4xbf16>
    tpu.vector_store %arg28[%c48_383, %c0_384], %499 {strides = array<i32>} : memref<144x256xbf16, #tpu.memory_space<vmem>>, vector<16x4xbf16>,
    %c0_385 = arith.constant 0 : index
    %c128_386 = arith.constant 128 : index
    %501 = vector.load %arg26[%c0_385, %c128_386] : memref<16x512xbf16, #tpu.memory_space<vmem>>, vector<16x4xbf16>
    %c64_387 = arith.constant 64 : index
    %c0_388 = arith.constant 0 : index
    %502 = vector.load %arg28[%c64_387, %c0_388] : memref<144x256xbf16, #tpu.memory_space<vmem>>, vector<16x4xbf16>
    tpu.vector_store %arg28[%c64_387, %c0_388], %501 {strides = array<i32>} : memref<144x256xbf16, #tpu.memory_space<vmem>>, vector<16x4xbf16>,
    %c0_389 = arith.constant 0 : index
    %c129_390 = arith.constant 129 : index
    %503 = vector.load %arg26[%c0_389, %c129_390] : memref<16x512xbf16, #tpu.memory_space<vmem>>, vector<16x4xbf16>
    %cst_391 = arith.constant 0.000000e+00 : bf16
    %504 = vector.broadcast %cst_391 : bf16 to vector<16x4xbf16>
    %505 = vector.shape_cast %480 : vector<1x4xi1> to vector<1x4xi1>
    %506 = vector.broadcast %505 : vector<1x4xi1> to vector<16x4xi1>
    %507 = arith.select %506, %503, %504 : vector<16x4xi1>, vector<16x4xbf16>
    %c80_392 = arith.constant 80 : index
    %c0_393 = arith.constant 0 : index
    %508 = vector.load %arg28[%c80_392, %c0_393] : memref<144x256xbf16, #tpu.memory_space<vmem>>, vector<16x4xbf16>
    tpu.vector_store %arg28[%c80_392, %c0_393], %507 {strides = array<i32>} : memref<144x256xbf16, #tpu.memory_space<vmem>>, vector<16x4xbf16>,
    %c0_394 = arith.constant 0 : index
    %c129_395 = arith.constant 129 : index
    %509 = vector.load %arg26[%c0_394, %c129_395] : memref<16x512xbf16, #tpu.memory_space<vmem>>, vector<16x4xbf16>
    %cst_396 = arith.constant 0.000000e+00 : bf16
    %510 = vector.broadcast %cst_396 : bf16 to vector<16x4xbf16>
    %511 = vector.shape_cast %478 : vector<1x4xi1> to vector<1x4xi1>
    %512 = vector.broadcast %511 : vector<1x4xi1> to vector<16x4xi1>
    %513 = arith.select %512, %509, %510 : vector<16x4xi1>, vector<16x4xbf16>
    %c96_397 = arith.constant 96 : index
    %c0_398 = arith.constant 0 : index
    %514 = vector.load %arg28[%c96_397, %c0_398] : memref<144x256xbf16, #tpu.memory_space<vmem>>, vector<16x4xbf16>
    tpu.vector_store %arg28[%c96_397, %c0_398], %513 {strides = array<i32>} : memref<144x256xbf16, #tpu.memory_space<vmem>>, vector<16x4xbf16>,
    %c0_399 = arith.constant 0 : index
    %c130 = arith.constant 130 : index
    %515 = vector.load %arg26[%c0_399, %c130] : memref<16x512xbf16, #tpu.memory_space<vmem>>, vector<16x4xbf16>
    %c112_400 = arith.constant 112 : index
    %c0_401 = arith.constant 0 : index
    %516 = vector.load %arg28[%c112_400, %c0_401] : memref<144x256xbf16, #tpu.memory_space<vmem>>, vector<16x4xbf16>
    tpu.vector_store %arg28[%c112_400, %c0_401], %515 {strides = array<i32>} : memref<144x256xbf16, #tpu.memory_space<vmem>>, vector<16x4xbf16>,
    %c0_402 = arith.constant 0 : index
    %c131_403 = arith.constant 131 : index
    %517 = vector.load %arg26[%c0_402, %c131_403] : memref<16x512xbf16, #tpu.memory_space<vmem>>, vector<16x4xbf16>
    %cst_404 = arith.constant 0.000000e+00 : bf16
    %518 = vector.broadcast %cst_404 : bf16 to vector<16x4xbf16>
    %519 = vector.shape_cast %480 : vector<1x4xi1> to vector<1x4xi1>
    %520 = vector.broadcast %519 : vector<1x4xi1> to vector<16x4xi1>
    %521 = arith.select %520, %517, %518 : vector<16x4xi1>, vector<16x4xbf16>
    %c128_405 = arith.constant 128 : index
    %c0_406 = arith.constant 0 : index
    %522 = vector.load %arg28[%c128_405, %c0_406] : memref<144x256xbf16, #tpu.memory_space<vmem>>, vector<16x4xbf16>
    tpu.vector_store %arg28[%c128_405, %c0_406], %521 {strides = array<i32>} : memref<144x256xbf16, #tpu.memory_space<vmem>>, vector<16x4xbf16>,
    %c0_407 = arith.constant 0 : index
    %c0_408 = arith.constant 0 : index
    %523 = vector.load %arg17[%c0_407, %c0_408] : memref<16x144xbf16, #tpu.memory_space<vmem>>, vector<16x144xbf16>
    %c0_409 = arith.constant 0 : index
    %c0_410 = arith.constant 0 : index
    %524 = vector.load %arg28[%c0_409, %c0_410] : memref<144x256xbf16, #tpu.memory_space<vmem>>, vector<144x4xbf16>
    %cst_411 = arith.constant dense<0.000000e+00> : vector<16x4xf32>
    %525 = tpu.matmul %523, %524, %cst_411 {dimension_numbers = #tpu.dot_dimension_numbers<[1], [0], [0], [1], [0, 0, 1, 1], [], []>} : vector<16x144xbf16>, vector<144x4xbf16>, vector<16x4xf32> -> vector<16x4xf32>
    %c0_412 = arith.constant 0 : index
    %c0_413 = arith.constant 0 : index
    %526 = vector.load %arg18[%c0_412, %c0_413] : memref<16x1xf32, #tpu.memory_space<vmem>>, vector<16x1xf32>
    %527 = vector.broadcast %526 : vector<16x1xf32> to vector<16x4xf32>
    %528 = arith.addf %525, %527 : vector<16x4xf32>
    %cst_414 = arith.constant 0.000000e+00 : f32
    %529 = vector.broadcast %cst_414 : f32 to vector<16x4xf32>
    %530 = arith.cmpf ogt, %528, %529 : vector<16x4xf32>
    %cst_415 = arith.constant 0.00999999977 : f32
    %531 = vector.broadcast %cst_415 : f32 to vector<16x4xf32>
    %532 = arith.mulf %531, %528 : vector<16x4xf32>
    %533 = arith.select %530, %528, %532 : vector<16x4xi1>, vector<16x4xf32>
    %cst_416 = arith.constant 0.000000e+00 : bf16
    %534 = vector.broadcast %cst_416 : bf16 to vector<16x3xbf16>
    %c0_417 = arith.constant 0 : index
    %c125_418 = arith.constant 125 : index
    %535 = vector.load %arg27[%c0_417, %c125_418] : memref<16x512xbf16, #tpu.memory_space<vmem>>, vector<16x3xbf16>
    tpu.vector_store %arg27[%c0_417, %c125_418], %534 {strides = array<i32>} : memref<16x512xbf16, #tpu.memory_space<vmem>>, vector<16x3xbf16>,
    %c0_419 = arith.constant 0 : index
    %c132_420 = arith.constant 132 : index
    %536 = vector.load %arg27[%c0_419, %c132_420] : memref<16x512xbf16, #tpu.memory_space<vmem>>, vector<16x3xbf16>
    tpu.vector_store %arg27[%c0_419, %c132_420], %534 {strides = array<i32>} : memref<16x512xbf16, #tpu.memory_space<vmem>>, vector<16x3xbf16>,
    %537 = arith.truncf %533 : vector<16x4xf32> to vector<16x4xbf16>
    %c0_421 = arith.constant 0 : index
    %c128_422 = arith.constant 128 : index
    %538 = vector.load %arg27[%c0_421, %c128_422] : memref<16x512xbf16, #tpu.memory_space<vmem>>, vector<16x4xbf16>
    tpu.vector_store %arg27[%c0_421, %c128_422], %537 {strides = array<i32>} : memref<16x512xbf16, #tpu.memory_space<vmem>>, vector<16x4xbf16>,
    %c0_423 = arith.constant 0 : index
    %c125_424 = arith.constant 125 : index
    %539 = vector.load %arg27[%c0_423, %c125_424] : memref<16x512xbf16, #tpu.memory_space<vmem>>, vector<16x4xbf16>
    %cst_425 = arith.constant 0.000000e+00 : bf16
    %540 = vector.broadcast %cst_425 : bf16 to vector<16x4xbf16>
    %541 = vector.shape_cast %478 : vector<1x4xi1> to vector<1x4xi1>
    %542 = vector.broadcast %541 : vector<1x4xi1> to vector<16x4xi1>
    %543 = arith.select %542, %539, %540 : vector<16x4xi1>, vector<16x4xbf16>
    %c0_426 = arith.constant 0 : index
    %c0_427 = arith.constant 0 : index
    %544 = vector.load %arg28[%c0_426, %c0_427] : memref<144x256xbf16, #tpu.memory_space<vmem>>, vector<16x4xbf16>
    tpu.vector_store %arg28[%c0_426, %c0_427], %543 {strides = array<i32>} : memref<144x256xbf16, #tpu.memory_space<vmem>>, vector<16x4xbf16>,
    %c0_428 = arith.constant 0 : index
    %c126_429 = arith.constant 126 : index
    %545 = vector.load %arg27[%c0_428, %c126_429] : memref<16x512xbf16, #tpu.memory_space<vmem>>, vector<16x4xbf16>
    %c16_430 = arith.constant 16 : index
    %c0_431 = arith.constant 0 : index
    %546 = vector.load %arg28[%c16_430, %c0_431] : memref<144x256xbf16, #tpu.memory_space<vmem>>, vector<16x4xbf16>
    tpu.vector_store %arg28[%c16_430, %c0_431], %545 {strides = array<i32>} : memref<144x256xbf16, #tpu.memory_space<vmem>>, vector<16x4xbf16>,
    %c0_432 = arith.constant 0 : index
    %c127_433 = arith.constant 127 : index
    %547 = vector.load %arg27[%c0_432, %c127_433] : memref<16x512xbf16, #tpu.memory_space<vmem>>, vector<16x4xbf16>
    %cst_434 = arith.constant 0.000000e+00 : bf16
    %548 = vector.broadcast %cst_434 : bf16 to vector<16x4xbf16>
    %549 = vector.shape_cast %480 : vector<1x4xi1> to vector<1x4xi1>
    %550 = vector.broadcast %549 : vector<1x4xi1> to vector<16x4xi1>
    %551 = arith.select %550, %547, %548 : vector<16x4xi1>, vector<16x4xbf16>
    %c32_435 = arith.constant 32 : index
    %c0_436 = arith.constant 0 : index
    %552 = vector.load %arg28[%c32_435, %c0_436] : memref<144x256xbf16, #tpu.memory_space<vmem>>, vector<16x4xbf16>
    tpu.vector_store %arg28[%c32_435, %c0_436], %551 {strides = array<i32>} : memref<144x256xbf16, #tpu.memory_space<vmem>>, vector<16x4xbf16>,
    %c0_437 = arith.constant 0 : index
    %c127_438 = arith.constant 127 : index
    %553 = vector.load %arg27[%c0_437, %c127_438] : memref<16x512xbf16, #tpu.memory_space<vmem>>, vector<16x4xbf16>
    %cst_439 = arith.constant 0.000000e+00 : bf16
    %554 = vector.broadcast %cst_439 : bf16 to vector<16x4xbf16>
    %555 = vector.shape_cast %478 : vector<1x4xi1> to vector<1x4xi1>
    %556 = vector.broadcast %555 : vector<1x4xi1> to vector<16x4xi1>
    %557 = arith.select %556, %553, %554 : vector<16x4xi1>, vector<16x4xbf16>
    %c48_440 = arith.constant 48 : index
    %c0_441 = arith.constant 0 : index
    %558 = vector.load %arg28[%c48_440, %c0_441] : memref<144x256xbf16, #tpu.memory_space<vmem>>, vector<16x4xbf16>
    tpu.vector_store %arg28[%c48_440, %c0_441], %557 {strides = array<i32>} : memref<144x256xbf16, #tpu.memory_space<vmem>>, vector<16x4xbf16>,
    %c0_442 = arith.constant 0 : index
    %c128_443 = arith.constant 128 : index
    %559 = vector.load %arg27[%c0_442, %c128_443] : memref<16x512xbf16, #tpu.memory_space<vmem>>, vector<16x4xbf16>
    %c64_444 = arith.constant 64 : index
    %c0_445 = arith.constant 0 : index
    %560 = vector.load %arg28[%c64_444, %c0_445] : memref<144x256xbf16, #tpu.memory_space<vmem>>, vector<16x4xbf16>
    tpu.vector_store %arg28[%c64_444, %c0_445], %559 {strides = array<i32>} : memref<144x256xbf16, #tpu.memory_space<vmem>>, vector<16x4xbf16>,
    %c0_446 = arith.constant 0 : index
    %c129_447 = arith.constant 129 : index
    %561 = vector.load %arg27[%c0_446, %c129_447] : memref<16x512xbf16, #tpu.memory_space<vmem>>, vector<16x4xbf16>
    %cst_448 = arith.constant 0.000000e+00 : bf16
    %562 = vector.broadcast %cst_448 : bf16 to vector<16x4xbf16>
    %563 = vector.shape_cast %480 : vector<1x4xi1> to vector<1x4xi1>
    %564 = vector.broadcast %563 : vector<1x4xi1> to vector<16x4xi1>
    %565 = arith.select %564, %561, %562 : vector<16x4xi1>, vector<16x4xbf16>
    %c80_449 = arith.constant 80 : index
    %c0_450 = arith.constant 0 : index
    %566 = vector.load %arg28[%c80_449, %c0_450] : memref<144x256xbf16, #tpu.memory_space<vmem>>, vector<16x4xbf16>
    tpu.vector_store %arg28[%c80_449, %c0_450], %565 {strides = array<i32>} : memref<144x256xbf16, #tpu.memory_space<vmem>>, vector<16x4xbf16>,
    %c0_451 = arith.constant 0 : index
    %c129_452 = arith.constant 129 : index
    %567 = vector.load %arg27[%c0_451, %c129_452] : memref<16x512xbf16, #tpu.memory_space<vmem>>, vector<16x4xbf16>
    %cst_453 = arith.constant 0.000000e+00 : bf16
    %568 = vector.broadcast %cst_453 : bf16 to vector<16x4xbf16>
    %569 = vector.shape_cast %478 : vector<1x4xi1> to vector<1x4xi1>
    %570 = vector.broadcast %569 : vector<1x4xi1> to vector<16x4xi1>
    %571 = arith.select %570, %567, %568 : vector<16x4xi1>, vector<16x4xbf16>
    %c96_454 = arith.constant 96 : index
    %c0_455 = arith.constant 0 : index
    %572 = vector.load %arg28[%c96_454, %c0_455] : memref<144x256xbf16, #tpu.memory_space<vmem>>, vector<16x4xbf16>
    tpu.vector_store %arg28[%c96_454, %c0_455], %571 {strides = array<i32>} : memref<144x256xbf16, #tpu.memory_space<vmem>>, vector<16x4xbf16>,
    %c0_456 = arith.constant 0 : index
    %c130_457 = arith.constant 130 : index
    %573 = vector.load %arg27[%c0_456, %c130_457] : memref<16x512xbf16, #tpu.memory_space<vmem>>, vector<16x4xbf16>
    %c112_458 = arith.constant 112 : index
    %c0_459 = arith.constant 0 : index
    %574 = vector.load %arg28[%c112_458, %c0_459] : memref<144x256xbf16, #tpu.memory_space<vmem>>, vector<16x4xbf16>
    tpu.vector_store %arg28[%c112_458, %c0_459], %573 {strides = array<i32>} : memref<144x256xbf16, #tpu.memory_space<vmem>>, vector<16x4xbf16>,
    %c0_460 = arith.constant 0 : index
    %c131_461 = arith.constant 131 : index
    %575 = vector.load %arg27[%c0_460, %c131_461] : memref<16x512xbf16, #tpu.memory_space<vmem>>, vector<16x4xbf16>
    %cst_462 = arith.constant 0.000000e+00 : bf16
    %576 = vector.broadcast %cst_462 : bf16 to vector<16x4xbf16>
    %577 = vector.shape_cast %480 : vector<1x4xi1> to vector<1x4xi1>
    %578 = vector.broadcast %577 : vector<1x4xi1> to vector<16x4xi1>
    %579 = arith.select %578, %575, %576 : vector<16x4xi1>, vector<16x4xbf16>
    %c128_463 = arith.constant 128 : index
    %c0_464 = arith.constant 0 : index
    %580 = vector.load %arg28[%c128_463, %c0_464] : memref<144x256xbf16, #tpu.memory_space<vmem>>, vector<16x4xbf16>
    tpu.vector_store %arg28[%c128_463, %c0_464], %579 {strides = array<i32>} : memref<144x256xbf16, #tpu.memory_space<vmem>>, vector<16x4xbf16>,
    %c0_465 = arith.constant 0 : index
    %c0_466 = arith.constant 0 : index
    %581 = vector.load %arg19[%c0_465, %c0_466] : memref<16x144xbf16, #tpu.memory_space<vmem>>, vector<16x144xbf16>
    %c0_467 = arith.constant 0 : index
    %c0_468 = arith.constant 0 : index
    %582 = vector.load %arg28[%c0_467, %c0_468] : memref<144x256xbf16, #tpu.memory_space<vmem>>, vector<144x4xbf16>
    %cst_469 = arith.constant dense<0.000000e+00> : vector<16x4xf32>
    %583 = tpu.matmul %581, %582, %cst_469 {dimension_numbers = #tpu.dot_dimension_numbers<[1], [0], [0], [1], [0, 0, 1, 1], [], []>} : vector<16x144xbf16>, vector<144x4xbf16>, vector<16x4xf32> -> vector<16x4xf32>
    %c0_470 = arith.constant 0 : index
    %c0_471 = arith.constant 0 : index
    %584 = vector.load %arg20[%c0_470, %c0_471] : memref<16x1xf32, #tpu.memory_space<vmem>>, vector<16x1xf32>
    %585 = vector.broadcast %584 : vector<16x1xf32> to vector<16x4xf32>
    %586 = arith.addf %583, %585 : vector<16x4xf32>
    %cst_472 = arith.constant 0.000000e+00 : f32
    %587 = vector.broadcast %cst_472 : f32 to vector<16x4xf32>
    %588 = arith.cmpf ogt, %586, %587 : vector<16x4xf32>
    %cst_473 = arith.constant 0.00999999977 : f32
    %589 = vector.broadcast %cst_473 : f32 to vector<16x4xf32>
    %590 = arith.mulf %589, %586 : vector<16x4xf32>
    %591 = arith.select %588, %586, %590 : vector<16x4xi1>, vector<16x4xf32>
    %c0_474 = arith.constant 0 : index
    %c0_475 = arith.constant 0 : index
    %c0_476 = arith.constant 0 : index
    %592 = vector.load %arg24[%c0_474, %c0_475, %c0_476] : memref<1x16x4xf32, #tpu.memory_space<vmem>>, vector<1x16x4xf32>
    %593 = vector.shape_cast %592 : vector<1x16x4xf32> to vector<16x4xf32>
    %594 = vector.shape_cast %591 : vector<16x4xf32> to vector<1x16x4xf32>
    tpu.vector_store %arg24[%c0_474, %c0_475, %c0_476], %594 {strides = array<i32>} : memref<1x16x4xf32, #tpu.memory_space<vmem>>, vector<1x16x4xf32>,
    %595 = vector.extract_strided_slice %591 {offsets = [0, 0], sizes = [16, 1], strides = [1, 1]} : vector<16x4xf32> to vector<16x1xf32>
    %596 = vector.extract_strided_slice %591 {offsets = [0, 1], sizes = [16, 1], strides = [1, 1]} : vector<16x4xf32> to vector<16x1xf32>
    %597 = arith.maximumf %595, %596 : vector<16x1xf32>
    %598 = vector.extract_strided_slice %591 {offsets = [0, 2], sizes = [16, 1], strides = [1, 1]} : vector<16x4xf32> to vector<16x1xf32>
    %599 = vector.extract_strided_slice %591 {offsets = [0, 3], sizes = [16, 1], strides = [1, 1]} : vector<16x4xf32> to vector<16x1xf32>
    %600 = arith.maximumf %598, %599 : vector<16x1xf32>
    %601 = arith.maximumf %597, %600 : vector<16x1xf32>
    %602 = arith.truncf %601 : vector<16x1xf32> to vector<16x1xbf16>
    %603 = arith.extf %602 : vector<16x1xbf16> to vector<16x1xf32>
    %c0_477 = arith.constant 0 : index
    %c0_478 = arith.constant 0 : index
    %c0_479 = arith.constant 0 : index
    %604 = vector.load %arg25[%c0_477, %c0_478, %c0_479] : memref<1x16x1xf32, #tpu.memory_space<vmem>>, vector<1x16x1xf32>
    %605 = vector.shape_cast %604 : vector<1x16x1xf32> to vector<16x1xf32>
    %606 = vector.shape_cast %603 : vector<16x1xf32> to vector<1x16x1xf32>
    tpu.vector_store %arg25[%c0_477, %c0_478, %c0_479], %606 {strides = array<i32>} : memref<1x16x1xf32, #tpu.memory_space<vmem>>, vector<1x16x1xf32>,
    return
  }
  func.func @transform_0(%arg0: i32) -> (i32, i32, i32) {
    %c0_i32 = arith.constant 0 : i32
    %c0_i32_0 = arith.constant 0 : i32
    %c0_i32_1 = arith.constant 0 : i32
    return %arg0, %c0_i32, %c0_i32_0 : i32, i32, i32
  }
  func.func @transform_1(%arg0: i32) -> (i32, i32) {
    %c0_i32 = arith.constant 0 : i32
    %c0_i32_0 = arith.constant 0 : i32
    %c0_i32_1 = arith.constant 0 : i32
    return %c0_i32, %c0_i32_0 : i32, i32
  }
  func.func @transform_2(%arg0: i32) -> (i32, i32) {
    %c0_i32 = arith.constant 0 : i32
    %c0_i32_0 = arith.constant 0 : i32
    %c0_i32_1 = arith.constant 0 : i32
    return %c0_i32, %c0_i32_0 : i32, i32
  }
  func.func @transform_3(%arg0: i32) -> (i32, i32) {
    %c0_i32 = arith.constant 0 : i32
    %c0_i32_0 = arith.constant 0 : i32
    %c0_i32_1 = arith.constant 0 : i32
    return %c0_i32, %c0_i32_0 : i32, i32
  }
  func.func @transform_4(%arg0: i32) -> (i32, i32) {
    %c0_i32 = arith.constant 0 : i32
    %c0_i32_0 = arith.constant 0 : i32
    %c0_i32_1 = arith.constant 0 : i32
    return %c0_i32, %c0_i32_0 : i32, i32
  }
  func.func @transform_5(%arg0: i32) -> (i32, i32) {
    %c0_i32 = arith.constant 0 : i32
    %c0_i32_0 = arith.constant 0 : i32
    %c0_i32_1 = arith.constant 0 : i32
    return %c0_i32, %c0_i32_0 : i32, i32
  }
  func.func @transform_6(%arg0: i32) -> (i32, i32) {
    %c0_i32 = arith.constant 0 : i32
    %c0_i32_0 = arith.constant 0 : i32
    %c0_i32_1 = arith.constant 0 : i32
    return %c0_i32, %c0_i32_0 : i32, i32
  }
  func.func @transform_7(%arg0: i32) -> (i32, i32) {
    %c0_i32 = arith.constant 0 : i32
    %c0_i32_0 = arith.constant 0 : i32
    %c0_i32_1 = arith.constant 0 : i32
    return %c0_i32, %c0_i32_0 : i32, i32
  }
  func.func @transform_8(%arg0: i32) -> (i32, i32) {
    %c0_i32 = arith.constant 0 : i32
    %c0_i32_0 = arith.constant 0 : i32
    %c0_i32_1 = arith.constant 0 : i32
    return %c0_i32, %c0_i32_0 : i32, i32
  }
  func.func @transform_9(%arg0: i32) -> (i32, i32) {
    %c0_i32 = arith.constant 0 : i32
    %c0_i32_0 = arith.constant 0 : i32
    %c0_i32_1 = arith.constant 0 : i32
    return %c0_i32, %c0_i32_0 : i32, i32
  }
  func.func @transform_10(%arg0: i32) -> (i32, i32) {
    %c0_i32 = arith.constant 0 : i32
    %c0_i32_0 = arith.constant 0 : i32
    %c0_i32_1 = arith.constant 0 : i32
    return %c0_i32, %c0_i32_0 : i32, i32
  }
  func.func @transform_11(%arg0: i32) -> (i32, i32) {
    %c0_i32 = arith.constant 0 : i32
    %c0_i32_0 = arith.constant 0 : i32
    %c0_i32_1 = arith.constant 0 : i32
    return %c0_i32, %c0_i32_0 : i32, i32
  }
  func.func @transform_12(%arg0: i32) -> (i32, i32) {
    %c0_i32 = arith.constant 0 : i32
    %c0_i32_0 = arith.constant 0 : i32
    %c0_i32_1 = arith.constant 0 : i32
    return %c0_i32, %c0_i32_0 : i32, i32
  }
  func.func @transform_13(%arg0: i32) -> (i32, i32) {
    %c0_i32 = arith.constant 0 : i32
    %c0_i32_0 = arith.constant 0 : i32
    %c0_i32_1 = arith.constant 0 : i32
    return %c0_i32, %c0_i32_0 : i32, i32
  }
  func.func @transform_14(%arg0: i32) -> (i32, i32) {
    %c0_i32 = arith.constant 0 : i32
    %c0_i32_0 = arith.constant 0 : i32
    %c0_i32_1 = arith.constant 0 : i32
    return %c0_i32, %c0_i32_0 : i32, i32
  }
  func.func @transform_15(%arg0: i32) -> (i32, i32) {
    %c0_i32 = arith.constant 0 : i32
    %c0_i32_0 = arith.constant 0 : i32
    %c0_i32_1 = arith.constant 0 : i32
    return %c0_i32, %c0_i32_0 : i32, i32
  }
  func.func @transform_16(%arg0: i32) -> (i32, i32) {
    %c0_i32 = arith.constant 0 : i32
    %c0_i32_0 = arith.constant 0 : i32
    %c0_i32_1 = arith.constant 0 : i32
    return %c0_i32, %c0_i32_0 : i32, i32
  }
  func.func @transform_17(%arg0: i32) -> (i32, i32) {
    %c0_i32 = arith.constant 0 : i32
    %c0_i32_0 = arith.constant 0 : i32
    %c0_i32_1 = arith.constant 0 : i32
    return %c0_i32, %c0_i32_0 : i32, i32
  }
  func.func @transform_18(%arg0: i32) -> (i32, i32) {
    %c0_i32 = arith.constant 0 : i32
    %c0_i32_0 = arith.constant 0 : i32
    %c0_i32_1 = arith.constant 0 : i32
    return %c0_i32, %c0_i32_0 : i32, i32
  }
  func.func @transform_19(%arg0: i32) -> (i32, i32) {
    %c0_i32 = arith.constant 0 : i32
    %c0_i32_0 = arith.constant 0 : i32
    %c0_i32_1 = arith.constant 0 : i32
    return %c0_i32, %c0_i32_0 : i32, i32
  }
  func.func @transform_20(%arg0: i32) -> (i32, i32, i32) {
    %c0_i32 = arith.constant 0 : i32
    %c0_i32_0 = arith.constant 0 : i32
    %c0_i32_1 = arith.constant 0 : i32
    return %arg0, %c0_i32, %c0_i32_0 : i32, i32, i32
  }
  func.func @transform_21(%arg0: i32) -> (i32, i32, i32) {
    %c0_i32 = arith.constant 0 : i32
    %c0_i32_0 = arith.constant 0 : i32
    %c0_i32_1 = arith.constant 0 : i32
    return %arg0, %c0_i32, %c0_i32_0 : i32, i32, i32
  }
  func.func @transform_22(%arg0: i32) -> (i32, i32, i32) {
    %c0_i32 = arith.constant 0 : i32
    %c0_i32_0 = arith.constant 0 : i32
    %c0_i32_1 = arith.constant 0 : i32
    return %arg0, %c0_i32, %c0_i32_0 : i32, i32, i32
  }
  func.func @transform_23(%arg0: i32) -> (i32, i32, i32) {
    %c0_i32 = arith.constant 0 : i32
    %c0_i32_0 = arith.constant 0 : i32
    %c0_i32_1 = arith.constant 0 : i32
    return %arg0, %c0_i32, %c0_i32_0 : i32, i32, i32
  }
  func.func @transform_24(%arg0: i32) -> (i32, i32, i32) {
    %c0_i32 = arith.constant 0 : i32
    %c0_i32_0 = arith.constant 0 : i32
    %c0_i32_1 = arith.constant 0 : i32
    return %arg0, %c0_i32, %c0_i32_0 : i32, i32, i32
  }
}

</mosaic_0001>

<bundles_post_ra>
// kernel: _lambda_.1
= control target key start
LH: loop header
LB: loop body
LE: loop exit
PB: predicated region body
PF: predicated region fallthrough
CT: control target
= control target key end

     0   :  { %s6116_s0 = inlined_call_operand.vmem [shape: bf16[2,16,512], index: 0, kind: input, shape index: {}]   ;;  %s6117_s1 = inlined_call_operand.vmem [shape: bf16[16,144], index: 1, kind: input, shape index: {}]   ;;  %s6118_s2 = inlined_call_operand.vmem [shape: f32[16,1], index: 2, kind: input, shape index: {}]   ;;  %s6119_s3 = inlined_call_operand.vmem [shape: bf16[16,144], index: 3, kind: input, shape index: {}]   ;;  %s6120_s4 = inlined_call_operand.vmem [shape: f32[16,1], index: 4, kind: input, shape index: {}]   ;;  %s6121_s5 = inlined_call_operand.vmem [shape: bf16[239,64], index: 5, kind: input, shape index: {}]   ;;  %s6122_s6 = inlined_call_operand.vmem [shape: bf16[16,144], index: 6, kind: input, shape index: {}]   ;;  %s6123_s7 = inlined_call_operand.vmem [shape: f32[16,1], index: 7, kind: input, shape index: {}]   ;;  %s6124_s8 = inlined_call_operand.vmem [shape: bf16[16,144], index: 8, kind: input, shape index: {}]   ;;  %s6125_s9 = inlined_call_operand.vmem [shape: f32[16,1], index: 9, kind: input, shape index: {}]   ;;  %s6126_s10 = inlined_call_operand.vmem [shape: bf16[55,16], index: 10, kind: input, shape index: {}]   ;;  %s6127_s11 = inlined_call_operand.vmem [shape: bf16[16,144], index: 11, kind: input, shape index: {}]   ;;  %s6128_s12 = inlined_call_operand.vmem [shape: f32[16,1], index: 12, kind: input, shape index: {}]   ;;  %s6129_s13 = inlined_call_operand.vmem [shape: bf16[16,144], index: 13, kind: input, shape index: {}]   ;;  %s6130_s14 = inlined_call_operand.vmem [shape: f32[16,1], index: 14, kind: input, shape index: {}]   ;;  %s6131_s15 = inlined_call_operand.vmem [shape: bf16[11,4], index: 15, kind: input, shape index: {}]   ;;  %s6132_s16 = inlined_call_operand.vmem [shape: bf16[16,144], index: 16, kind: input, shape index: {}]   ;;  %s6133_s17 = inlined_call_operand.vmem [shape: f32[16,1], index: 17, kind: input, shape index: {}]   ;;  %s6134_s18 = inlined_call_operand.vmem [shape: bf16[16,144], index: 18, kind: input, shape index: {}]   ;;  %s6135_s19 = inlined_call_operand.vmem [shape: f32[16,1], index: 19, kind: input, shape index: {}]   ;;  %s6136_s20 = inlined_call_operand.vmem [shape: f32[2,8,256], index: 20, kind: output, shape index: {0}]   ;;  %s6137_s21 = inlined_call_operand.vmem [shape: f32[2,16,64], index: 21, kind: output, shape index: {1}]   ;;  %s6138_s22 = inlined_call_operand.vmem [shape: f32[2,16,16], index: 22, kind: output, shape index: {2}]   ;;  %s6139_s23 = inlined_call_operand.vmem [shape: f32[2,16,4], index: 23, kind: output, shape index: {3}]   ;;  %s6140_s24 = inlined_call_operand.vmem [shape: f32[2,16,1], index: 24, kind: output, shape index: {4}]  }
   0x1   :  { %6186 = sst [smem:[#allocation5_spill]] %s6116_s0 }
   0x2   :  { %6187 = sst [smem:[#allocation6_spill]] %s6117_s1 }
   0x3   :  { %6188 = sst [smem:[#allocation7_spill]] %s6118_s2 }
   0x4   :  { %6189 = sst [smem:[#allocation8_spill]] %s6119_s3 }
   0x5   :  { %6190 = sst [smem:[#allocation9_spill]] %s6120_s4 }
   0x6   :  { %6191 = sst [smem:[#allocation10_spill]] %s6121_s5  ;;  %s4844_s5 = smov 0  }
   0x7   :  { %6192 = sst [smem:[#allocation11_spill]] %s6122_s6 }
   0x8   :  { %6193 = sst [smem:[#allocation12_spill]] %s6123_s7 }
   0x9   :  { %6194 = sst [smem:[#allocation13_spill]] %s6124_s8 }
   0xa LB: > { %s4284_s26 = sadd.s32 4294967295, %s4691_s5   ;;  %p4288_p0 = scmp.ge.s32.totalorder %s4691_s5, 1  ;;  %s4691_s5 = sphi %s4844_s5, %s35_s5  }
   0xb   : > { %p671_p1 = scmp.lt.s32.totalorder %s4691_s5, 3 }
   0xd   : > { %p672_p2 = pnand %p4288_p0, %p671_p1 }
   0xe   : > { %p757_p3 = scmp.lt.s32.totalorder (!%p672_p2), %s4284_s26, 1  ;;  %s4694_s27 = smov (!%p672_p2), 15  }
   0xf   : > { %675 = sbr.rel (%p672_p2) target bundleno = 4708 (0x1264), region = 100  ;;  %s6160_s28 = smov (!%p672_p2), 127  }
  0x10   : > { %s6158_s2 = smov (!%p672_p2), 1   ;;  %s4697_s29 = smov (!%p672_p2), 113  }
  0x11   : > { %s6195_s30 = sld [smem:[#allocation5_spill]] (!%p672_p2)  ;;  %s4698_s25 = smov (!%p672_p2), 111  }
  0x12   : > { %s6154_s8 = smov (!%p672_p2), 17   ;;  %s4700_s4 = smov (!%p672_p2), 112  }
  0x13   : > { %s4701_s1 = smov (!%p672_p2), 16   ;;  %s6208_s7 = sld [smem:[#allocation6_spill]] (!%p672_p2) }
  0x14   : > { %v790_v0 = vlaneseq  ;;  %vm1323_vm0 = vcmask 134144   ;;  %v4693_v1 = vmov 0   ;;  %s6249_s26 = smov (!%p757_p3, %s4284_s26), 1  ;;  %vm935_vm7 = vcmask 121856   ;;  %s6216_s0 = sld [smem:[#allocation9_spill]] }
  0x15   : > { %4533 = vset.pattern.permute.xlu0 %v4693_v1  ;;  %1324 = vst.msk [vmem:[#allocation3 + $0xc] sm:$0xf] %vm1323_vm0, %v4693_v1  ;;  %1325 = vst.msk [vmem:[#allocation3 + $0x1c] sm:$0xf] %vm1323_vm0, %v4693_v1  ;;  %4534 = vset.pattern.permute.xlu1 %v4693_v1  ;;  %s4454_s6 = sshll.u32 %s6249_s26, 5  ;;  %vm975_vm10 = vcmask 7168  }
  0x16   : > { %v4856_v2 = vand.u32 127, %v790_v0  ;;  %vm6174_vm13 = vcmask 1039360   ;;  %vm6175_vm15 = vcmask 1043456   ;;  %vm6149_vm0 = vcmask 916480  }
  0x17   : > { %s4872_s3 = scalar_lea.vmem %s6195_s30, %s4454_s6  ;;  %s6213_s6 = smov 17  }
  0x18   : > { %v792_v3 = vadd.s32 128, %v4856_v2  ;;  %v797_v4 = vand.u32 15, %v4856_v2  ;;  %v1064_v8 = vld [vmem:[%s4872_s3 + $0xc] sm:$0xf]  ;;  %v4876_v9 = vld [vmem:[%s4872_s3 + $0x4] sm:$0xff]  ;;  %v4885_v11 = vld [vmem:[%s4872_s3 + $0x14] sm:$0xff] }
  0x19   : > { %v1066_v10 = vld [vmem:[%s4872_s3 + $0x1c] sm:$0xf]  ;;  %v869_v12 = vld [vmem:[%s4872_s3 + $0x8] sm:$0xf]  ;;  %v4889_v13 = vld [vmem:[%s4872_s3] sm:$0xff]  ;;  %s5309_s30 = sshll.u32 %s6249_s26, 4 }
  0x1a   : > { %v804_v5 = vand.u32 15, %v792_v3  ;;  %vm817_vm1 = vcmp.ne.s32.totalorder %v797_v4, 0  ;;  %vm819_vm2 = vcmp.ne.s32.totalorder %v797_v4, 15  ;;  %v871_v14 = vld [vmem:[%s4872_s3 + $0x18] sm:$0xf]  ;;  %v4899_v15 = vld [vmem:[%s4872_s3 + $0x10] sm:$0xff] }
  0x1b   : > { %v1026_v19 = vld [vmem:[%s4872_s3 + $0xc] sm:$0xf]  ;;  %v1028_v27 = vld [vmem:[%s4872_s3 + $0x1c] sm:$0xf]  ;;  %v944_v43 = vld [vmem:[%s4872_s3 + $0x8] sm:$0xf] }
  0x1c   : > { %vm818_vm3 = vcmp.ne.s32.totalorder %v804_v5, 0  ;;  %vm820_vm4 = vcmp.ne.s32.totalorder %v804_v5, 15  ;;  %v988_v30 = vld [vmem:[%s4872_s3 + $0xc] sm:$0xf]  ;;  %v990_v40 = vld [vmem:[%s4872_s3 + $0x1c] sm:$0xf] }
  0x1d   : > { %vm829_vm5 = vmpackc.low %vm818_vm3, %vm817_vm1  ;;  %v946_v59 = vld [vmem:[%s4872_s3 + $0x18] sm:$0xf]  ;;  %v898_v0 = vld [vmem:[%s4872_s3 + $0x8] sm:$0xf]  ;;  %s6164_s26 = smov 121  }
  0x1e   : > { %v830_v6 = vsel %vm829_vm5, 65537, %v4693_v1  ;;  %vm905_vm6 = vmpackc.low %vm820_vm4, %vm819_vm2  ;;  %vm910_vm2 = vcmask 924672   ;;  %vm6156_vm5 = vcmask 908288  }
  0x1f   : > { %1029 = vrot.lane.b32.xlu0 %v830_v6, %s4694_s27  ;;  %947 = vrot.lane.b32.xlu1 %v830_v6, %s6160_s28  ;;  %v906_v7 = vsel %vm905_vm6, 65537, %v4693_v1 }
  0x23   : > { %991 = vrot.lane.b32.xlu0 %v906_v7, %s6158_s2  ;;  %907 = vrot.lane.b32.xlu1 %v906_v7, %s4697_s29 }
  0x27   : > { %831 = vrot.lane.b32.xlu0 %v830_v6, %s4698_s25  ;;  %1096 = vrot.lane.b32.xlu1 %v906_v7, %s6154_s8 }
  0x2b   : > { %1073 = vrot.lane.b32.xlu1 %v1064_v8, %s4700_s4  ;;  %1071 = vrot.lane.b32.xlu0 %v4876_v9, %s4700_s4  ;;  %v900_v8 = vld [vmem:[%s4872_s3 + $0x18] sm:$0xf] }
  0x2f   : > { %1077 = vrot.lane.b32.xlu1 %v1066_v10, %s4700_s4  ;;  %1075 = vrot.lane.b32.xlu0 %v4885_v11, %s4700_s4 }
  0x33   : > { %878 = vrot.lane.b32.xlu1 %v869_v12, %s4701_s1  ;;  %876 = vrot.lane.b32.xlu0 %v4889_v13, %s4701_s1 }
  0x37   : > { %882 = vrot.lane.b32.xlu1 %v871_v14, %s4701_s1  ;;  %880 = vrot.lane.b32.xlu0 %v4899_v15, %s4701_s1  ;;  %v822_v14 = vld [vmem:[%s4872_s3 + $0x8] sm:$0xf] }
  0x91   : > { %v1030_v16 = vpop.permute.xlu0 %1029  ;;  %v948_v17 = vpop.permute.xlu1 %947 }
  0x92   : > { %v1031_v18 = vrot.slane %v1030_v16, 4  ;;  %v949_v36 = vrot.slane %v948_v17, 4 }
  0x94   : > { %v4906_v20 = vsel %vm935_vm7, %v1031_v18, %v1030_v16  ;;  %vm4908_vm8 = vcmp.ne.s16.totalorder %v1031_v18, 0  ;;  %v4948_v41 = vsel %vm6174_vm13, %v949_v36, %v948_v17  ;;  %vm4950_vm14 = vcmp.ne.s16.totalorder %v949_v36, 0  ;;  %v1533_v36 = vld [vmem:[#allocation3 + $0xc] sm:$0xf] }
  0x95   : > { %vm1033_vm9 = vcmp.ne.s16.totalorder %v4906_v20, 0  ;;  %v1036_v22 = vsel %vm4908_vm8, %v1026_v19, 0  ;;  %v992_v23 = vpop.permute.xlu0 %991  ;;  %v908_v24 = vpop.permute.xlu1 %907  ;;  %v1038_v31 = vsel %vm4908_vm8, %v1028_v27, 0  ;;  %vm6150_vm1 = vcmp.ne.s16.totalorder %v4948_v41, 0 }
  0x96   : > { %1045 = vrot.lane.b32.xlu1 %v1036_v22, %s4697_s29  ;;  %v993_v25 = vrot.slane %v992_v23, 4  ;;  %v1035_v26 = vsel %vm1033_vm9, %v4876_v9, 0  ;;  %v1037_v34 = vsel %vm1033_vm9, %v4885_v11, 0  ;;  %v955_v52 = vsel %vm4950_vm14, %v944_v43, 0 }
  0x97   : > { %1043 = vrot.lane.b32.xlu0 %v1035_v26, %s4697_s29  ;;  %v909_v54 = vrot.slane %v908_v24, 4  ;;  %v954_v58 = vsel %vm6150_vm1, %v4889_v13, 0  ;;  %v957_v3 = vsel %vm4950_vm14, %v946_v59, 0  ;;  %v956_v4 = vsel %vm6150_vm1, %v4899_v15, 0  ;;  %v1093_v26 = vld [vmem:[%s4872_s3 + $0xc] sm:$0xf] }
  0x98   : > { %v4922_v28 = vsel %vm975_vm10, %v993_v25, %v992_v23  ;;  %vm4924_vm11 = vcmp.ne.s16.totalorder %v993_v25, 0  ;;  %vm6157_vm1 = vcmask 138240   ;;  %v824_v23 = vld [vmem:[%s4872_s3 + $0x18] sm:$0xf] }
  0x99   : > { %v832_v32 = vpop.permute.xlu0 %831  ;;  %v4931_v33 = vpop.permute.xlu1 %1096  ;;  %vm6152_vm12 = vcmp.ne.s16.totalorder %v4922_v28, 0  ;;  %v998_v35 = vsel %vm4924_vm11, %v988_v30, 0  ;;  %v1000_v44 = vsel %vm4924_vm11, %v990_v40, 0  ;;  %v4976_v62 = vsel %vm910_vm2, %v909_v54, %v908_v24  ;;  %v1503_v40 = vld [vmem:[#allocation3 + $0x1c] sm:$0xf] }
  0x9a   : > { %1049 = vrot.lane.b32.xlu1 %v1038_v31, %s4697_s29  ;;  %v997_v39 = vsel %vm6152_vm12, %v4876_v9, 0  ;;  %v999_v49 = vsel %vm6152_vm12, %v4885_v11, 0  ;;  %vm4978_vm3 = vcmp.ne.s16.totalorder %v909_v54, 0  ;;  %vm6151_vm4 = vcmp.ne.s16.totalorder %v4976_v62, 0 }
  0x9b   : > { %1047 = vrot.lane.b32.xlu0 %v1037_v34, %s4697_s29  ;;  %v915_v5 = vsel %vm4978_vm3, %v898_v0, 0  ;;  %v833_v6 = vrot.slane %v832_v32, 4  ;;  %v914_v7 = vsel %vm6151_vm4, %v4889_v13, 0  ;;  %v917_v16 = vsel %vm4978_vm3, %v900_v8, 0 }
  0x9c   : > { %v916_v17 = vsel %vm6151_vm4, %v4899_v15, 0  ;;  %v1098_v19 = vrot.slane %v4931_v33, 4  ;;  %v1507_v43 = vsel %vm4908_vm8, %v1503_v40, 0 }
  0x9d   : > { %v1074_v37 = vpop.permute.xlu1 %1073  ;;  %v1072_v38 = vpop.permute.xlu0 %1071  ;;  %v5000_v10 = vsel %vm6156_vm5, %v833_v6, %v832_v32  ;;  %vm5002_vm6 = vcmp.ne.s16.totalorder %v833_v6, 0  ;;  %v1095_v32 = vld [vmem:[%s4872_s3 + $0x1c] sm:$0xf]  ;;  %s6168_s3 = smov 8  }
  0x9e   : > { %1007 = vrot.lane.b32.xlu1 %v998_v35, %s6160_s28  ;;  %v1080_v45 = vrot.slane %v1074_v37, 4  ;;  %v1079_v46 = vrot.slane %v1072_v38, 4  ;;  %v839_v18 = vsel %vm5002_vm6, %v822_v14, 0  ;;  %v5026_v24 = vsel %vm6157_vm1, %v1098_v19, %v4931_v33  ;;  %v1535_v37 = vld [vmem:[#allocation3 + $0x1c] sm:$0xf] }
  0x9f   : > { %1005 = vrot.lane.b32.xlu0 %v997_v39, %s6160_s28  ;;  %vm5028_vm4 = vcmp.ne.s16.totalorder %v1098_v19, 0  ;;  %v841_v27 = vsel %vm5002_vm6, %v824_v23, 0  ;;  %vm1100_vm12 = vcmp.ne.s16.totalorder %v5026_v24, 0 }
  0xa0   : > { %v1083_v53 = vsel %vm6175_vm15, %v1079_v46, %v1080_v45  ;;  %v1103_v30 = vsel %vm5028_vm4, %v1093_v26, 0  ;;  %v1102_v31 = vsel %vm1100_vm12, %v4876_v9, 0  ;;  %v1105_v33 = vsel %vm5028_vm4, %v1095_v32, 0  ;;  %v1471_v46 = vld [vmem:[#allocation3 + $0x1c] sm:$0xf] }
  0xa1   : > { %v1078_v47 = vpop.permute.xlu1 %1077  ;;  %v1076_v48 = vpop.permute.xlu0 %1075  ;;  %v1085_v55 = vsel %vm6149_vm0, %v1072_v38, %v1083_v53  ;;  %v1104_v34 = vsel %vm1100_vm12, %v4885_v11, 0  ;;  %v1501_v38 = vld [vmem:[#allocation3 + $0xc] sm:$0xf] }
  0xa2   : > { %1011 = vrot.lane.b32.xlu1 %v1000_v44, %s6160_s28  ;;  %v1082_v50 = vrot.slane %v1078_v47, 4  ;;  %v1081_v51 = vrot.slane %v1076_v48, 4  ;;  %v1505_v39 = vsel %vm4908_vm8, %v1501_v38, 0  ;;  %v1469_v44 = vld [vmem:[#allocation3 + $0xc] sm:$0xf]  ;;  %vm1320_vm8 = vcmask 1044344  }
  0xa3   : > { %1009 = vrot.lane.b32.xlu0 %v999_v49, %s6160_s28  ;;  %v1473_v45 = vsel %vm4924_vm11, %v1469_v44, 0  ;;  %1321 = vst.msk [vmem:[#allocation3] sm:$0xf] %vm1320_vm8, %v4693_v1  ;;  %1322 = vst.msk [vmem:[#allocation3 + $0x10] sm:$0xf] %vm1320_vm8, %v4693_v1 }
  0xa4   : > { %v1086_v56 = vsel %vm6175_vm15, %v1081_v51, %v1082_v50 }
  0xa5   : > { %v1087_v57 = vsel %vm6149_vm0, %v1076_v48, %v1086_v56  ;;  %vm6153_vm0 = vcmp.ne.s16.totalorder %v5000_v10, 0  ;;  %v1475_v48 = vsel %vm4924_vm11, %v1471_v46, 0  ;;  %v5080_v21 = vpop.permute.xlu1 %878  ;;  %v5082_v49 = vpop.permute.xlu0 %876 }
  0xa6   : > { %964 = vrot.lane.b32.xlu1 %v955_v52, %s6158_s2  ;;  %v4318_v60 = vcombine.high %v1085_v55, %v1087_v57  ;;  %v4317_v61 = vcombine.low %v1085_v55, %v1087_v57  ;;  %v838_v22 = vsel %vm6153_vm0, %v4889_v13, 0  ;;  %v840_v13 = vsel %vm6153_vm0, %v4899_v15, 0  ;;  %v4587_v15 = vld [vmem:[%s6208_s7 + $0x4] ss:$8 sps:$4 sm:$0xff]  }
  0xa7   : > { %962 = vrot.lane.b32.xlu0 %v954_v58, %s6158_s2  ;;  %vm889_vm0 = vcmask 130048   ;;  %v885_v40 = vrot.slane %v5080_v21, 4 }
  0xa8   : > { %1265 = vmatprep.subr.bf16.mxu0 %v4318_v60  ;;  %4321 = vmatprep.mubr.msk.bf16.mxu0 %vm889_vm0, %v4587_v15 }
  0xa9   : > { %1266 = vmatpush1.bf16.msra.mxu0 %v4317_v61  ;;  %v5084_v50 = vpop.permute.xlu1 %882  ;;  %v5086_v51 = vpop.permute.xlu0 %880 }
  0xaa   : > { %968 = vrot.lane.b32.xlu1 %v957_v3, %s6158_s2  ;;  %v887_v46 = vrot.slane %v5084_v50, 4 }
  0xab   : > { %966 = vrot.lane.b32.xlu0 %v956_v4, %s6158_s2 }
  0xae   : > { %924 = vrot.lane.b32.xlu1 %v915_v5, %s4694_s27 }
  0xaf   : > { %922 = vrot.lane.b32.xlu0 %v914_v7, %s4694_s27 }
  0xb2   : > { %928 = vrot.lane.b32.xlu1 %v917_v16, %s4694_s27 }
  0xb3   : > { %926 = vrot.lane.b32.xlu0 %v916_v17, %s4694_s27 }
  0xb6   : > { %848 = vrot.lane.b32.xlu1 %v839_v18, %s6154_s8 }
  0xb7   : > { %846 = vrot.lane.b32.xlu0 %v838_v22, %s6154_s8 }
  0xba   : > { %852 = vrot.lane.b32.xlu1 %v841_v27, %s6154_s8 }
  0xbb   : > { %850 = vrot.lane.b32.xlu0 %v840_v13, %s6154_s8  ;;  %s6209_s8 = sld [smem:[#allocation7_spill]] }
  0xbe   : > { %1112 = vrot.lane.b32.xlu1 %v1103_v30, %s4698_s25  ;;  %v4312_v30 = vcombine.high %v4876_v9, %v4885_v11 }
  0xbf   : > { %1110 = vrot.lane.b32.xlu0 %v1102_v31, %s4698_s25 }
  0xc1   : > { %v1150_v35 = vld [vmem:[%s6209_s8] sm:$0xff]  ;;  %v1151_v47 = vld [vmem:[%s6209_s8 + $0x8] sm:$0xff]  ;;  %s771_s8 = scalar_lea.vmem %s6137_s21, %s5309_s30 }
  0xc2   : > { %1116 = vrot.lane.b32.xlu1 %v1105_v33, %s4698_s25 }
  0xc3   : > { %1114 = vrot.lane.b32.xlu0 %v1104_v34, %s4698_s25 }
  0xc6   : > { %1159 = vperm.xlu1 %4534, %v1151_v47   ;;  %v886_v47 = vrot.slane %v5086_v51, 4 }
  0xc7   : > { %1154 = vperm.xlu0 %4533, %v1150_v35  }
  0xc8   : > { %v891_v50 = vsel %vm6175_vm15, %v886_v47, %v887_v46  ;;  %v4585_v47 = vld [vmem:[%s6208_s7] ss:$8 sps:$4 sm:$0xff]   ;;  %s6180_s7 = smov 3  }
  0xcb   : > { %1542 = vrot.lane.b32.xlu0 %v1533_v36, %s4700_s4 }
  0xcf   : > { %1546 = vrot.lane.b32.xlu0 %v1535_v37, %s4700_s4  ;;  %v4311_v37 = vcombine.low %v4876_v9, %v4885_v11 }
  0xd3   : > { %1514 = vrot.lane.b32.xlu0 %v1505_v39, %s4697_s29 }
  0xd7   : > { %1518 = vrot.lane.b32.xlu0 %v1507_v43, %s4697_s29  ;;  %v884_v43 = vrot.slane %v5082_v49, 4 }
  0xdb   : > { %1482 = vrot.lane.b32.xlu0 %v1473_v45, %s6160_s28 }
  0xdf   : > { %1486 = vrot.lane.b32.xlu0 %v1475_v48, %s6160_s28 }
 0x108   : > { %v1046_v52 = vpop.permute.xlu1 %1045 }
 0x109   : > { %v1044_v53 = vpop.permute.xlu0 %1043  ;;  %v1052_v54 = vrot.slane %v1046_v52, 4 }
 0x10a   : > { %v1051_v55 = vrot.slane %v1044_v53, 4 }
 0x10c   : > { %v1050_v56 = vpop.permute.xlu1 %1049  ;;  %v1055_v29 = vsel %vm6175_vm15, %v1051_v55, %v1052_v54 }
 0x10d   : > { %v1054_v57 = vrot.slane %v1050_v56, 4  ;;  %v1048_v58 = vpop.permute.xlu0 %1047  ;;  %v1056_v0 = vsel %vm910_vm2, %v1044_v53, %v1055_v29 }
 0x10e   : > { %v1053_v59 = vrot.slane %v1048_v58, 4 }
 0x110   : > { %v1057_v60 = vsel %vm6175_vm15, %v1053_v59, %v1054_v57  ;;  %v1008_v61 = vpop.permute.xlu1 %1007 }
 0x111   : > { %v1058_v3 = vsel %vm910_vm2, %v1048_v58, %v1057_v60  ;;  %v1006_v4 = vpop.permute.xlu0 %1005  ;;  %v1014_v5 = vrot.slane %v1008_v61, 4  ;;  %v888_v58 = vsel %vm6175_vm15, %v884_v43, %v885_v40 }
 0x112   : > { %v1013_v6 = vrot.slane %v1006_v4, 4  ;;  %v4316_v7 = vcombine.high %v1056_v0, %v1058_v3  ;;  %v4315_v8 = vcombine.low %v1056_v0, %v1058_v3  ;;  %v890_v0 = vsel %vm889_vm0, %v5082_v49, %v888_v58 }
 0x113   : > { %v892_v3 = vsel %vm889_vm0, %v5086_v51, %v891_v50 }
 0x114   : > { %v1012_v14 = vpop.permute.xlu1 %1011  ;;  %1267 = vmatprep.subr.bf16.mxu0 %v4316_v7  ;;  %v1017_v18 = vsel %vm6175_vm15, %v1013_v6, %v1014_v5  ;;  %v4305_v51 = vcombine.low %v890_v0, %v892_v3 }
 0x115   : > { %v1016_v16 = vrot.slane %v1012_v14, 4  ;;  %v1010_v17 = vpop.permute.xlu0 %1009  ;;  %1268 = vmatpush1.bf16.msra.mxu0 %v4315_v8  ;;  %v1018_v26 = vsel %vm6174_vm13, %v1006_v4, %v1017_v18  ;;  %v4306_v18 = vcombine.high %v890_v0, %v892_v3 }
 0x116   : > { %v1015_v19 = vrot.slane %v1010_v17, 4 }
 0x118   : > { %v1019_v22 = vsel %vm6175_vm15, %v1015_v19, %v1016_v16  ;;  %v965_v23 = vpop.permute.xlu1 %964 }
 0x119   : > { %v1020_v27 = vsel %vm6174_vm13, %v1010_v17, %v1019_v22  ;;  %v963_v13 = vpop.permute.xlu0 %962  ;;  %v971_v31 = vrot.slane %v965_v23, 4 }
 0x11a   : > { %v970_v32 = vrot.slane %v963_v13, 4  ;;  %v4314_v15 = vcombine.high %v1018_v26, %v1020_v27  ;;  %v4313_v33 = vcombine.low %v1018_v26, %v1020_v27 }
 0x11c   : > { %v969_v34 = vpop.permute.xlu1 %968  ;;  %1269 = vmatprep.subr.bf16.mxu0 %v4314_v15  ;;  %v974_v38 = vsel %vm6175_vm15, %v970_v32, %v971_v31 }
 0x11d   : > { %v973_v35 = vrot.slane %v969_v34, 4  ;;  %v967_v36 = vpop.permute.xlu0 %966  ;;  %1270 = vmatpush1.bf16.msra.mxu0 %v4313_v33  ;;  %v976_v48 = vsel %vm975_vm10, %v963_v13, %v974_v38 }
 0x11e   : > { %v972_v39 = vrot.slane %v967_v36, 4  ;;  %1271 = vmatprep.subr.bf16.mxu0 %v4312_v30 }
 0x120   : > { %v977_v44 = vsel %vm6175_vm15, %v972_v39, %v973_v35  ;;  %v925_v45 = vpop.permute.xlu1 %924 }
 0x121   : > { %v978_v52 = vsel %vm975_vm10, %v967_v36, %v977_v44  ;;  %v923_v9 = vpop.permute.xlu0 %922  ;;  %1272 = vmatpush1.bf16.msra.mxu0 %v4311_v37  ;;  %v931_v11 = vrot.slane %v925_v45, 4 }
 0x122   : > { %v930_v53 = vrot.slane %v923_v9, 4  ;;  %v4310_v54 = vcombine.high %v976_v48, %v978_v52  ;;  %v4309_v55 = vcombine.low %v976_v48, %v978_v52 }
 0x124   : > { %v929_v21 = vpop.permute.xlu1 %928  ;;  %1273 = vmatprep.subr.bf16.mxu0 %v4310_v54  ;;  %v934_v29 = vsel %vm6175_vm15, %v930_v53, %v931_v11 }
 0x125   : > { %v933_v56 = vrot.slane %v929_v21, 4  ;;  %v927_v57 = vpop.permute.xlu0 %926  ;;  %1274 = vmatpush1.bf16.msra.mxu0 %v4309_v55  ;;  %v936_v4 = vsel %vm935_vm7, %v923_v9, %v934_v29 }
 0x126   : > { %v932_v59 = vrot.slane %v927_v57, 4 }
 0x128   : > { %v937_v60 = vsel %vm6175_vm15, %v932_v59, %v933_v56  ;;  %v849_v61 = vpop.permute.xlu1 %848 }
 0x129   : > { %v938_v5 = vsel %vm935_vm7, %v927_v57, %v937_v60  ;;  %v847_v6 = vpop.permute.xlu0 %846  ;;  %v855_v7 = vrot.slane %v849_v61, 4 }
 0x12a   : > { %v854_v8 = vrot.slane %v847_v6, 4  ;;  %v4308_v14 = vcombine.high %v936_v4, %v938_v5  ;;  %v4307_v16 = vcombine.low %v936_v4, %v938_v5 }
 0x12c   : > { %v853_v17 = vpop.permute.xlu1 %852  ;;  %1275 = vmatprep.subr.bf16.mxu0 %v4308_v14  ;;  %v859_v49 = vsel %vm6175_vm15, %v854_v8, %v855_v7 }
 0x12d   : > { %v857_v19 = vrot.slane %v853_v17, 4  ;;  %v851_v22 = vpop.permute.xlu0 %850  ;;  %1276 = vmatpush1.bf16.msra.mxu0 %v4307_v16  ;;  %v861_v13 = vsel %vm6157_vm1, %v847_v6, %v859_v49 }
 0x12e   : > { %v856_v23 = vrot.slane %v851_v22, 4  ;;  %1277 = vmatprep.subr.bf16.mxu0 %v4306_v18 }
 0x130   : > { %v862_v26 = vsel %vm6175_vm15, %v856_v23, %v857_v19  ;;  %v1113_v27 = vpop.permute.xlu1 %1112 }
 0x131   : > { %v863_v30 = vsel %vm6157_vm1, %v851_v22, %v862_v26  ;;  %v1111_v31 = vpop.permute.xlu0 %1110  ;;  %1278 = vmatpush1.bf16.msra.mxu0 %v4305_v51  ;;  %v1119_v32 = vrot.slane %v1113_v27, 4 }
 0x132   : > { %v1118_v15 = vrot.slane %v1111_v31, 4  ;;  %v4304_v33 = vcombine.high %v861_v13, %v863_v30  ;;  %v4303_v34 = vcombine.low %v861_v13, %v863_v30 }
 0x134   : > { %v1117_v35 = vpop.permute.xlu1 %1116  ;;  %1279 = vmatprep.subr.bf16.mxu0 %v4304_v33  ;;  %v1122_v38 = vsel %vm6175_vm15, %v1118_v15, %v1119_v32 }
 0x135   : > { %v1121_v36 = vrot.slane %v1117_v35, 4  ;;  %v1115_v37 = vpop.permute.xlu0 %1114  ;;  %1280 = vmatpush1.bf16.msra.mxu0 %v4303_v34  ;;  %v1123_v43 = vsel %vm6156_vm5, %v1111_v31, %v1122_v38  ;;  %v1561_v34 = vld [vmem:[#allocation3 + $0xc] sm:$0xf]  ;;  %v1563_v38 = vld [vmem:[#allocation3 + $0x1c] sm:$0xf] }
 0x136   : > { %v1120_v39 = vrot.slane %v1115_v37, 4  ;;  %v1565_v35 = vsel %vm5028_vm4, %v1561_v34, 0  ;;  %v1567_v20 = vsel %vm5028_vm4, %v1563_v38, 0 }
 0x138   : > { %v1124_v40 = vsel %vm6175_vm15, %v1120_v39, %v1121_v36 }
 0x139   : > { %v1125_v44 = vsel %vm6156_vm5, %v1115_v37, %v1124_v40 }
 0x13a   : > { %v4320_v45 = vcombine.high %v1123_v43, %v1125_v44  ;;  %v4319_v46 = vcombine.low %v1123_v43, %v1125_v44  ;;  %v1612_v44 = vld [vmem:[%s6216_s0] sm:$0xff] }
 0x13c   : > { %1295 = vmatprep.subr.bf16.mxu0 %v4320_v45 }
 0x13d   : > { %1296 = vmatpush2.bf16.msra.mxu0 %v4319_v46 }
 0x13e   : > { %1961 = vmatprep.subr.bf16.mxu0 %v4693_v1 }
 0x140   : > { %1298 = vmatmul.mubr.bf16.vlgmr.msra.gmra.mxu0 %v4585_v47 }
 0x141   : > { %v1160_v53 = vpop.permute.xlu1 %1159 }
 0x142   : > { %v1155_v48 = vpop.permute.xlu0 %1154 }
 0x200   : > { %v1299_v52 = vpop.f32.mrf.mxu0 }
 0x201   : > { %v1300_v9 = vadd.f32 %v1299_v52, %v1155_v48 }
 0x202   : > { %v1301_v11 = vpop.f32.mrf.mxu0 }
 0x203   : > { %v1312_v54 = vmul.f32 0.01, %v1300_v9  ;;  %v1302_v55 = vadd.f32 %v1301_v11, %v1155_v48  ;;  %vm1308_vm11 = vcmp.gt.f32.partialorder %v1300_v9, 0.0 }
 0x204   : > { %v1303_v21 = vpop.f32.mrf.mxu0 }
 0x205   : > { %vm1309_vm5 = vcmp.gt.f32.partialorder %v1302_v55, 0.0  ;;  %v1313_v56 = vmul.f32 0.01, %v1302_v55  ;;  %v1304_v57 = vadd.f32 %v1303_v21, %v1160_v53  ;;  %v5132_v50 = vsel %vm1308_vm11, %v1300_v9, %v1312_v54 }
 0x206   : > { %v1305_v58 = vpop.f32.mrf.mxu0  ;;  %vm6212_vm11 = vcmp.ne.s16.totalorder %v4976_v62, 0 }
 0x207   : > { %v5134_v29 = vsel %vm1309_vm5, %v1302_v55, %v1313_v56  ;;  %v1314_v59 = vmul.f32 0.01, %v1304_v57  ;;  %v1306_v60 = vadd.f32 %v1305_v58, %v1160_v53  ;;  %vm1310_vm8 = vcmp.gt.f32.partialorder %v1304_v57, 0.0 }
 0x208   : > { %v5138_v61 = vpack.c.bf16 %v5134_v29, %v5132_v50  ;;  %vm6211_vm5 = vcmp.ne.s16.totalorder %v4948_v41, 0 }
 0x209   : > { %vm1311_vm1 = vcmp.gt.f32.partialorder %v1306_v60, 0.0  ;;  %v1315_v0 = vmul.f32 0.01, %v1306_v60  ;;  %v5144_v3 = vsel %vm1310_vm8, %v1304_v57, %v1314_v59 }
 0x20a   : > { %1338 = vst [vmem:[#allocation3 + $0x4] sm:$0xff] %v5138_v61  ;;  %1466 = vst [vmem:[#allocation4 + $0x40] sm:$0xff] %v5138_v61  ;;  %1540 = vrot.lane.b32.xlu1 %v5138_v61, %s4700_s4  ;;  %v4684_v7 = vpack.c.bf16 %v5144_v3, %v5132_v50  ;;  %v1504_v18 = vsel %vm1033_vm9, %v5138_v61, 0  ;;  %v1564_v40 = vsel %vm1100_vm12, %v5138_v61, 0 }
 0x20b   : > { %v5146_v4 = vsel %vm1311_vm1, %v1306_v60, %v1315_v0  ;;  %vm6210_vm1 = vcmp.ne.s16.totalorder %v4922_v28, 0  ;;  %v1613_v28 = vld [vmem:[%s6216_s0 + $0x8] sm:$0xff]  ;;  %s6235_s0 = smov 120  }
 0x20c   : > { %v5150_v5 = vpack.c.bf16 %v5146_v4, %v5144_v3  ;;  %v4683_v6 = vpack.c.bf16 %v5146_v4, %v5134_v29  ;;  %v1472_v49 = vsel %vm6210_vm1, %v5138_v61, 0 }
 0x20e   : > { %1339 = vst [vmem:[#allocation3 + $0x14] sm:$0xff] %v5150_v5  ;;  %1467 = vst [vmem:[#allocation4 + $0x48] sm:$0xff] %v5150_v5  ;;  %v1506_v42 = vsel %vm1033_vm9, %v5150_v5, 0  ;;  %vm6215_vm9 = vcmp.ne.s16.totalorder %v5000_v10, 0  ;;  %v1566_v62 = vsel %vm1100_vm12, %v5150_v5, 0  ;;  %v1543_v10 = vpop.permute.xlu0 %1542  ;;  %vm6221_vm12 = vcmask 916480  }
 0x20f   : > { %vm6219_vm4 = vmmov %vm6215_vm9  ;;  %v1549_v52 = vrot.slane %v1543_v10, 4 }
 0x210   : > { %vm6222_vm8 = vmmov %vm6221_vm12 }
 0x211   : > { %v1373_v8 = vld [vmem:[#allocation3 + $0x8] sm:$0xf]  ;;  %v1372_v14 = vld [vmem:[#allocation3] sm:$0xff] }
 0x212   : > { %1382 = vrot.lane.b32.xlu0 %v1373_v8, %s4701_s1  ;;  %v1433_v16 = vld [vmem:[#allocation3 + $0x8] sm:$0xf]  ;;  %1380 = vrot.lane.b32.xlu1 %v1372_v14, %s4701_s1  ;;  %v1436_v51 = vsel %vm6211_vm5, %v1372_v14, 0  ;;  %v1404_v13 = vsel %vm6212_vm11, %v1372_v14, 0  ;;  %v1344_v39 = vsel %vm6215_vm9, %v1372_v14, 0  ;;  %v1547_v45 = vpop.permute.xlu0 %1546 }
 0x213   : > { %v1437_v17 = vsel %vm4950_vm14, %v1433_v16, 0  ;;  %v1401_v19 = vld [vmem:[#allocation3 + $0x8] sm:$0xf] }
 0x214   : > { %v1405_v22 = vsel %vm4978_vm3, %v1401_v19, 0  ;;  %v1341_v26 = vld [vmem:[#allocation3 + $0x8] sm:$0xf] }
 0x215   : > { %v1375_v23 = vld [vmem:[#allocation3 + $0x18] sm:$0xf]  ;;  %v1345_v27 = vsel %vm5002_vm6, %v1341_v26, 0  ;;  %v1374_v33 = vld [vmem:[#allocation3 + $0x10] sm:$0xff] }
 0x216   : > { %1446 = vrot.lane.b32.xlu0 %v1437_v17, %s6158_s2  ;;  %1512 = vrot.lane.b32.xlu1 %v1504_v18, %s4697_s29  ;;  %v1435_v30 = vld [vmem:[#allocation3 + $0x18] sm:$0xf]  ;;  %v1346_v43 = vsel %vm6219_vm4, %v1374_v33, 0  ;;  %v1515_v46 = vpop.permute.xlu0 %1514  ;;  %vm1955_vm4 = vcmask 1047552  }
 0x217   : > { %v1439_v31 = vsel %vm4950_vm14, %v1435_v30, 0  ;;  %v1403_v32 = vld [vmem:[#allocation3 + $0x18] sm:$0xf]  ;;  %vm6214_vm14 = vmmov %vm6210_vm1  ;;  %v1521_v61 = vrot.slane %v1515_v46, 4  ;;  %vm6224_vm1 = vcmask 908288  }
 0x218   : > { %v1407_v15 = vsel %vm4978_vm3, %v1403_v32, 0  ;;  %v1343_v36 = vld [vmem:[#allocation3 + $0x18] sm:$0xf]  ;;  %v1474_v37 = vsel %vm6214_vm14, %v5150_v5, 0  ;;  %vm6217_vm3 = vmmov %vm6211_vm5 }
 0x219   : > { %v1347_v63 = vsel %vm5002_vm6, %v1343_v36, 0  ;;  %v1438_v12 = vsel %vm6217_vm3, %v1374_v33, 0  ;;  %vm6218_vm6 = vmmov %vm6212_vm11 }
 0x21a   : > { %1414 = vrot.lane.b32.xlu0 %v1405_v22, %s4694_s27  ;;  %1480 = vrot.lane.b32.xlu1 %v1472_v49, %s6160_s28  ;;  %v1406_v25 = vsel %vm6218_vm6, %v1374_v33, 0  ;;  %v5240_v47 = vpop.permute.xlu0 %1518  ;;  %vm6226_vm5 = vmmov %vm6224_vm1  ;;  %vm1954_vm6 = vcmask 1046528  }
 0x21e   : > { %1386 = vrot.lane.b32.xlu0 %v1375_v23, %s4701_s1  ;;  %1444 = vrot.lane.b32.xlu1 %v1436_v51, %s6158_s2  ;;  %v1483_v48 = vpop.permute.xlu0 %1482 }
 0x21f   : > { %v1489_v17 = vrot.slane %v1483_v48, 4 }
 0x222   : > { %1354 = vrot.lane.b32.xlu0 %v1345_v27, %s6213_s6  ;;  %1412 = vrot.lane.b32.xlu1 %v1404_v13, %s4694_s27  ;;  %v5243_v53 = vpop.permute.xlu0 %1486 }
 0x226   : > { %1450 = vrot.lane.b32.xlu0 %v1439_v31, %s6158_s2  ;;  %1544 = vrot.lane.b32.xlu1 %v5150_v5, %s4700_s4 }
 0x22a   : > { %1418 = vrot.lane.b32.xlu0 %v1407_v15, %s4694_s27  ;;  %1384 = vrot.lane.b32.xlu1 %v1374_v33, %s4701_s1  ;;  %s766_s1 = scalar_lea.vmem %s6136_s20, %s5309_s30 }
 0x22e   : > { %1574 = vrot.lane.b32.xlu0 %v1565_v35, %s4698_s25  ;;  %1516 = vrot.lane.b32.xlu1 %v1506_v42, %s4697_s29  ;;  %s6220_s29 = sld [smem:[#allocation8_spill]]  ;;  %v1551_v42 = vrot.slane %v1547_v45, 4 }
 0x232   : > { %1358 = vrot.lane.b32.xlu0 %v1347_v63, %s6213_s6  ;;  %1484 = vrot.lane.b32.xlu1 %v1474_v37, %s6160_s28 }
 0x234   : > { %v4590_v41 = vld [vmem:[%s6220_s29 + $0x4] ss:$8 sps:$4 sm:$0xff]  }
 0x235   : > { %4344 = vmatprep.mubr.msk.bf16.mxu1 %vm889_vm0, %v4590_v41 }
 0x236   : > { %1578 = vrot.lane.b32.xlu0 %v1567_v20, %s4698_s25  ;;  %1352 = vrot.lane.b32.xlu1 %v1344_v39, %s6213_s6 }
 0x23a   : > { %1621 = vperm.xlu0 %4533, %v1613_v28   ;;  %1448 = vrot.lane.b32.xlu1 %v1438_v12, %s6158_s2  ;;  %s4706_s2 = smov 9  }
 0x23e   : > { %1416 = vrot.lane.b32.xlu1 %v1406_v25, %s4694_s27  ;;  %s6228_s27 = smov 1  }
 0x242   : > { %1572 = vrot.lane.b32.xlu1 %v1564_v40, %s4698_s25 }
 0x246   : > { %1356 = vrot.lane.b32.xlu1 %v1346_v43, %s6213_s6  ;;  %s6227_s6 = sld [smem:[#allocation10_spill]] }
 0x24a   : > { %1576 = vrot.lane.b32.xlu1 %v1566_v62, %s4698_s25  ;;  %v1523_v62 = vrot.slane %v5240_v47, 4  ;;  %s4705_s25 = smov 119  }
 0x24e   : > { %1616 = vperm.xlu1 %4534, %v1612_v44  }
 0x27c   : > { %v1541_v9 = vpop.permute.xlu1 %1540 }
 0x27d   : > { %v1548_v11 = vrot.slane %v1541_v9, 4 }
 0x27f   : > { %v1552_v24 = vsel %vm6175_vm15, %v1548_v11, %v1549_v52  ;;  %v1491_v52 = vrot.slane %v5243_v53, 4 }
 0x280   : > { %v1553_v54 = vsel %vm6221_vm12, %v1541_v9, %v1552_v24 }
 0x281   : > { %1558 = vst [vmem:[#allocation4 + $0x70] sm:$0xff] %v1553_v54 }
 0x284   : > { %v1383_v55 = vpop.permute.xlu0 %1382  ;;  %v1381_v21 = vpop.permute.xlu1 %1380 }
 0x285   : > { %v1389_v56 = vrot.slane %v1383_v55, 4  ;;  %v1388_v57 = vrot.slane %v1381_v21, 4 }
 0x287   : > { %v1392_v58 = vsel %vm6175_vm15, %v1388_v57, %v1389_v56 }
 0x288   : > { %v5248_v59 = vsel %vm889_vm0, %v1381_v21, %v1392_v58  ;;  %v1513_v60 = vpop.permute.xlu1 %1512  ;;  %v1447_v5 = vpop.permute.xlu0 %1446 }
 0x289   : > { %1398 = vst [vmem:[#allocation4 + $0x10] sm:$0xff] %v5248_v59  ;;  %v1520_v0 = vrot.slane %v1513_v60, 4  ;;  %v1453_v51 = vrot.slane %v1447_v5, 4 }
 0x28b   : > { %v1524_v8 = vsel %vm6175_vm15, %v1520_v0, %v1521_v61 }
 0x28c   : > { %v1525_v14 = vsel %vm910_vm2, %v1513_v60, %v1524_v8  ;;  %v1481_v16 = vpop.permute.xlu1 %1480  ;;  %v1415_v22 = vpop.permute.xlu0 %1414 }
 0x28d   : > { %1530 = vst [vmem:[#allocation4 + $0x60] sm:$0xff] %v1525_v14  ;;  %v1488_v18 = vrot.slane %v1481_v16, 4  ;;  %v1421_v31 = vrot.slane %v1415_v22, 4 }
 0x28f   : > { %v1492_v19 = vsel %vm6175_vm15, %v1488_v18, %v1489_v17 }
 0x290   : > { %v1493_v49 = vsel %vm6174_vm13, %v1481_v16, %v1492_v19  ;;  %v1445_v23 = vpop.permute.xlu1 %1444  ;;  %v1387_v15 = vpop.permute.xlu0 %1386 }
 0x291   : > { %1498 = vst [vmem:[#allocation4 + $0x50] sm:$0xff] %v1493_v49  ;;  %v1452_v26 = vrot.slane %v1445_v23, 4  ;;  %v1391_v39 = vrot.slane %v1387_v15, 4 }
 0x293   : > { %v1456_v27 = vsel %vm6175_vm15, %v1452_v26, %v1453_v51 }
 0x294   : > { %v5257_v13 = vsel %vm975_vm10, %v1445_v23, %v1456_v27  ;;  %v1413_v30 = vpop.permute.xlu1 %1412  ;;  %v1355_v37 = vpop.permute.xlu0 %1354 }
 0x295   : > { %1462 = vst [vmem:[#allocation4 + $0x30] sm:$0xff] %v5257_v13  ;;  %v1420_v32 = vrot.slane %v1413_v30, 4  ;;  %v1361_v56 = vrot.slane %v1355_v37, 4 }
 0x297   : > { %v1424_v33 = vsel %vm6175_vm15, %v1420_v32, %v1421_v31 }
 0x298   : > { %v5262_v34 = vsel %vm935_vm7, %v1413_v30, %v1424_v33  ;;  %v1545_v35 = vpop.permute.xlu1 %1544  ;;  %v1451_v10 = vpop.permute.xlu0 %1450 }
 0x299   : > { %1430 = vst [vmem:[#allocation4 + $0x20] sm:$0xff] %v5262_v34  ;;  %v1550_v36 = vrot.slane %v1545_v35, 4  ;;  %v1455_v5 = vrot.slane %v1451_v10, 4 }
 0x29b   : > { %v1554_v63 = vsel %vm6175_vm15, %v1550_v36, %v1551_v42 }
 0x29c   : > { %v1555_v38 = vsel %vm6222_vm8, %v1545_v35, %v1554_v63  ;;  %v1385_v20 = vpop.permute.xlu1 %1384  ;;  %v1419_v55 = vpop.permute.xlu0 %1418 }
 0x29d   : > { %1559 = vst [vmem:[#allocation4 + $0x78] sm:$0xff] %v1555_v38  ;;  %v1390_v28 = vrot.slane %v1385_v20, 4  ;;  %v4341_v12 = vcombine.high %v1553_v54, %v1555_v38  ;;  %v4340_v25 = vcombine.low %v1553_v54, %v1555_v38  ;;  %v1423_v19 = vrot.slane %v1419_v55, 4 }
 0x29f   : > { %v1394_v40 = vsel %vm6175_vm15, %v1390_v28, %v1391_v39  ;;  %1726 = vmatprep.subr.bf16.mxu1 %v4341_v12 }
 0x2a0   : > { %v5269_v43 = vsel %vm889_vm0, %v1385_v20, %v1394_v40  ;;  %v1517_v41 = vpop.permute.xlu1 %1516  ;;  %1727 = vmatpush1.bf16.msra.mxu1 %v4340_v25  ;;  %v4588_v25 = vld [vmem:[%s6220_s29] ss:$8 sps:$4 sm:$0xff]  }
 0x2a1   : > { %1399 = vst [vmem:[#allocation4 + $0x18] sm:$0xff] %v5269_v43  ;;  %v1522_v44 = vrot.slane %v1517_v41, 4  ;;  %v4328_v35 = vcombine.low %v5248_v59, %v5269_v43 }
 0x2a3   : > { %v1526_v45 = vsel %vm6175_vm15, %v1522_v44, %v1523_v62 }
 0x2a4   : > { %v1527_v46 = vsel %vm910_vm2, %v1517_v41, %v1526_v45  ;;  %v1485_v48 = vpop.permute.xlu1 %1484  ;;  %vm6223_vm2 = vcmask 138240  }
 0x2a5   : > { %1531 = vst [vmem:[#allocation4 + $0x68] sm:$0xff] %v1527_v46  ;;  %v1490_v9 = vrot.slane %v1485_v48, 4  ;;  %v4339_v11 = vcombine.high %v1525_v14, %v1527_v46  ;;  %v4338_v24 = vcombine.low %v1525_v14, %v1527_v46  ;;  %v1575_v14 = vpop.permute.xlu0 %1574 }
 0x2a6   : > { %v1581_v26 = vrot.slane %v1575_v14, 4  ;;  %v4597_v14 = vld [vmem:[%s6227_s6 + $0x8] sm:$0xff]  }
 0x2a7   : > { %v1494_v54 = vsel %vm6175_vm15, %v1490_v9, %v1491_v52  ;;  %1728 = vmatprep.subr.bf16.mxu1 %v4339_v11 }
 0x2a8   : > { %v1495_v47 = vsel %vm6174_vm13, %v1485_v48, %v1494_v54  ;;  %v1353_v21 = vpop.permute.xlu1 %1352  ;;  %1729 = vmatpush1.bf16.msra.mxu1 %v4338_v24 }
 0x2a9   : > { %1499 = vst [vmem:[#allocation4 + $0x58] sm:$0xff] %v1495_v47  ;;  %v1360_v57 = vrot.slane %v1353_v21, 4  ;;  %v4337_v58 = vcombine.high %v1493_v49, %v1495_v47  ;;  %v4336_v60 = vcombine.low %v1493_v49, %v1495_v47  ;;  %v1359_v4 = vpop.permute.xlu0 %1358 }
 0x2aa   : > { %v1363_v32 = vrot.slane %v1359_v4, 4  ;;  %v4602_v4 = vld [vmem:[%s6227_s6 + $0x58] sm:$0xff]  }
 0x2ab   : > { %v1364_v61 = vsel %vm6175_vm15, %v1360_v57, %v1361_v56  ;;  %1730 = vmatprep.subr.bf16.mxu1 %v4337_v58  ;;  %v4592_v57 = vld [vmem:[%s6227_s6 + $0x30] sm:$0xff]  }
 0x2ac   : > { %v1365_v53 = vsel %vm6223_vm2, %v1353_v21, %v1364_v61  ;;  %v1449_v0 = vpop.permute.xlu1 %1448  ;;  %1731 = vmatpush1.bf16.msra.mxu1 %v4336_v60  ;;  %v4591_v21 = vld [vmem:[%s6227_s6 + $0x38] sm:$0xff]  }
 0x2ad   : > { %1370 = vst [vmem:[#allocation4] sm:$0xff] %v1365_v53  ;;  %v1454_v8 = vrot.slane %v1449_v0, 4  ;;  %1732 = vmatprep.subr.bf16.mxu1 %v4683_v6  ;;  %v1579_v33 = vpop.permute.xlu0 %1578  ;;  %1962 = vmatpush1.bf16.msra.mxu0 %v4591_v21 }
 0x2ae   : > { %v1583_v63 = vrot.slane %v1579_v33, 4  ;;  %1963 = vmatprep.subr.bf16.mxu0 %v4693_v1 }
 0x2af   : > { %v1458_v16 = vsel %vm6175_vm15, %v1454_v8, %v1455_v5  ;;  %v4595_v5 = vld [vmem:[%s6227_s6 + $0x18] sm:$0xff]   ;;  %v4596_v8 = vld [vmem:[%s6227_s6 + $0x10] sm:$0xff]  }
 0x2b0   : > { %v1459_v17 = vsel %vm975_vm10, %v1449_v0, %v1458_v16  ;;  %v1417_v18 = vpop.permute.xlu1 %1416  ;;  %1733 = vmatpush1.bf16.msra.mxu1 %v4684_v7  ;;  %v4594_v0 = vld [vmem:[%s6227_s6 + $0x20] sm:$0xff]   ;;  %v4702_v16 = vmov 65535  }
 0x2b1   : > { %1463 = vst [vmem:[#allocation4 + $0x38] sm:$0xff] %v1459_v17  ;;  %v1422_v22 = vrot.slane %v1417_v18, 4  ;;  %v4333_v49 = vcombine.high %v5257_v13, %v1459_v17  ;;  %v4332_v23 = vcombine.low %v5257_v13, %v1459_v17  ;;  %v4329_v13 = vcombine.high %v5248_v59, %v5269_v43  ;;  %1964 = vmatpush1.bf16.msra.mxu0 %v4592_v57 }
 0x2b2   : > { %1965 = vmatprep.subr.bf16.mxu0 %v4693_v1  ;;  %v1956_v17 = vsel %vm1954_vm6, 4294967295, %v4702_v16 }
 0x2b3   : > { %v1426_v29 = vsel %vm6175_vm15, %v1422_v22, %v1423_v19  ;;  %1734 = vmatprep.subr.bf16.mxu1 %v4333_v49  ;;  %v4599_v19 = vld [vmem:[%s6227_s6 + $0x70] sm:$0xff]   ;;  %v1957_v22 = vsel %vm1955_vm4, %v1956_v17, 0  ;;  %vm2734_vm4 = vcmask 1044440  }
 0x2b4   : > { %v1427_v6 = vsel %vm935_vm7, %v1417_v18, %v1426_v29  ;;  %v1573_v51 = vpop.permute.xlu1 %1572  ;;  %1735 = vmatpush1.bf16.msra.mxu1 %v4332_v23  ;;  %vm6225_vm7 = vmmov %vm6223_vm2  ;;  %v4598_v18 = vld [vmem:[%s6227_s6] sm:$0xff]   ;;  %v1959_v49 = vand.u32 %v4599_v19, %v1957_v22  ;;  %v4600_v23 = vld [vmem:[%s6227_s6 + $0x68] sm:$0xff]  }
 0x2b5   : > { %1431 = vst [vmem:[#allocation4 + $0x28] sm:$0xff] %v1427_v6  ;;  %v1580_v27 = vrot.slane %v1573_v51, 4  ;;  %v4331_v50 = vcombine.high %v5262_v34, %v1427_v6  ;;  %v4330_v3 = vcombine.low %v5262_v34, %v1427_v6  ;;  %v1622_v45 = vpop.permute.xlu0 %1621  ;;  %v4601_v29 = vld [vmem:[%s6227_s6 + $0x60] sm:$0xff]   ;;  %v4603_v6 = vld [vmem:[%s6227_s6 + $0x50] sm:$0xff]  }
 0x2b7   : > { %v1584_v7 = vsel %vm6175_vm15, %v1580_v27, %v1581_v26  ;;  %1736 = vmatprep.subr.bf16.mxu1 %v4331_v50  ;;  %v4604_v26 = vld [vmem:[%s6227_s6 + $0x48] sm:$0xff]  }
 0x2b8   : > { %v1585_v30 = vsel %vm6224_vm1, %v1573_v51, %v1584_v7  ;;  %v1357_v31 = vpop.permute.xlu1 %1356  ;;  %1737 = vmatpush1.bf16.msra.mxu1 %v4330_v3  ;;  %v4605_v3 = vld [vmem:[%s6227_s6 + $0x40] sm:$0xff]  }
 0x2b9   : > { %1590 = vst [vmem:[#allocation4 + $0x80] sm:$0xff] %v1585_v30  ;;  %v1362_v15 = vrot.slane %v1357_v31, 4  ;;  %1738 = vmatprep.subr.bf16.mxu1 %v4329_v13 }
 0x2bb   : > { %v1366_v34 = vsel %vm6175_vm15, %v1362_v15, %v1363_v32 }
 0x2bc   : > { %v1367_v42 = vsel %vm6225_vm7, %v1357_v31, %v1366_v34  ;;  %v1577_v36 = vpop.permute.xlu1 %1576  ;;  %1739 = vmatpush1.bf16.msra.mxu1 %v4328_v35  ;;  %v2023_v35 = vand.u32 7, %v4856_v2  ;;  %vm6230_vm7 = vcmask 916480  }
 0x2bd   : > { %1371 = vst [vmem:[#allocation4 + $0x8] sm:$0xff] %v1367_v42  ;;  %v1582_v37 = vrot.slane %v1577_v36, 4  ;;  %v4327_v38 = vcombine.high %v1365_v53, %v1367_v42  ;;  %v4326_v20 = vcombine.low %v1365_v53, %v1367_v42  ;;  %v4593_v53 = vld [vmem:[%s6227_s6 + $0x28] sm:$0xff]   ;;  %s6234_s6 = sld [smem:[#allocation11_spill]] }
 0x2be   : > { %1966 = vmatpush1.bf16.msra.mxu0 %v4593_v53  ;;  %vm2031_vm12 = vcmp.ne.s32.totalorder %v2023_v35, 0  ;;  %vm2032_vm8 = vcmp.ne.s32.totalorder %v2023_v35, 7 }
 0x2bf   : > { %v1586_v39 = vsel %vm6175_vm15, %v1582_v37, %v1583_v63  ;;  %1740 = vmatprep.subr.bf16.mxu1 %v4327_v38  ;;  %1967 = vmatprep.subr.bf16.mxu0 %v4693_v1  ;;  %vm2037_vm2 = vmpackc.low %vm2031_vm12, %vm2031_vm12  ;;  %vm2737_vm12 = vcmask 167040  }
 0x2c0   : > { %v1587_v28 = vsel %vm6226_vm5, %v1577_v36, %v1586_v39  ;;  %1741 = vmatpush1.bf16.msra.mxu1 %v4326_v20  ;;  %v2038_v37 = vsel %vm2037_vm2, 65537, %v4693_v1  ;;  %vm2083_vm1 = vmpackc.low %vm2032_vm8, %vm2032_vm8  ;;  %vm2088_vm2 = vcmask 990208  }
 0x2c1   : > { %1591 = vst [vmem:[#allocation4 + $0x88] sm:$0xff] %v1587_v28  ;;  %v4343_v59 = vcombine.high %v1585_v30, %v1587_v28  ;;  %v4342_v12 = vcombine.low %v1585_v30, %v1587_v28  ;;  %v2084_v38 = vsel %vm2083_vm1, 65537, %v4693_v1  ;;  %vm6231_vm5 = vmmov %vm6230_vm7 }
 0x2c2   : > { %1968 = vmatpush1.bf16.msra.mxu0 %v4594_v0 }
 0x2c3   : > { %1756 = vmatprep.subr.bf16.mxu1 %v4343_v59  ;;  %1969 = vmatprep.subr.bf16.mxu0 %v4693_v1 }
 0x2c4   : > { %1757 = vmatpush2.bf16.msra.mxu1 %v4342_v12 }
 0x2c5   : > { %2296 = vmatprep.subr.bf16.mxu1 %v4693_v1 }
 0x2c6   : > { %1970 = vmatpush1.bf16.msra.mxu0 %v4595_v5 }
 0x2c7   : > { %1759 = vmatmul.mubr.bf16.vlgmr.msra.gmra.mxu1 %v4588_v25  ;;  %1971 = vmatprep.subr.bf16.mxu0 %v4693_v1 }
 0x2c9   : > { %v1617_v40 = vpop.permute.xlu1 %1616 }
 0x2ca   : > { %1972 = vmatpush1.bf16.msra.mxu0 %v4596_v8 }
 0x2cb   : > { %1973 = vmatprep.subr.bf16.mxu0 %v4693_v1 }
 0x2ce   : > { %1974 = vmatpush1.bf16.msra.mxu0 %v4597_v14 }
 0x2cf   : > { %1975 = vmatprep.subr.bf16.mxu0 %v4693_v1 }
 0x2d2   : > { %1976 = vmatpush1.bf16.msra.mxu0 %v4598_v18 }
 0x2d3   : > { %1979 = vmatprep.subr.bf16.mxu0 %v4693_v1 }
 0x2d6   : > { %1980 = vmatpush2.bf16.msra.mxu0 %v1959_v49 }
 0x2d7   : > { %1981 = vmatprep.subr.bf16.mxu0 %v4693_v1 }
 0x2da   : > { %1982 = vmatpush2.bf16.msra.mxu0 %v4600_v23 }
 0x2db   : > { %1983 = vmatprep.subr.bf16.mxu0 %v4693_v1 }
 0x2de   : > { %1984 = vmatpush2.bf16.msra.mxu0 %v4601_v29 }
 0x2df   : > { %1985 = vmatprep.subr.bf16.mxu0 %v4693_v1 }
 0x2e2   : > { %1986 = vmatpush2.bf16.msra.mxu0 %v4602_v4 }
 0x2e3   : > { %1987 = vmatprep.subr.bf16.mxu0 %v4693_v1 }
 0x2e6   : > { %1988 = vmatpush2.bf16.msra.mxu0 %v4603_v6 }
 0x2e7   : > { %1989 = vmatprep.subr.bf16.mxu0 %v4693_v1 }
 0x2ea   : > { %1990 = vmatpush2.bf16.msra.mxu0 %v4604_v26 }
 0x2eb   : > { %1991 = vmatprep.subr.bf16.mxu0 %v4693_v1 }
 0x2ee   : > { %1992 = vmatpush2.bf16.msra.mxu0 %v4605_v3 }
 0x387   : > { %v1760_v43 = vpop.f32.mrf.mxu1 }
 0x388   : > { %v1761_v41 = vadd.f32 %v1760_v43, %v1617_v40 }
 0x389   : > { %v1762_v62 = vpop.f32.mrf.mxu1 }
 0x38a   : > { %vm1769_vm11 = vcmp.gt.f32.partialorder %v1761_v41, 0.0  ;;  %v1773_v44 = vmul.f32 0.01, %v1761_v41  ;;  %v1763_v10 = vadd.f32 %v1762_v62, %v1617_v40 }
 0x38b   : > { %v1764_v46 = vpop.f32.mrf.mxu1 }
 0x38c   : > { %v5315_v48 = vsel %vm1769_vm11, %v1761_v41, %v1773_v44  ;;  %vm1770_vm14 = vcmp.gt.f32.partialorder %v1763_v10, 0.0  ;;  %v1774_v52 = vmul.f32 0.01, %v1763_v10  ;;  %v1765_v9 = vadd.f32 %v1764_v46, %v1622_v45 }
 0x38d   : > { %1781 = vst [vmem:[%s766_s1] sm:$0xff] %v5315_v48  ;;  %v1766_v11 = vpop.f32.mrf.mxu1  ;;  %vm6232_vm11 = vcmask 908288  }
 0x38e   : > { %v5318_v24 = vsel %vm1770_vm14, %v1763_v10, %v1774_v52  ;;  %v1775_v54 = vmul.f32 0.01, %v1765_v9  ;;  %v1767_v55 = vadd.f32 %v1766_v11, %v1622_v45  ;;  %vm1771_vm9 = vcmp.gt.f32.partialorder %v1765_v9, 0.0 }
 0x38f   : > { %1782 = vst [vmem:[%s766_s1 + $0x8] sm:$0xff] %v5318_v24  ;;  %v4535_v47 = vpack.i.bf16 %v5318_v24, %v5315_v48  ;;  %s6229_s1 = smov 127   ;;  %vm2005_vm14 = vcmask 593408  }
 0x390   : > { %vm1772_vm3 = vcmp.gt.f32.partialorder %v1767_v55, 0.0  ;;  %v1776_v56 = vmul.f32 0.01, %v1767_v55  ;;  %v5330_v58 = vsel %vm1771_vm9, %v1765_v9, %v1775_v54  ;;  %2006 = vst.msk [vmem:[#allocation2 + $0x4] sm:$0xf] %vm2005_vm14, %v4693_v1  ;;  %vm2002_vm9 = vcmask 1044408  }
 0x391   : > { %4536 = vrot.lane.b32.xlu1 %v4535_v47, %s6160_s28  ;;  %2345 = vst.msk [vmem:[#allocation3 + $0x4] sm:$0xf] %vm2005_vm14, %v4693_v1  ;;  %2346 = vst.msk [vmem:[#allocation3 + $0x14] sm:$0xf] %vm2005_vm14, %v4693_v1 }
 0x392   : > { %v1780_v60 = vsel %vm1772_vm3, %v1767_v55, %v1776_v56  ;;  %2007 = vst.msk [vmem:[#allocation2 + $0x14] sm:$0xf] %vm2005_vm14, %v4693_v1  ;;  %vm2016_vm3 = vcmask 519168  }
 0x393   : > { %v4540_v61 = vpack.i.bf16 %v1780_v60, %v5330_v58  ;;  %2003 = vst.msk [vmem:[#allocation2] sm:$0xf] %vm2002_vm9, %v4693_v1  ;;  %2004 = vst.msk [vmem:[#allocation2 + $0x10] sm:$0xf] %vm2002_vm9, %v4693_v1 }
 0x394   : > { %2343 = vst.msk [vmem:[#allocation3] sm:$0xf] %vm2002_vm9, %v4693_v1  ;;  %2344 = vst.msk [vmem:[#allocation3 + $0x10] sm:$0xf] %vm2002_vm9, %v4693_v1  ;;  %vm2101_vm9 = vcmask 56320  }
 0x395   : > { %4541 = vrot.lane.b32.xlu0 %v4540_v61, %s6160_s28  ;;  %s6162_s28 = smov 7  }
 0x403   : > { %v4537_v51 = vpop.permute.xlu1 %4536 }
 0x404   : > { %v4539_v27 = vunpack.i.h.bf16 %v4537_v51  ;;  %v4538_v50 = vunpack.i.l.bf16 %v4537_v51 }
 0x406   : > { %v1803_v7 = vmax.f32 %v5318_v24, %v4539_v27  ;;  %v1796_v13 = vsel %vm6174_vm13, %v4538_v50, %v4539_v27 }
 0x407   : > { %v4542_v30 = vpop.permute.xlu0 %4541  ;;  %v1802_v31 = vmax.f32 %v5315_v48, %v1796_v13 }
 0x408   : > { %v4544_v32 = vunpack.i.h.bf16 %v4542_v30  ;;  %v4543_v15 = vunpack.i.l.bf16 %v4542_v30 }
 0x409   : > { %v4545_v33 = vpack.i.bf16 %v1803_v7, %v1802_v31 }
 0x40a   : > { %v1805_v34 = vmax.f32 %v1780_v60, %v4544_v32  ;;  %v1797_v42 = vsel %vm6174_vm13, %v4543_v15, %v4544_v32 }
 0x40b   : > { %4546 = vrot.lane.b32.xlu1 %v4545_v33, %s4700_s4  ;;  %v1804_v36 = vmax.f32 %v5330_v58, %v1797_v42 }
 0x40d   : > { %v4550_v63 = vpack.i.bf16 %v1805_v34, %v1804_v36 }
 0x40f   : > { %4551 = vrot.lane.b32.xlu0 %v4550_v63, %s4700_s4  ;;  %2154 = vrot.lane.b32.xlu1 %v2038_v37, %s6162_s28  ;;  %s6166_s4 = smov 120  }
 0x413   : > { %2137 = vrot.lane.b32.xlu0 %v2084_v38, %s6228_s27  ;;  %2110 = vrot.lane.b32.xlu1 %v2038_v37, %s6229_s1 }
 0x417   : > { %2085 = vrot.lane.b32.xlu0 %v2084_v38, %s6164_s26  ;;  %2039 = vrot.lane.b32.xlu1 %v2038_v37, %s4705_s25 }
 0x41b   : > { %2183 = vrot.lane.b32.xlu0 %v2084_v38, %s4706_s2 }
 0x47d   : > { %v4547_v20 = vpop.permute.xlu1 %4546 }
 0x47e   : > { %v4549_v39 = vunpack.i.h.bf16 %v4547_v20  ;;  %v4548_v28 = vunpack.i.l.bf16 %v4547_v20 }
 0x480   : > { %v1819_v12 = vsel %vm6230_vm7, %v4548_v28, %v4549_v39  ;;  %v1826_v43 = vmax.f32 %v1803_v7, %v4549_v39 }
 0x481   : > { %v4552_v59 = vpop.permute.xlu0 %4551  ;;  %v1825_v44 = vmax.f32 %v1802_v31, %v1819_v12  ;;  %v5416_v24 = vpop.permute.xlu1 %2154 }
 0x482   : > { %v4554_v25 = vunpack.i.h.bf16 %v4552_v59  ;;  %v4553_v40 = vunpack.i.l.bf16 %v4552_v59  ;;  %vm2156_vm6 = vcmp.ne.s16.totalorder %v5416_v24, 0 }
 0x484   : > { %v1828_v41 = vmax.f32 %v1805_v34, %v4554_v25  ;;  %v1820_v62 = vsel %vm6231_vm5, %v4553_v40, %v4554_v25  ;;  %vm2042_vm5 = vcmask 973824  }
 0x485   : > { %v1827_v10 = vmax.f32 %v1804_v36, %v1820_v62  ;;  %v5418_v47 = vpop.permute.xlu0 %2137  ;;  %v2111_v58 = vpop.permute.xlu1 %2110  ;;  %v4615_v36 = vld [vmem:[%s6234_s6 + $0x4] ss:$8 sps:$4 sm:$0xff]  }
 0x486   : > { %v1830_v45 = vpack.c.bf16 %v1828_v41, %v1826_v43  ;;  %v2112_v0 = vrot.slane %v2111_v58, 4  ;;  %vm2139_vm8 = vcmp.ne.s16.totalorder %v5418_v47, 0  ;;  %4374 = vmatprep.mubr.msk.bf16.mxu1 %vm889_vm0, %v4615_v36 }
 0x487   : > { %v1829_v46 = vpack.c.bf16 %v1827_v10, %v1825_v44 }
 0x488   : > { %4360 = vmatprep.mubr.msk.bf16.mxu0 %vm6232_vm11, %v1830_v45  ;;  %v5435_v23 = vsel %vm6174_vm13, %v2112_v0, %v2111_v58 }
 0x489   : > { %1994 = vmatmul.mubr.bf16.vlgmr.msra.gmra.mxu0 %v1829_v46  ;;  %v2086_v5 = vpop.permute.xlu0 %2085  ;;  %vm2114_vm1 = vcmp.ne.s16.totalorder %v5435_v23, 0  ;;  %v2040_v26 = vpop.permute.xlu1 %2039 }
 0x48a   : > { %v2087_v29 = vrot.slane %v2086_v5, 4  ;;  %v2041_v3 = vrot.slane %v2040_v26, 4 }
 0x48c   : > { %v5448_v51 = vsel %vm2088_vm2, %v2087_v29, %v2086_v5  ;;  %v5463_v30 = vsel %vm2042_vm5, %v2041_v3, %v2040_v26  ;;  %vm2072_vm2 = vcmask 64512   ;;  %vm2055_vm5 = vcmask 72704   ;;  %v4617_v26 = vld [vmem:[%s6234_s6] ss:$8 sps:$4 sm:$0xff]   ;;  %s4714_s6 = smov 5  }
 0x48d   : > { %vm2090_vm7 = vcmp.ne.s16.totalorder %v5448_v51, 0  ;;  %vm2044_vm11 = vcmp.ne.s16.totalorder %v5463_v30, 0  ;;  %v5470_v32 = vpop.permute.xlu0 %2183  ;;  %v2505_v51 = vld [vmem:[%s6125_s9] sm:$0xff]  ;;  %v2506_v30 = vld [vmem:[%s6125_s9 + $0x8] sm:$0xff] }
 0x48e   : > { %vm2185_vm14 = vcmp.ne.s16.totalorder %v5470_v32, 0 }
 0x549   : > { %v1995_v48 = vpop.f32.mrf.mxu0 }
 0x54a   : > { %v4462_v52 = vpack.c.bf16 %v1995_v48, %v1995_v48 }
 0x54b   : > { %v1997_v9 = vpop.f32.mrf.mxu0 }
 0x54c   : > { %2017 = vst.msk [vmem:[#allocation2 + $0x4] sm:$0xf] %vm2016_vm3, %v4462_v52 }
 0x54d   : > { %v1998_v11 = vpop.f32.mrf.mxu0 }
 0x54e   : > { %v4463_v54 = vpack.c.bf16 %v1998_v11, %v1998_v11 }
 0x54f   : > { %v2000_v55 = vpop.f32.mrf.mxu0 }
 0x550   : > { %2018 = vst.msk [vmem:[#allocation2 + $0x14] sm:$0xf] %vm2016_vm3, %v4463_v54 }
 0x553   : > { %v2131_v21 = vld [vmem:[#allocation2 + $0x4] sm:$0xf] }
 0x554   : > { %v2169_v56 = vld [vmem:[#allocation2 + $0x4] sm:$0xf]  ;;  %2133 = vst.msk [vmem:[#allocation4 + $0x40] sm:$0xf] %vm2016_vm3, %v2131_v21 }
 0x555   : > { %v2152_v57 = vld [vmem:[#allocation2 + $0x4] sm:$0xf]  ;;  %2173 = vrot.lane.b32.xlu1 %v2169_v56, %s6166_s4 }
 0x556   : > { %v2135_v60 = vld [vmem:[#allocation2 + $0x4] sm:$0xf]  ;;  %v2157_v8 = vsel %vm2156_vm6, %v2152_v57, 0 }
 0x557   : > { %v2108_v61 = vld [vmem:[#allocation2] sm:$0xff]  ;;  %v2132_v14 = vld [vmem:[#allocation2 + $0x14] sm:$0xf]  ;;  %v2140_v4 = vsel %vm2139_vm8, %v2135_v60, 0 }
 0x558   : > { %v2181_v53 = vld [vmem:[#allocation2 + $0x4] sm:$0xf]  ;;  %2735 = vst.msk [vmem:[#allocation2] sm:$0xf] %vm2734_vm4, %v4693_v1  ;;  %v2170_v17 = vld [vmem:[#allocation2 + $0x14] sm:$0xf] }
 0x559   : > { %2738 = vst.msk [vmem:[#allocation2 + $0x4] sm:$0xf] %vm2737_vm12, %v4693_v1  ;;  %v2153_v18 = vld [vmem:[#allocation2 + $0x14] sm:$0xf]  ;;  %2161 = vrot.lane.b32.xlu1 %v2157_v8, %s6164_s26  ;;  %2175 = vrot.lane.b32.xlu0 %v2170_v17, %s6166_s4  ;;  %v2115_v27 = vsel %vm2114_vm1, %v2108_v61, 0  ;;  %v2091_v7 = vsel %vm2090_vm7, %v2108_v61, 0 }
 0x55a   : > { %2134 = vst.msk [vmem:[#allocation4 + $0x48] sm:$0xf] %vm2016_vm3, %v2132_v14  ;;  %v2136_v19 = vld [vmem:[#allocation2 + $0x14] sm:$0xf]  ;;  %v2158_v6 = vsel %vm2156_vm6, %v2153_v18, 0  ;;  %v2045_v15 = vsel %vm2044_vm11, %v2108_v61, 0 }
 0x55b   : > { %v2109_v22 = vld [vmem:[#allocation2 + $0x10] sm:$0xff]  ;;  %v2141_v50 = vsel %vm2139_vm8, %v2136_v19, 0  ;;  %v2186_v33 = vsel %vm2185_vm14, %v2181_v53, 0  ;;  %s6233_s4 = sld [smem:[#allocation12_spill]] }
 0x55c   : > { %v2182_v49 = vld [vmem:[#allocation2 + $0x14] sm:$0xf]  ;;  %2736 = vst.msk [vmem:[#allocation2 + $0x10] sm:$0xf] %vm2734_vm4, %v4693_v1  ;;  %v2116_v13 = vsel %vm2114_vm1, %v2109_v22, 0  ;;  %v2092_v31 = vsel %vm2090_vm7, %v2109_v22, 0 }
 0x55d   : > { %2739 = vst.msk [vmem:[#allocation2 + $0x14] sm:$0xf] %vm2737_vm12, %v4693_v1  ;;  %2144 = vrot.lane.b32.xlu1 %v2140_v4, %s6229_s1  ;;  %2163 = vrot.lane.b32.xlu0 %v2158_v6, %s6164_s26  ;;  %v2046_v35 = vsel %vm2044_vm11, %v2109_v22, 0  ;;  %v2187_v42 = vsel %vm2185_vm14, %v2182_v49, 0  ;;  %s6237_s26 = smov 7  }
 0x561   : > { %2119 = vrot.lane.b32.xlu1 %v2115_v27, %s6228_s27  ;;  %2146 = vrot.lane.b32.xlu0 %v2141_v50, %s6229_s1  ;;  %v2218_v34 = vld [vmem:[%s6233_s4] sm:$0xff]  ;;  %v2219_v63 = vld [vmem:[%s6233_s4 + $0x8] sm:$0xff]  ;;  %s6244_s4 = smov 4  }
 0x562   : > { %v4609_v60 = vld [vmem:[#allocation4 + $0x40] ss:$8 sps:$4 sm:$0xff]  }
 0x565   : > { %2095 = vrot.lane.b32.xlu1 %v2091_v7, %s6162_s28  ;;  %2121 = vrot.lane.b32.xlu0 %v2116_v13, %s6228_s27 }
 0x569   : > { %2066 = vrot.lane.b32.xlu1 %v2108_v61, %s6168_s3  ;;  %2097 = vrot.lane.b32.xlu0 %v2092_v31, %s6162_s28  ;;  %s6236_s28 = smov 121  }
 0x56d   : > { %2049 = vrot.lane.b32.xlu1 %v2045_v15, %s4706_s2  ;;  %2068 = vrot.lane.b32.xlu0 %v2109_v22, %s6168_s3  ;;  %s6238_s3 = smov 8  }
 0x571   : > { %2190 = vrot.lane.b32.xlu1 %v2186_v33, %s4705_s25  ;;  %2051 = vrot.lane.b32.xlu0 %v2046_v35, %s4706_s2 }
 0x575   : > { %2222 = vperm.xlu1 %4534, %v2218_v34   ;;  %2192 = vrot.lane.b32.xlu0 %v2187_v42, %s4705_s25 }
 0x579   : > { %2227 = vperm.xlu0 %4533, %v2219_v63  }
 0x5c7   : > { %v2174_v37 = vpop.permute.xlu1 %2173 }
 0x5c8   : > { %2179 = vst.msk [vmem:[#allocation4 + $0x70] sm:$0xf] %vm2016_vm3, %v2174_v37 }
 0x5cb   : > { %v2162_v38 = vpop.permute.xlu1 %2161  ;;  %v2176_v20 = vpop.permute.xlu0 %2175 }
 0x5cc   : > { %2167 = vst.msk [vmem:[#allocation4 + $0x60] sm:$0xf] %vm2016_vm3, %v2162_v38  ;;  %2180 = vst.msk [vmem:[#allocation4 + $0x78] sm:$0xf] %vm2016_vm3, %v2176_v20 }
 0x5cf   : > { %v2145_v39 = vpop.permute.xlu1 %2144  ;;  %v2164_v28 = vpop.permute.xlu0 %2163 }
 0x5d0   : > { %2150 = vst.msk [vmem:[#allocation4 + $0x50] sm:$0xf] %vm2016_vm3, %v2145_v39  ;;  %2168 = vst.msk [vmem:[#allocation4 + $0x68] sm:$0xf] %vm2016_vm3, %v2164_v28 }
 0x5d3   : > { %v2120_v59 = vpop.permute.xlu1 %2119  ;;  %v2147_v12 = vpop.permute.xlu0 %2146  ;;  %v4606_v25 = vld [vmem:[#allocation4 + $0x70] ss:$8 sps:$4 sm:$0xff]  }
 0x5d4   : > { %v2123_v40 = vrot.slane %v2120_v59, 4  ;;  %2151 = vst.msk [vmem:[#allocation4 + $0x58] sm:$0xf] %vm2016_vm3, %v2147_v12  ;;  %2297 = vmatpush1.bf16.msra.mxu1 %v4606_v25 }
 0x5d5   : > { %2298 = vmatprep.subr.bf16.mxu1 %v4693_v1 }
 0x5d6   : > { %v2125_v43 = vsel %vm975_vm10, %v2120_v59, %v2123_v40 }
 0x5d7   : > { %2129 = vst.msk [vmem:[#allocation4 + $0x30] sm:$0xf] %vm2016_vm3, %v2125_v43  ;;  %v2096_v41 = vpop.permute.xlu1 %2095  ;;  %v2122_v62 = vpop.permute.xlu0 %2121  ;;  %v4607_v44 = vld [vmem:[#allocation4 + $0x60] ss:$8 sps:$4 sm:$0xff]  }
 0x5d8   : > { %v2099_v10 = vrot.slane %v2096_v41, 4  ;;  %v2124_v45 = vrot.slane %v2122_v62, 4  ;;  %2299 = vmatpush1.bf16.msra.mxu1 %v4607_v44 }
 0x5d9   : > { %2300 = vmatprep.subr.bf16.mxu1 %v4693_v1 }
 0x5da   : > { %v2102_v46 = vsel %vm2101_vm9, %v2096_v41, %v2099_v10  ;;  %v2126_v48 = vsel %vm975_vm10, %v2122_v62, %v2124_v45 }
 0x5db   : > { %2106 = vst.msk [vmem:[#allocation4 + $0x20] sm:$0xf] %vm2016_vm3, %v2102_v46  ;;  %2130 = vst.msk [vmem:[#allocation4 + $0x38] sm:$0xf] %vm2016_vm3, %v2126_v48  ;;  %v2067_v52 = vpop.permute.xlu1 %2066  ;;  %v2098_v9 = vpop.permute.xlu0 %2097  ;;  %v4608_v11 = vld [vmem:[#allocation4 + $0x50] ss:$8 sps:$4 sm:$0xff]  }
 0x5dc   : > { %v2070_v54 = vrot.slane %v2067_v52, 4  ;;  %v2100_v55 = vrot.slane %v2098_v9, 4  ;;  %2301 = vmatpush1.bf16.msra.mxu1 %v4608_v11 }
 0x5dd   : > { %2302 = vmatprep.subr.bf16.mxu1 %v4693_v1 }
 0x5de   : > { %v2073_v21 = vsel %vm2072_vm2, %v2067_v52, %v2070_v54  ;;  %v2103_v56 = vsel %vm2101_vm9, %v2098_v9, %v2100_v55 }
 0x5df   : > { %2077 = vst.msk [vmem:[#allocation4 + $0x10] sm:$0xf] %vm2016_vm3, %v2073_v21  ;;  %2107 = vst.msk [vmem:[#allocation4 + $0x28] sm:$0xf] %vm2016_vm3, %v2103_v56  ;;  %v2050_v57 = vpop.permute.xlu1 %2049  ;;  %v2069_v58 = vpop.permute.xlu0 %2068 }
 0x5e0   : > { %v2053_v61 = vrot.slane %v2050_v57, 4  ;;  %v2071_v53 = vrot.slane %v2069_v58, 4  ;;  %2303 = vmatpush1.bf16.msra.mxu1 %v4609_v60 }
 0x5e1   : > { %2304 = vmatprep.subr.bf16.mxu1 %v4693_v1 }
 0x5e2   : > { %v2056_v0 = vsel %vm2055_vm5, %v2050_v57, %v2053_v61  ;;  %v2074_v5 = vsel %vm2072_vm2, %v2069_v58, %v2071_v53  ;;  %v4610_v8 = vld [vmem:[#allocation4 + $0x30] ss:$8 sps:$4 sm:$0xff]  }
 0x5e3   : > { %2060 = vst.msk [vmem:[#allocation4] sm:$0xf] %vm2016_vm3, %v2056_v0  ;;  %2078 = vst.msk [vmem:[#allocation4 + $0x18] sm:$0xf] %vm2016_vm3, %v2074_v5  ;;  %v2191_v14 = vpop.permute.xlu1 %2190  ;;  %v2052_v17 = vpop.permute.xlu0 %2051 }
 0x5e4   : > { %2196 = vst.msk [vmem:[#allocation4 + $0x80] sm:$0xf] %vm2016_vm3, %v2191_v14  ;;  %v2054_v18 = vrot.slane %v2052_v17, 4  ;;  %2305 = vmatpush1.bf16.msra.mxu1 %v4610_v8 }
 0x5e5   : > { %2306 = vmatprep.subr.bf16.mxu1 %v4693_v1 }
 0x5e6   : > { %v2057_v19 = vsel %vm2055_vm5, %v2052_v17, %v2054_v18  ;;  %v4611_v22 = vld [vmem:[#allocation4 + $0x20] ss:$8 sps:$4 sm:$0xff]  }
 0x5e7   : > { %2061 = vst.msk [vmem:[#allocation4 + $0x8] sm:$0xf] %vm2016_vm3, %v2057_v19  ;;  %v2193_v49 = vpop.permute.xlu0 %2192 }
 0x5e8   : > { %2197 = vst.msk [vmem:[#allocation4 + $0x88] sm:$0xf] %vm2016_vm3, %v2193_v49  ;;  %2307 = vmatpush1.bf16.msra.mxu1 %v4611_v22 }
 0x5e9   : > { %2308 = vmatprep.subr.bf16.mxu1 %v4693_v1 }
 0x5ea   : > { %v4612_v29 = vld [vmem:[#allocation4 + $0x10] ss:$8 sps:$4 sm:$0xff]  }
 0x5ec   : > { %2309 = vmatpush1.bf16.msra.mxu1 %v4612_v29 }
 0x5ed   : > { %2310 = vmatprep.subr.bf16.mxu1 %v4693_v1 }
 0x5ee   : > { %v4613_v4 = vld [vmem:[#allocation4] ss:$8 sps:$4 sm:$0xff]  }
 0x5ef   : > { %v4614_v6 = vld [vmem:[#allocation4 + $0x80] ss:$8 sps:$4 sm:$0xff]  }
 0x5f0   : > { %2311 = vmatpush1.bf16.msra.mxu1 %v4613_v4  ;;  %v2223_v27 = vpop.permute.xlu1 %2222 }
 0x5f1   : > { %2326 = vmatprep.subr.bf16.mxu1 %v4693_v1 }
 0x5f4   : > { %2327 = vmatpush2.bf16.msra.mxu1 %v4614_v6  ;;  %v2228_v31 = vpop.permute.xlu0 %2227 }
 0x5f5   : > { %2583 = vmatprep.subr.bf16.mxu1 %v4693_v1 }
 0x5f7   : > { %2329 = vmatmul.mubr.bf16.vlgmr.msra.gmra.mxu1 %v4617_v26 }
 0x6b7   : > { %v2330_v50 = vpop.f32.mrf.mxu1 }
 0x6b8   : > { %v2331_v3 = vadd.f32 %v2330_v50, %v2223_v27 }
 0x6b9   : > { %v2332_v7 = vpop.f32.mrf.mxu1 }
 0x6ba   : > { %vm2337_vm13 = vcmp.gt.f32.partialorder %v2331_v3, 0.0  ;;  %v2339_v13 = vmul.f32 0.01, %v2331_v3 }
 0x6bb   : > { %v2333_v15 = vpop.f32.mrf.mxu1 }
 0x6bc   : > { %v2341_v33 = vsel %vm2337_vm13, %v2331_v3, %v2339_v13  ;;  %v2334_v35 = vadd.f32 %v2333_v15, %v2228_v31 }
 0x6bd   : > { %v4464_v34 = vpack.c.bf16 %v2341_v33, %v2341_v33  ;;  %v2335_v42 = vpop.f32.mrf.mxu1 }
 0x6be   : > { %vm2338_vm15 = vcmp.gt.f32.partialorder %v2334_v35, 0.0  ;;  %v2340_v36 = vmul.f32 0.01, %v2334_v35 }
 0x6bf   : > { %2355 = vst.msk [vmem:[#allocation3 + $0x4] sm:$0xf] %vm2016_vm3, %v4464_v34 }
 0x6c0   : > { %v2342_v63 = vsel %vm2338_vm15, %v2334_v35, %v2340_v36  ;;  %vm2630_vm15 = vcmask 523264  }
 0x6c1   : > { %v4465_v37 = vpack.c.bf16 %v2342_v63, %v2342_v63 }
 0x6c3   : > { %2356 = vst.msk [vmem:[#allocation3 + $0x14] sm:$0xf] %vm2016_vm3, %v4465_v37 }
 0x6c6   : > { %v2459_v38 = vld [vmem:[#allocation3 + $0x4] sm:$0xf] }
 0x6c7   : > { %2463 = vrot.lane.b32.xlu1 %v2459_v38, %s6235_s0  ;;  %v2445_v20 = vld [vmem:[#allocation3 + $0x4] sm:$0xf] }
 0x6c8   : > { %v2409_v39 = vld [vmem:[#allocation3] sm:$0xff]  ;;  %v2447_v25 = vsel %vm2156_vm6, %v2445_v20, 0 }
 0x6c9   : > { %v2431_v28 = vld [vmem:[#allocation3 + $0x4] sm:$0xf]  ;;  %3075 = vst.msk [vmem:[#allocation3] sm:$0xf] %vm2734_vm4, %v4693_v1  ;;  %v2411_v48 = vsel %vm2114_vm1, %v2409_v39, 0  ;;  %v2393_v9 = vsel %vm2090_vm7, %v2409_v39, 0 }
 0x6ca   : > { %v2471_v59 = vld [vmem:[#allocation3 + $0x4] sm:$0xf]  ;;  %v2460_v40 = vld [vmem:[#allocation3 + $0x14] sm:$0xf]  ;;  %v2433_v45 = vsel %vm2139_vm8, %v2431_v28, 0  ;;  %v2359_v47 = vsel %vm2044_vm11, %v2409_v39, 0 }
 0x6cb   : > { %v2427_v12 = vld [vmem:[#allocation3 + $0x4] sm:$0xf]  ;;  %2451 = vrot.lane.b32.xlu1 %v2447_v25, %s6236_s28  ;;  %2465 = vrot.lane.b32.xlu0 %v2460_v40, %s6235_s0  ;;  %v2446_v43 = vld [vmem:[#allocation3 + $0x14] sm:$0xf]  ;;  %v2473_v23 = vsel %vm2185_vm14, %v2471_v59, 0 }
 0x6cc   : > { %2429 = vst.msk [vmem:[#allocation4 + $0x40] sm:$0xf] %vm2016_vm3, %v2427_v12  ;;  %v2410_v41 = vld [vmem:[#allocation3 + $0x10] sm:$0xff]  ;;  %v2448_v46 = vsel %vm2156_vm6, %v2446_v43, 0 }
 0x6cd   : > { %3077 = vst.msk [vmem:[#allocation3 + $0x4] sm:$0xf] %vm2737_vm12, %v4693_v1  ;;  %v2432_v62 = vld [vmem:[#allocation3 + $0x14] sm:$0xf]  ;;  %v2412_v24 = vsel %vm2114_vm1, %v2410_v41, 0  ;;  %v2394_v11 = vsel %vm2090_vm7, %v2410_v41, 0 }
 0x6ce   : > { %3076 = vst.msk [vmem:[#allocation3 + $0x10] sm:$0xf] %vm2734_vm4, %v4693_v1  ;;  %v2472_v44 = vld [vmem:[#allocation3 + $0x14] sm:$0xf]  ;;  %v2434_v52 = vsel %vm2139_vm8, %v2432_v62, 0  ;;  %v2360_v54 = vsel %vm2044_vm11, %v2410_v41, 0 }
 0x6cf   : > { %v2428_v10 = vld [vmem:[#allocation3 + $0x14] sm:$0xf]  ;;  %2437 = vrot.lane.b32.xlu1 %v2433_v45, %s6229_s1  ;;  %2453 = vrot.lane.b32.xlu0 %v2448_v46, %s6236_s28  ;;  %v2474_v55 = vsel %vm2185_vm14, %v2472_v44, 0  ;;  %vm6240_vm4 = vcmask 1043456   ;;  %s4712_s28 = smov 123   ;;  %vm2682_vm14 = vcmask 449536  }
 0x6d0   : > { %2430 = vst.msk [vmem:[#allocation4 + $0x48] sm:$0xf] %vm2016_vm3, %v2428_v10 }
 0x6d1   : > { %3078 = vst.msk [vmem:[#allocation3 + $0x14] sm:$0xf] %vm2737_vm12, %v4693_v1  ;;  %vm4710_vm12 = vmmov 0  }
 0x6d3   : > { %2415 = vrot.lane.b32.xlu1 %v2411_v48, %s6228_s27  ;;  %2439 = vrot.lane.b32.xlu0 %v2434_v52, %s6229_s1 }
 0x6d7   : > { %2397 = vrot.lane.b32.xlu1 %v2393_v9, %s6237_s26  ;;  %2417 = vrot.lane.b32.xlu0 %v2412_v24, %s6228_s27  ;;  %v4621_v15 = vld [vmem:[#allocation4 + $0x40] ss:$8 sps:$4 sm:$0xff]   ;;  %v4630_v9 = vld [vmem:[%s6126_s10 + $0x18] ss:$0 sps:$4 sm:$0xff]  }
 0x6db   : > { %2379 = vrot.lane.b32.xlu1 %v2409_v39, %s6238_s3  ;;  %2399 = vrot.lane.b32.xlu0 %v2394_v11, %s6237_s26  ;;  %v4709_v11 = vmov 0.0   ;;  %s6182_s26 = smov 125  }
 0x6dc   : > { %4481 = vmatprep.subr.bf16.mxu0 %v4709_v11  ;;  %4489 = vmatprep.mubr.msk.bf16.mxu0 %vm4710_vm12, %v4709_v11 }
 0x6df   : > { %2363 = vrot.lane.b32.xlu1 %v2359_v47, %s4706_s2  ;;  %2381 = vrot.lane.b32.xlu0 %v2410_v41, %s6238_s3  ;;  %s6239_s3 = sld [smem:[#allocation13_spill]] }
 0x6e3   : > { %2477 = vrot.lane.b32.xlu1 %v2473_v23, %s4705_s25  ;;  %2365 = vrot.lane.b32.xlu0 %v2360_v54, %s4706_s2  ;;  %s6243_s2 = smov 3  }
 0x6e5   : > { %v4627_v21 = vld [vmem:[%s6239_s3 + $0x4] ss:$8 sps:$4 sm:$0xff]   ;;  %v4629_v40 = vld [vmem:[%s6239_s3] ss:$8 sps:$4 sm:$0xff]   ;;  %s4717_s3 = smov 126  }
 0x6e6   : > { %4388 = vmatprep.mubr.msk.bf16.mxu1 %vm889_vm0, %v4627_v21 }
 0x6e7   : > { %2509 = vperm.xlu1 %4534, %v2505_v51   ;;  %2479 = vrot.lane.b32.xlu0 %v2474_v55, %s4705_s25  ;;  %s6178_s25 = smov 4  }
 0x6eb   : > { %2514 = vperm.xlu0 %4533, %v2506_v30   ;;  %v4631_v30 = vld [vmem:[%s6126_s10 + $0x10] sm:$0xff]  }
 0x739   : > { %v2464_v56 = vpop.permute.xlu1 %2463 }
 0x73a   : > { %2469 = vst.msk [vmem:[#allocation4 + $0x70] sm:$0xf] %vm2016_vm3, %v2464_v56  ;;  %v4632_v56 = vld [vmem:[%s6126_s10 + $0x8] sm:$0xff]  }
 0x73d   : > { %v2452_v57 = vpop.permute.xlu1 %2451  ;;  %v2466_v32 = vpop.permute.xlu0 %2465 }
 0x73e   : > { %2457 = vst.msk [vmem:[#allocation4 + $0x60] sm:$0xf] %vm2016_vm3, %v2452_v57  ;;  %2470 = vst.msk [vmem:[#allocation4 + $0x78] sm:$0xf] %vm2016_vm3, %v2466_v32  ;;  %v4633_v57 = vld [vmem:[%s6126_s10] sm:$0xff]  }
 0x741   : > { %v2438_v58 = vpop.permute.xlu1 %2437  ;;  %v2454_v60 = vpop.permute.xlu0 %2453 }
 0x742   : > { %2443 = vst.msk [vmem:[#allocation4 + $0x50] sm:$0xf] %vm2016_vm3, %v2438_v58  ;;  %2458 = vst.msk [vmem:[#allocation4 + $0x68] sm:$0xf] %vm2016_vm3, %v2454_v60  ;;  %v2755_v58 = vand.u32 3, %v4856_v2 }
 0x744   : > { %vm2763_vm8 = vcmp.ne.s32.totalorder %v2755_v58, 0  ;;  %vm2764_vm1 = vcmp.ne.s32.totalorder %v2755_v58, 3 }
 0x745   : > { %v2416_v61 = vpop.permute.xlu1 %2415  ;;  %v2440_v53 = vpop.permute.xlu0 %2439  ;;  %v4618_v0 = vld [vmem:[#allocation4 + $0x70] ss:$8 sps:$4 sm:$0xff]   ;;  %vm2769_vm7 = vmpackc.low %vm2763_vm8, %vm2763_vm8 }
 0x746   : > { %v2419_v5 = vrot.slane %v2416_v61, 4  ;;  %2444 = vst.msk [vmem:[#allocation4 + $0x58] sm:$0xf] %vm2016_vm3, %v2440_v53  ;;  %2584 = vmatpush1.bf16.msra.mxu1 %v4618_v0  ;;  %vm2815_vm11 = vmpackc.low %vm2764_vm1, %vm2764_vm1 }
 0x747   : > { %2585 = vmatprep.subr.bf16.mxu1 %v4693_v1 }
 0x748   : > { %v2421_v8 = vsel %vm975_vm10, %v2416_v61, %v2419_v5  ;;  %v2770_v5 = vsel %vm2769_vm7, 65537, %v4693_v1  ;;  %vm2833_vm7 = vcmask 23552  }
 0x749   : > { %2425 = vst.msk [vmem:[#allocation4 + $0x30] sm:$0xf] %vm2016_vm3, %v2421_v8  ;;  %v2398_v14 = vpop.permute.xlu1 %2397  ;;  %v2418_v17 = vpop.permute.xlu0 %2417  ;;  %v4619_v18 = vld [vmem:[#allocation4 + $0x60] ss:$8 sps:$4 sm:$0xff]  }
 0x74a   : > { %v2401_v19 = vrot.slane %v2398_v14, 4  ;;  %v2420_v22 = vrot.slane %v2418_v17, 4  ;;  %2586 = vmatpush1.bf16.msra.mxu1 %v4619_v18 }
 0x74b   : > { %2587 = vmatprep.subr.bf16.mxu1 %v4693_v1 }
 0x74c   : > { %v2403_v49 = vsel %vm2101_vm9, %v2398_v14, %v2401_v19  ;;  %v2422_v29 = vsel %vm975_vm10, %v2418_v17, %v2420_v22  ;;  %v2816_v14 = vsel %vm2815_vm11, 65537, %v4693_v1  ;;  %vm2804_vm11 = vcmask 31744  }
 0x74d   : > { %2407 = vst.msk [vmem:[#allocation4 + $0x20] sm:$0xf] %vm2016_vm3, %v2403_v49  ;;  %2426 = vst.msk [vmem:[#allocation4 + $0x38] sm:$0xf] %vm2016_vm3, %v2422_v29  ;;  %v2380_v4 = vpop.permute.xlu1 %2379  ;;  %v2400_v6 = vpop.permute.xlu0 %2399  ;;  %v4620_v26 = vld [vmem:[#allocation4 + $0x50] ss:$8 sps:$4 sm:$0xff]  }
 0x74e   : > { %v2383_v27 = vrot.slane %v2380_v4, 4  ;;  %v2402_v50 = vrot.slane %v2400_v6, 4  ;;  %2588 = vmatpush1.bf16.msra.mxu1 %v4620_v26 }
 0x74f   : > { %2589 = vmatprep.subr.bf16.mxu1 %v4693_v1 }
 0x750   : > { %v2385_v3 = vsel %vm2072_vm2, %v2380_v4, %v2383_v27  ;;  %v2404_v7 = vsel %vm2101_vm9, %v2400_v6, %v2402_v50  ;;  %vm2748_vm9 = vcmask 125952  }
 0x751   : > { %2389 = vst.msk [vmem:[#allocation4 + $0x10] sm:$0xf] %vm2016_vm3, %v2385_v3  ;;  %2408 = vst.msk [vmem:[#allocation4 + $0x28] sm:$0xf] %vm2016_vm3, %v2404_v7  ;;  %v2364_v13 = vpop.permute.xlu1 %2363  ;;  %v2382_v31 = vpop.permute.xlu0 %2381 }
 0x752   : > { %v2367_v33 = vrot.slane %v2364_v13, 4  ;;  %v2384_v35 = vrot.slane %v2382_v31, 4  ;;  %2590 = vmatpush1.bf16.msra.mxu1 %v4621_v15 }
 0x753   : > { %2591 = vmatprep.subr.bf16.mxu1 %v4693_v1 }
 0x754   : > { %v2369_v34 = vsel %vm2055_vm5, %v2364_v13, %v2367_v33  ;;  %v2386_v42 = vsel %vm2072_vm2, %v2382_v31, %v2384_v35  ;;  %v4622_v36 = vld [vmem:[#allocation4 + $0x30] ss:$8 sps:$4 sm:$0xff]  }
 0x755   : > { %2373 = vst.msk [vmem:[#allocation4] sm:$0xf] %vm2016_vm3, %v2369_v34  ;;  %2390 = vst.msk [vmem:[#allocation4 + $0x18] sm:$0xf] %vm2016_vm3, %v2386_v42  ;;  %v2478_v63 = vpop.permute.xlu1 %2477  ;;  %v2366_v37 = vpop.permute.xlu0 %2365 }
 0x756   : > { %2483 = vst.msk [vmem:[#allocation4 + $0x80] sm:$0xf] %vm2016_vm3, %v2478_v63  ;;  %v2368_v38 = vrot.slane %v2366_v37, 4  ;;  %2592 = vmatpush1.bf16.msra.mxu1 %v4622_v36 }
 0x757   : > { %2593 = vmatprep.subr.bf16.mxu1 %v4693_v1 }
 0x758   : > { %v2370_v20 = vsel %vm2055_vm5, %v2366_v37, %v2368_v38  ;;  %v4623_v39 = vld [vmem:[#allocation4 + $0x20] ss:$8 sps:$4 sm:$0xff]  }
 0x759   : > { %2374 = vst.msk [vmem:[#allocation4 + $0x8] sm:$0xf] %vm2016_vm3, %v2370_v20  ;;  %v2480_v28 = vpop.permute.xlu0 %2479 }
 0x75a   : > { %2484 = vst.msk [vmem:[#allocation4 + $0x88] sm:$0xf] %vm2016_vm3, %v2480_v28  ;;  %2594 = vmatpush1.bf16.msra.mxu1 %v4623_v39  ;;  %vm2686_vm3 = vcmask 1042432  }
 0x75b   : > { %2595 = vmatprep.subr.bf16.mxu1 %v4693_v1  ;;  %v2688_v47 = vsel %vm2686_vm3, 4294967295, %v4702_v16 }
 0x75c   : > { %v4624_v59 = vld [vmem:[#allocation4 + $0x10] ss:$8 sps:$4 sm:$0xff]   ;;  %v2689_v54 = vsel %vm6240_vm4, %v2688_v47, 0  ;;  %vm2774_vm4 = vcmask 1006592  }
 0x75d   : > { %v2691_v51 = vand.u32 %v4630_v9, %v2689_v54 }
 0x75e   : > { %2596 = vmatpush1.bf16.msra.mxu1 %v4624_v59 }
 0x75f   : > { %2597 = vmatprep.subr.bf16.mxu1 %v4693_v1  ;;  %4482 = vmatpush3.bf16.msra.mxu0 %v2691_v51 }
 0x760   : > { %v4625_v12 = vld [vmem:[#allocation4] ss:$8 sps:$4 sm:$0xff]   ;;  %4483 = vmatprep.subr.bf16.mxu0 %v4709_v11 }
 0x761   : > { %v4626_v25 = vld [vmem:[#allocation4 + $0x80] ss:$8 sps:$4 sm:$0xff]  }
 0x762   : > { %2598 = vmatpush1.bf16.msra.mxu1 %v4625_v12  ;;  %v2510_v43 = vpop.permute.xlu1 %2509 }
 0x763   : > { %2613 = vmatprep.subr.bf16.mxu1 %v4693_v1  ;;  %4484 = vmatpush3.bf16.msra.mxu0 %v4631_v30 }
 0x764   : > { %4485 = vmatprep.subr.bf16.mxu0 %v4709_v11 }
 0x766   : > { %2614 = vmatpush2.bf16.msra.mxu1 %v4626_v25  ;;  %v2515_v45 = vpop.permute.xlu0 %2514 }
 0x767   : > { %3028 = vmatprep.subr.bf16.mxu1 %v4693_v1  ;;  %4486 = vmatpush3.bf16.msra.mxu0 %v4632_v56  ;;  %v4643_v56 = vld [vmem:[%s6127_s11 + $0x4] ss:$8 sps:$4 sm:$0xff]  }
 0x768   : > { %4487 = vmatprep.subr.bf16.mxu0 %v4709_v11 }
 0x769   : > { %2616 = vmatmul.mubr.bf16.vlgmr.msra.gmra.mxu1 %v4629_v40 }
 0x76a   : > { %4407 = vmatprep.mubr.msk.bf16.mxu1 %vm889_vm0, %v4643_v56 }
 0x76b   : > { %4488 = vmatpush3.bf16.msra.mxu0 %v4633_v57  ;;  %v2951_v57 = vld [vmem:[%s6128_s12 + $0x8] sm:$0xff] }
 0x76c   : > { %3315 = vmatprep.subr.bf16.mxu0 %v4693_v1 }
 0x829   : > { %v2617_v41 = vpop.f32.mrf.mxu1 }
 0x82a   : > { %v2618_v62 = vadd.f32 %v2617_v41, %v2510_v43 }
 0x82b   : > { %v2619_v44 = vpop.f32.mrf.mxu1 }
 0x82c   : > { %vm2624_vm13 = vcmp.gt.f32.partialorder %v2618_v62, 0.0  ;;  %v2626_v10 = vmul.f32 0.01, %v2618_v62 }
 0x82d   : > { %v2620_v46 = vpop.f32.mrf.mxu1 }
 0x82e   : > { %v2628_v48 = vsel %vm2624_vm13, %v2618_v62, %v2626_v10  ;;  %v2621_v52 = vadd.f32 %v2620_v46, %v2515_v45  ;;  %vm6241_vm13 = vcmask 1039360  }
 0x82f   : > { %2631 = vst.msk [vmem:[%s771_s8] sm:$0xff] %vm2630_vm15, %v2628_v48  ;;  %v2622_v24 = vpop.f32.mrf.mxu1 }
 0x830   : > { %vm2625_vm6 = vcmp.gt.f32.partialorder %v2621_v52, 0.0  ;;  %v2627_v23 = vmul.f32 0.01, %v2621_v52 }
 0x832   : > { %v2629_v55 = vsel %vm2625_vm6, %v2621_v52, %v2627_v23 }
 0x833   : > { %v4555_v21 = vpack.i.bf16 %v2629_v55, %v2628_v48  ;;  %2632 = vst.msk [vmem:[%s771_s8 + $0x8] sm:$0xff] %vm2630_vm15, %v2629_v55  ;;  %vm2820_vm15 = vcmask 1022976   ;;  %s776_s8 = scalar_lea.vmem %s6138_s22, %s5309_s30 }
 0x835   : > { %4556 = vrot.lane.b32.xlu1 %v4555_v21, %s6229_s1  ;;  %v2950_v21 = vld [vmem:[%s6128_s12] sm:$0xff] }
 0x839   : > { %2886 = vrot.lane.b32.xlu1 %v2770_v5, %s6180_s7 }
 0x83d   : > { %2842 = vrot.lane.b32.xlu1 %v2770_v5, %s6229_s1 }
 0x841   : > { %2771 = vrot.lane.b32.xlu1 %v2770_v5, %s4712_s28 }
 0x8a7   : > { %v4557_v32 = vpop.permute.xlu1 %4556 }
 0x8a8   : > { %v4559_v60 = vunpack.i.h.bf16 %v4557_v32  ;;  %v4558_v61 = vunpack.i.l.bf16 %v4557_v32 }
 0x8aa   : > { %v2642_v53 = vmax.f32 %v2629_v55, %v4559_v60  ;;  %v2641_v0 = vmax.f32 %v2628_v48, %v4558_v61 }
 0x8ab   : > { %v5669_v50 = vpop.permute.xlu1 %2886 }
 0x8ac   : > { %v4560_v8 = vpack.i.bf16 %v2642_v53, %v2641_v0  ;;  %vm2888_vm2 = vcmp.ne.s16.totalorder %v5669_v50, 0 }
 0x8ae   : > { %4561 = vrot.lane.b32.xlu0 %v4560_v8, %s6235_s0  ;;  %s6184_s0 = smov 124  }
 0x8af   : > { %v2843_v15 = vpop.permute.xlu1 %2842 }
 0x8b0   : > { %v2844_v35 = vrot.slane %v2843_v15, 4 }
 0x8b2   : > { %2869 = vrot.lane.b32.xlu0 %v2816_v14, %s6228_s27  ;;  %v5683_v20 = vsel %vm6241_vm13, %v2844_v35, %v2843_v15 }
 0x8b3   : > { %vm2846_vm3 = vcmp.ne.s16.totalorder %v5683_v20, 0  ;;  %v2772_v41 = vpop.permute.xlu1 %2771 }
 0x8b4   : > { %v2773_v45 = vrot.slane %v2772_v41, 4 }
 0x8b6   : > { %2817 = vrot.lane.b32.xlu0 %v2816_v14, %s6182_s26  ;;  %v5709_v52 = vsel %vm2774_vm4, %v2773_v45, %v2772_v41  ;;  %v4645_v45 = vld [vmem:[%s6127_s11] ss:$8 sps:$4 sm:$0xff]  }
 0x8b7   : > { %vm2776_vm8 = vcmp.ne.s16.totalorder %v5709_v52, 0  ;;  %v4655_v52 = vld [vmem:[%s6129_s13 + $0x4] ss:$8 sps:$4 sm:$0xff]  }
 0x8ba   : > { %2915 = vrot.lane.b32.xlu0 %v2816_v14, %s4714_s6 }
 0x920   : > { %v4562_v17 = vpop.permute.xlu0 %4561 }
 0x921   : > { %v4564_v18 = vunpack.i.h.bf16 %v4562_v17  ;;  %v4563_v19 = vunpack.i.l.bf16 %v4562_v17 }
 0x923   : > { %v2652_v22 = vmax.f32 %v2642_v53, %v4564_v18  ;;  %v2651_v49 = vmax.f32 %v2641_v0, %v4563_v19 }
 0x924   : > { %v5671_v13 = vpop.permute.xlu0 %2869 }
 0x925   : > { %v2653_v29 = vpack.c.bf16 %v2652_v22, %v2651_v49  ;;  %vm2871_vm5 = vcmp.ne.s16.totalorder %v5671_v13, 0 }
 0x927   : > { %4490 = vmatmul.mubr.msk.bf16.vlgmr.msra.gmra.mxu0 %vm2682_vm14, %v2653_v29  ;;  %vm2787_vm14 = vcmask 39936  }
 0x928   : > { %v2818_v42 = vpop.permute.xlu0 %2817  ;;  %4421 = vmatprep.mubr.msk.bf16.mxu0 %vm889_vm0, %v4655_v52 }
 0x929   : > { %v2819_v39 = vrot.slane %v2818_v42, 4 }
 0x92b   : > { %v5694_v43 = vsel %vm2820_vm15, %v2819_v39, %v2818_v42 }
 0x92c   : > { %vm2822_vm6 = vcmp.ne.s16.totalorder %v5694_v43, 0  ;;  %v5716_v24 = vpop.permute.xlu0 %2915 }
 0x92d   : > { %vm2917_vm1 = vcmp.ne.s16.totalorder %v5716_v24, 0 }
 0x9e7   : > { %v2727_v4 = vpop.f32.mrf.mxu0 }
 0x9e8   : > { %v4466_v6 = vpack.c.bf16 %v2727_v4, %v2727_v4 }
 0x9e9   : > { %v4491_v26 = vpop.f32.mrf.mxu0 }
 0x9ea   : > { %2749 = vst.msk [vmem:[#allocation2 + $0x4] sm:$0xf] %vm2748_vm9, %v4466_v6 }
 0x9eb   : > { %v2730_v27 = vpop.f32.mrf.mxu0 }
 0x9ec   : > { %v4467_v3 = vpack.c.bf16 %v2730_v27, %v2730_v27 }
 0x9ed   : > { %v4492_v7 = vpop.f32.mrf.mxu0 }
 0x9ee   : > { %2750 = vst.msk [vmem:[#allocation2 + $0x14] sm:$0xf] %vm2748_vm9, %v4467_v3 }
 0x9f1   : > { %v2901_v31 = vld [vmem:[#allocation2 + $0x4] sm:$0xf] }
 0x9f2   : > { %2905 = vrot.lane.b32.xlu1 %v2901_v31, %s6184_s0  ;;  %v2884_v33 = vld [vmem:[#allocation2 + $0x4] sm:$0xf] }
 0x9f3   : > { %v2863_v34 = vld [vmem:[#allocation2 + $0x4] sm:$0xf]  ;;  %v2889_v36 = vsel %vm2888_vm2, %v2884_v33, 0 }
 0x9f4   : > { %2865 = vst.msk [vmem:[#allocation4 + $0x40] sm:$0xf] %vm2748_vm9, %v2863_v34  ;;  %v2867_v37 = vld [vmem:[#allocation2 + $0x4] sm:$0xf] }
 0x9f5   : > { %v2902_v63 = vld [vmem:[#allocation2 + $0x14] sm:$0xf]  ;;  %v2872_v59 = vsel %vm2871_vm5, %v2867_v37, 0  ;;  %v2840_v25 = vld [vmem:[#allocation2] sm:$0xff] }
 0x9f6   : > { %2893 = vrot.lane.b32.xlu1 %v2889_v36, %s6182_s26  ;;  %2907 = vrot.lane.b32.xlu0 %v2902_v63, %s6184_s0  ;;  %v2885_v38 = vld [vmem:[#allocation2 + $0x14] sm:$0xf]  ;;  %v2847_v62 = vsel %vm2846_vm3, %v2840_v25, 0  ;;  %v2823_v46 = vsel %vm2822_vm6, %v2840_v25, 0  ;;  %v2777_v47 = vsel %vm2776_vm8, %v2840_v25, 0 }
 0x9f7   : > { %v2864_v28 = vld [vmem:[#allocation2 + $0x14] sm:$0xf]  ;;  %v2890_v12 = vsel %vm2888_vm2, %v2885_v38, 0  ;;  %v2913_v23 = vld [vmem:[#allocation2 + $0x4] sm:$0xf] }
 0x9f8   : > { %2866 = vst.msk [vmem:[#allocation4 + $0x48] sm:$0xf] %vm2748_vm9, %v2864_v28  ;;  %v2868_v40 = vld [vmem:[#allocation2 + $0x14] sm:$0xf]  ;;  %v2918_v54 = vsel %vm2917_vm1, %v2913_v23, 0 }
 0x9f9   : > { %v2873_v44 = vsel %vm2871_vm5, %v2868_v40, 0  ;;  %v2841_v10 = vld [vmem:[#allocation2 + $0x10] sm:$0xff] }
 0x9fa   : > { %2876 = vrot.lane.b32.xlu1 %v2872_v59, %s6229_s1  ;;  %2895 = vrot.lane.b32.xlu0 %v2890_v12, %s6182_s26  ;;  %v2848_v48 = vsel %vm2846_vm3, %v2841_v10, 0  ;;  %v2824_v9 = vsel %vm2822_vm6, %v2841_v10, 0  ;;  %v2778_v51 = vsel %vm2776_vm8, %v2841_v10, 0  ;;  %v2914_v55 = vld [vmem:[#allocation2 + $0x14] sm:$0xf] }
 0x9fb   : > { %v2919_v30 = vsel %vm2917_vm1, %v2914_v55, 0 }
 0x9fe   : > { %2851 = vrot.lane.b32.xlu1 %v2847_v62, %s6228_s27  ;;  %2878 = vrot.lane.b32.xlu0 %v2873_v44, %s6229_s1 }
 0x9ff   : > { %v4637_v42 = vld [vmem:[#allocation4 + $0x40] ss:$8 sps:$4 sm:$0xff]  }
 0xa02   : > { %2827 = vrot.lane.b32.xlu1 %v2823_v46, %s6180_s7  ;;  %2853 = vrot.lane.b32.xlu0 %v2848_v48, %s6228_s27 }
 0xa06   : > { %2798 = vrot.lane.b32.xlu1 %v2840_v25, %s6178_s25  ;;  %2829 = vrot.lane.b32.xlu0 %v2824_v9, %s6180_s7  ;;  %s786_s7 = scalar_lea.vmem %s6140_s24, %s5309_s30 }
 0xa0a   : > { %2781 = vrot.lane.b32.xlu1 %v2777_v47, %s4714_s6  ;;  %2800 = vrot.lane.b32.xlu0 %v2841_v10, %s6178_s25  ;;  %s6242_s25 = smov 125  }
 0xa0e   : > { %2922 = vrot.lane.b32.xlu1 %v2918_v54, %s4712_s28  ;;  %2783 = vrot.lane.b32.xlu0 %v2778_v51, %s4714_s6 }
 0xa12   : > { %2954 = vperm.xlu1 %4534, %v2950_v21   ;;  %2924 = vrot.lane.b32.xlu0 %v2919_v30, %s4712_s28 }
 0xa16   : > { %2959 = vperm.xlu0 %4533, %v2951_v57  }
 0xa64   : > { %v2906_v32 = vpop.permute.xlu1 %2905 }
 0xa65   : > { %2911 = vst.msk [vmem:[#allocation4 + $0x70] sm:$0xf] %vm2748_vm9, %v2906_v32 }
 0xa68   : > { %v2894_v58 = vpop.permute.xlu1 %2893  ;;  %v2908_v60 = vpop.permute.xlu0 %2907 }
 0xa69   : > { %2899 = vst.msk [vmem:[#allocation4 + $0x60] sm:$0xf] %vm2748_vm9, %v2894_v58  ;;  %2912 = vst.msk [vmem:[#allocation4 + $0x78] sm:$0xf] %vm2748_vm9, %v2908_v60 }
 0xa6c   : > { %v2877_v61 = vpop.permute.xlu1 %2876  ;;  %v2896_v53 = vpop.permute.xlu0 %2895 }
 0xa6d   : > { %2882 = vst.msk [vmem:[#allocation4 + $0x50] sm:$0xf] %vm2748_vm9, %v2877_v61  ;;  %2900 = vst.msk [vmem:[#allocation4 + $0x68] sm:$0xf] %vm2748_vm9, %v2896_v53 }
 0xa70   : > { %v2852_v0 = vpop.permute.xlu1 %2851  ;;  %v2879_v5 = vpop.permute.xlu0 %2878  ;;  %v4634_v8 = vld [vmem:[#allocation4 + $0x70] ss:$8 sps:$4 sm:$0xff]  }
 0xa71   : > { %v2855_v14 = vrot.slane %v2852_v0, 4  ;;  %2883 = vst.msk [vmem:[#allocation4 + $0x58] sm:$0xf] %vm2748_vm9, %v2879_v5  ;;  %3029 = vmatpush1.bf16.msra.mxu1 %v4634_v8 }
 0xa72   : > { %3030 = vmatprep.subr.bf16.mxu1 %v4693_v1 }
 0xa73   : > { %v2857_v17 = vsel %vm975_vm10, %v2852_v0, %v2855_v14 }
 0xa74   : > { %2861 = vst.msk [vmem:[#allocation4 + $0x30] sm:$0xf] %vm2748_vm9, %v2857_v17  ;;  %v2828_v18 = vpop.permute.xlu1 %2827  ;;  %v2854_v19 = vpop.permute.xlu0 %2853  ;;  %v4635_v22 = vld [vmem:[#allocation4 + $0x60] ss:$8 sps:$4 sm:$0xff]  }
 0xa75   : > { %v2831_v49 = vrot.slane %v2828_v18, 4  ;;  %v2856_v29 = vrot.slane %v2854_v19, 4  ;;  %3031 = vmatpush1.bf16.msra.mxu1 %v4635_v22 }
 0xa76   : > { %3032 = vmatprep.subr.bf16.mxu1 %v4693_v1 }
 0xa77   : > { %v2834_v4 = vsel %vm2833_vm7, %v2828_v18, %v2831_v49  ;;  %v2858_v6 = vsel %vm975_vm10, %v2854_v19, %v2856_v29 }
 0xa78   : > { %2838 = vst.msk [vmem:[#allocation4 + $0x20] sm:$0xf] %vm2748_vm9, %v2834_v4  ;;  %2862 = vst.msk [vmem:[#allocation4 + $0x38] sm:$0xf] %vm2748_vm9, %v2858_v6  ;;  %v2799_v26 = vpop.permute.xlu1 %2798  ;;  %v2830_v27 = vpop.permute.xlu0 %2829  ;;  %v4636_v3 = vld [vmem:[#allocation4 + $0x50] ss:$8 sps:$4 sm:$0xff]  }
 0xa79   : > { %v2802_v7 = vrot.slane %v2799_v26, 4  ;;  %v2832_v31 = vrot.slane %v2830_v27, 4  ;;  %3033 = vmatpush1.bf16.msra.mxu1 %v4636_v3 }
 0xa7a   : > { %3034 = vmatprep.subr.bf16.mxu1 %v4693_v1 }
 0xa7b   : > { %v2805_v15 = vsel %vm2804_vm11, %v2799_v26, %v2802_v7  ;;  %v2835_v33 = vsel %vm2833_vm7, %v2830_v27, %v2832_v31  ;;  %v3237_v7 = vld [vmem:[%s6130_s14] sm:$0xff] }
 0xa7c   : > { %2809 = vst.msk [vmem:[#allocation4 + $0x10] sm:$0xf] %vm2748_vm9, %v2805_v15  ;;  %2839 = vst.msk [vmem:[#allocation4 + $0x28] sm:$0xf] %vm2748_vm9, %v2835_v33  ;;  %v2782_v35 = vpop.permute.xlu1 %2781  ;;  %v2801_v34 = vpop.permute.xlu0 %2800  ;;  %v3238_v15 = vld [vmem:[%s6130_s14 + $0x8] sm:$0xff] }
 0xa7d   : > { %v2785_v36 = vrot.slane %v2782_v35, 4  ;;  %v2803_v63 = vrot.slane %v2801_v34, 4  ;;  %3035 = vmatpush1.bf16.msra.mxu1 %v4637_v42 }
 0xa7e   : > { %3036 = vmatprep.subr.bf16.mxu1 %v4693_v1 }
 0xa7f   : > { %v2788_v37 = vsel %vm2787_vm14, %v2782_v35, %v2785_v36  ;;  %v2806_v38 = vsel %vm2804_vm11, %v2801_v34, %v2803_v63  ;;  %v4638_v39 = vld [vmem:[#allocation4 + $0x30] ss:$8 sps:$4 sm:$0xff]  }
 0xa80   : > { %2792 = vst.msk [vmem:[#allocation4] sm:$0xf] %vm2748_vm9, %v2788_v37  ;;  %2810 = vst.msk [vmem:[#allocation4 + $0x18] sm:$0xf] %vm2748_vm9, %v2806_v38  ;;  %v2923_v28 = vpop.permute.xlu1 %2922  ;;  %v2784_v59 = vpop.permute.xlu0 %2783 }
 0xa81   : > { %2928 = vst.msk [vmem:[#allocation4 + $0x80] sm:$0xf] %vm2748_vm9, %v2923_v28  ;;  %v2786_v12 = vrot.slane %v2784_v59, 4  ;;  %3037 = vmatpush1.bf16.msra.mxu1 %v4638_v39 }
 0xa82   : > { %3038 = vmatprep.subr.bf16.mxu1 %v4693_v1 }
 0xa83   : > { %v2789_v25 = vsel %vm2787_vm14, %v2784_v59, %v2786_v12  ;;  %v4639_v40 = vld [vmem:[#allocation4 + $0x20] ss:$8 sps:$4 sm:$0xff]  }
 0xa84   : > { %2793 = vst.msk [vmem:[#allocation4 + $0x8] sm:$0xf] %vm2748_vm9, %v2789_v25  ;;  %v2925_v41 = vpop.permute.xlu0 %2924 }
 0xa85   : > { %2929 = vst.msk [vmem:[#allocation4 + $0x88] sm:$0xf] %vm2748_vm9, %v2925_v41  ;;  %3039 = vmatpush1.bf16.msra.mxu1 %v4639_v40 }
 0xa86   : > { %3040 = vmatprep.subr.bf16.mxu1 %v4693_v1 }
 0xa87   : > { %v4640_v62 = vld [vmem:[#allocation4 + $0x10] ss:$8 sps:$4 sm:$0xff]  }
 0xa89   : > { %3041 = vmatpush1.bf16.msra.mxu1 %v4640_v62 }
 0xa8a   : > { %3042 = vmatprep.subr.bf16.mxu1 %v4693_v1 }
 0xa8b   : > { %v4641_v44 = vld [vmem:[#allocation4] ss:$8 sps:$4 sm:$0xff]  }
 0xa8c   : > { %v4642_v10 = vld [vmem:[#allocation4 + $0x80] ss:$8 sps:$4 sm:$0xff]  }
 0xa8d   : > { %3043 = vmatpush1.bf16.msra.mxu1 %v4641_v44  ;;  %v2955_v46 = vpop.permute.xlu1 %2954 }
 0xa8e   : > { %3058 = vmatprep.subr.bf16.mxu1 %v4693_v1 }
 0xa91   : > { %3059 = vmatpush2.bf16.msra.mxu1 %v4642_v10  ;;  %v2960_v54 = vpop.permute.xlu0 %2959 }
 0xa92   : > { %4493 = vmatprep.subr.bf16.mxu1 %v4709_v11 }
 0xa94   : > { %3061 = vmatmul.mubr.bf16.vlgmr.msra.gmra.mxu1 %v4645_v45 }
 0xa95   : > { %4495 = vmatprep.mubr.msk.bf16.mxu1 %vm4710_vm12, %v4709_v11 }
 0xb54   : > { %v3062_v48 = vpop.f32.mrf.mxu1 }
 0xb55   : > { %v3063_v9 = vadd.f32 %v3062_v48, %v2955_v46 }
 0xb56   : > { %v3064_v47 = vpop.f32.mrf.mxu1 }
 0xb57   : > { %vm3069_vm13 = vcmp.gt.f32.partialorder %v3063_v9, 0.0  ;;  %v3071_v23 = vmul.f32 0.01, %v3063_v9 }
 0xb58   : > { %v3065_v51 = vpop.f32.mrf.mxu1 }
 0xb59   : > { %v3073_v55 = vsel %vm3069_vm13, %v3063_v9, %v3071_v23  ;;  %v3066_v21 = vadd.f32 %v3065_v51, %v2960_v54  ;;  %vm3447_vm13 = vcmask 52256  }
 0xb5a   : > { %v4468_v30 = vpack.c.bf16 %v3073_v55, %v3073_v55  ;;  %v3067_v56 = vpop.f32.mrf.mxu1  ;;  %3448 = vst.msk [vmem:[#allocation2 + $0x4] sm:$0xf] %vm3447_vm13, %v4693_v1  ;;  %3449 = vst.msk [vmem:[#allocation2 + $0x14] sm:$0xf] %vm3447_vm13, %v4693_v1 }
 0xb5b   : > { %vm3070_vm4 = vcmp.gt.f32.partialorder %v3066_v21, 0.0  ;;  %v3072_v57 = vmul.f32 0.01, %v3066_v21 }
 0xb5c   : > { %3087 = vst.msk [vmem:[#allocation3 + $0x4] sm:$0xf] %vm2748_vm9, %v4468_v30 }
 0xb5d   : > { %v3074_v32 = vsel %vm3070_vm4, %v3066_v21, %v3072_v57  ;;  %vm3444_vm4 = vcmask 1044456  }
 0xb5e   : > { %v4469_v58 = vpack.c.bf16 %v3074_v32, %v3074_v32  ;;  %3445 = vst.msk [vmem:[#allocation2] sm:$0xf] %vm3444_vm4, %v4693_v1  ;;  %3446 = vst.msk [vmem:[#allocation2 + $0x10] sm:$0xf] %vm3444_vm4, %v4693_v1 }
 0xb60   : > { %3088 = vst.msk [vmem:[#allocation3 + $0x14] sm:$0xf] %vm2748_vm9, %v4469_v58 }
 0xb63   : > { %v3191_v11 = vld [vmem:[#allocation3 + $0x4] sm:$0xf] }
 0xb64   : > { %3195 = vrot.lane.b32.xlu1 %v3191_v11, %s6184_s0  ;;  %v3177_v60 = vld [vmem:[#allocation3 + $0x4] sm:$0xf] }
 0xb65   : > { %v3159_v61 = vld [vmem:[#allocation3 + $0x4] sm:$0xf]  ;;  %v3179_v53 = vsel %vm2888_vm2, %v3177_v60, 0 }
 0xb66   : > { %3161 = vst.msk [vmem:[#allocation4 + $0x40] sm:$0xf] %vm2748_vm9, %v3159_v61  ;;  %v3163_v5 = vld [vmem:[#allocation3 + $0x4] sm:$0xf] }
 0xb67   : > { %v3192_v0 = vld [vmem:[#allocation3 + $0x14] sm:$0xf]  ;;  %v3165_v17 = vsel %vm2871_vm5, %v3163_v5, 0  ;;  %v3141_v19 = vld [vmem:[#allocation3] sm:$0xff] }
 0xb68   : > { %3183 = vrot.lane.b32.xlu1 %v3179_v53, %s6242_s25  ;;  %3197 = vrot.lane.b32.xlu0 %v3192_v0, %s6184_s0  ;;  %v3178_v8 = vld [vmem:[#allocation3 + $0x14] sm:$0xf]  ;;  %v3143_v49 = vsel %vm2846_vm3, %v3141_v19, 0  ;;  %v3125_v50 = vsel %vm2822_vm6, %v3141_v19, 0  ;;  %v3091_v13 = vsel %vm2776_vm8, %v3141_v19, 0 }
 0xb69   : > { %v3160_v14 = vld [vmem:[#allocation3 + $0x14] sm:$0xf]  ;;  %v3180_v18 = vsel %vm2888_vm2, %v3178_v8, 0  ;;  %v3203_v20 = vld [vmem:[#allocation3 + $0x4] sm:$0xf]  ;;  %vm3397_vm2 = vcmask 1045504  }
 0xb6a   : > { %3162 = vst.msk [vmem:[#allocation4 + $0x48] sm:$0xf] %vm2748_vm9, %v3160_v14  ;;  %v3164_v22 = vld [vmem:[#allocation3 + $0x14] sm:$0xf]  ;;  %v3205_v27 = vsel %vm2917_vm1, %v3203_v20, 0 }
 0xb6b   : > { %v3166_v29 = vsel %vm2871_vm5, %v3164_v22, 0  ;;  %v3142_v4 = vld [vmem:[#allocation3 + $0x10] sm:$0xff]  ;;  %v4657_v14 = vld [vmem:[%s6129_s13] ss:$8 sps:$4 sm:$0xff]   ;;  %3783 = vst.msk [vmem:[#allocation3 + $0x4] sm:$0xf] %vm3447_vm13, %v4693_v1 }
 0xb6c   : > { %3169 = vrot.lane.b32.xlu1 %v3165_v17, %s6229_s1  ;;  %3185 = vrot.lane.b32.xlu0 %v3180_v18, %s6242_s25  ;;  %v3144_v6 = vsel %vm2846_vm3, %v3142_v4, 0  ;;  %v3126_v26 = vsel %vm2822_vm6, %v3142_v4, 0  ;;  %v3092_v3 = vsel %vm2776_vm8, %v3142_v4, 0  ;;  %v3204_v43 = vld [vmem:[#allocation3 + $0x14] sm:$0xf] }
 0xb6d   : > { %v3206_v31 = vsel %vm2917_vm1, %v3204_v43, 0  ;;  %3784 = vst.msk [vmem:[#allocation3 + $0x14] sm:$0xf] %vm3447_vm13, %v4693_v1 }
 0xb6e   : > { %3781 = vst.msk [vmem:[#allocation3] sm:$0xf] %vm3444_vm4, %v4693_v1  ;;  %3782 = vst.msk [vmem:[#allocation3 + $0x10] sm:$0xf] %vm3444_vm4, %v4693_v1 }
 0xb70   : > { %3147 = vrot.lane.b32.xlu1 %v3143_v49, %s6228_s27  ;;  %3171 = vrot.lane.b32.xlu0 %v3166_v29, %s6229_s1 }
 0xb71   : > { %v4649_v51 = vld [vmem:[#allocation4 + $0x40] ss:$8 sps:$4 sm:$0xff]  }
 0xb74   : > { %3129 = vrot.lane.b32.xlu1 %v3125_v50, %s6243_s2  ;;  %3149 = vrot.lane.b32.xlu0 %v3144_v6, %s6228_s27 }
 0xb78   : > { %3111 = vrot.lane.b32.xlu1 %v3141_v19, %s6244_s4  ;;  %3131 = vrot.lane.b32.xlu0 %v3126_v26, %s6243_s2  ;;  %v4658_v26 = vld [vmem:[%s6131_s15] sm:$0x3f]  }
 0xb7c   : > { %3095 = vrot.lane.b32.xlu1 %v3091_v13, %s4714_s6  ;;  %3113 = vrot.lane.b32.xlu0 %v3142_v4, %s6244_s4  ;;  %s6245_s4 = smov 124  }
 0xb80   : > { %3209 = vrot.lane.b32.xlu1 %v3205_v27, %s4712_s28  ;;  %3097 = vrot.lane.b32.xlu0 %v3092_v3, %s4714_s6 }
 0xb84   : > { %3241 = vperm.xlu1 %4534, %v3237_v7   ;;  %3211 = vrot.lane.b32.xlu0 %v3206_v31, %s4712_s28  ;;  %s4718_s28 = smov 2  }
 0xb88   : > { %3246 = vperm.xlu0 %4533, %v3238_v15   ;;  %v3465_v15 = vand.u32 1, %v4856_v2 }
 0xb8a   : > { %vm3473_vm3 = vcmp.ne.s32.totalorder %v3465_v15, 0  ;;  %vm3474_vm6 = vcmp.ne.s32.totalorder %v3465_v15, 1 }
 0xb8b   : > { %vm3479_vm8 = vmpackc.low %vm3473_vm3, %vm3473_vm3 }
 0xb8c   : > { %vm3523_vm1 = vmpackc.low %vm3474_vm6, %vm3474_vm6 }
 0xbd6   : > { %v3196_v33 = vpop.permute.xlu1 %3195 }
 0xbd7   : > { %3201 = vst.msk [vmem:[#allocation4 + $0x70] sm:$0xf] %vm2748_vm9, %v3196_v33 }
 0xbda   : > { %v3184_v35 = vpop.permute.xlu1 %3183  ;;  %v3198_v24 = vpop.permute.xlu0 %3197 }
 0xbdb   : > { %3189 = vst.msk [vmem:[#allocation4 + $0x60] sm:$0xf] %vm2748_vm9, %v3184_v35  ;;  %3202 = vst.msk [vmem:[#allocation4 + $0x78] sm:$0xf] %vm2748_vm9, %v3198_v24 }
 0xbde   : > { %v3170_v34 = vpop.permute.xlu1 %3169  ;;  %v3186_v42 = vpop.permute.xlu0 %3185 }
 0xbdf   : > { %3175 = vst.msk [vmem:[#allocation4 + $0x50] sm:$0xf] %vm2748_vm9, %v3170_v34  ;;  %3190 = vst.msk [vmem:[#allocation4 + $0x68] sm:$0xf] %vm2748_vm9, %v3186_v42  ;;  %v3480_v34 = vsel %vm3479_vm8, 65537, %v4693_v1 }
 0xbe2   : > { %v3148_v36 = vpop.permute.xlu1 %3147  ;;  %v3172_v63 = vpop.permute.xlu0 %3171  ;;  %v4646_v37 = vld [vmem:[#allocation4 + $0x70] ss:$8 sps:$4 sm:$0xff]  }
 0xbe3   : > { %v3151_v38 = vrot.slane %v3148_v36, 4  ;;  %3176 = vst.msk [vmem:[#allocation4 + $0x58] sm:$0xf] %vm2748_vm9, %v3172_v63  ;;  %3316 = vmatpush1.bf16.msra.mxu0 %v4646_v37 }
 0xbe4   : > { %3317 = vmatprep.subr.bf16.mxu0 %v4693_v1 }
 0xbe5   : > { %v3153_v39 = vsel %vm975_vm10, %v3148_v36, %v3151_v38  ;;  %v3524_v36 = vsel %vm3523_vm1, 65537, %v4693_v1 }
 0xbe6   : > { %3157 = vst.msk [vmem:[#allocation4 + $0x30] sm:$0xf] %vm2748_vm9, %v3153_v39  ;;  %v3130_v28 = vpop.permute.xlu1 %3129  ;;  %v3150_v59 = vpop.permute.xlu0 %3149  ;;  %v4647_v12 = vld [vmem:[#allocation4 + $0x60] ss:$8 sps:$4 sm:$0xff]  }
 0xbe7   : > { %v3133_v25 = vrot.slane %v3130_v28, 4  ;;  %v3152_v40 = vrot.slane %v3150_v59, 4  ;;  %3318 = vmatpush1.bf16.msra.mxu0 %v4647_v12 }
 0xbe8   : > { %3319 = vmatprep.subr.bf16.mxu0 %v4693_v1 }
 0xbe9   : > { %v3135_v41 = vsel %vm2833_vm7, %v3130_v28, %v3133_v25  ;;  %v3154_v62 = vsel %vm975_vm10, %v3150_v59, %v3152_v40 }
 0xbea   : > { %3139 = vst.msk [vmem:[#allocation4 + $0x20] sm:$0xf] %vm2748_vm9, %v3135_v41  ;;  %3158 = vst.msk [vmem:[#allocation4 + $0x38] sm:$0xf] %vm2748_vm9, %v3154_v62  ;;  %v3112_v44 = vpop.permute.xlu1 %3111  ;;  %v3132_v10 = vpop.permute.xlu0 %3131  ;;  %v4648_v45 = vld [vmem:[#allocation4 + $0x50] ss:$8 sps:$4 sm:$0xff]  }
 0xbeb   : > { %v3115_v46 = vrot.slane %v3112_v44, 4  ;;  %v3134_v48 = vrot.slane %v3132_v10, 4  ;;  %3320 = vmatpush1.bf16.msra.mxu0 %v4648_v45 }
 0xbec   : > { %3321 = vmatprep.subr.bf16.mxu0 %v4693_v1 }
 0xbed   : > { %v3117_v9 = vsel %vm2804_vm11, %v3112_v44, %v3115_v46  ;;  %v3136_v47 = vsel %vm2833_vm7, %v3132_v10, %v3134_v48 }
 0xbee   : > { %3121 = vst.msk [vmem:[#allocation4 + $0x10] sm:$0xf] %vm2748_vm9, %v3117_v9  ;;  %3140 = vst.msk [vmem:[#allocation4 + $0x28] sm:$0xf] %vm2748_vm9, %v3136_v47  ;;  %v3096_v23 = vpop.permute.xlu1 %3095  ;;  %v3114_v54 = vpop.permute.xlu0 %3113 }
 0xbef   : > { %v3099_v55 = vrot.slane %v3096_v23, 4  ;;  %v3116_v21 = vrot.slane %v3114_v54, 4  ;;  %3322 = vmatpush1.bf16.msra.mxu0 %v4649_v51 }
 0xbf0   : > { %3323 = vmatprep.subr.bf16.mxu0 %v4693_v1 }
 0xbf1   : > { %v3101_v30 = vsel %vm2787_vm14, %v3096_v23, %v3099_v55  ;;  %v3118_v56 = vsel %vm2804_vm11, %v3114_v54, %v3116_v21  ;;  %v4650_v57 = vld [vmem:[#allocation4 + $0x30] ss:$8 sps:$4 sm:$0xff]  }
 0xbf2   : > { %3105 = vst.msk [vmem:[#allocation4] sm:$0xf] %vm2748_vm9, %v3101_v30  ;;  %3122 = vst.msk [vmem:[#allocation4 + $0x18] sm:$0xf] %vm2748_vm9, %v3118_v56  ;;  %v3210_v32 = vpop.permute.xlu1 %3209  ;;  %v3098_v58 = vpop.permute.xlu0 %3097 }
 0xbf3   : > { %3215 = vst.msk [vmem:[#allocation4 + $0x80] sm:$0xf] %vm2748_vm9, %v3210_v32  ;;  %v3100_v11 = vrot.slane %v3098_v58, 4  ;;  %3324 = vmatpush1.bf16.msra.mxu0 %v4650_v57 }
 0xbf4   : > { %3325 = vmatprep.subr.bf16.mxu0 %v4693_v1 }
 0xbf5   : > { %v3102_v60 = vsel %vm2787_vm14, %v3098_v58, %v3100_v11  ;;  %v4651_v61 = vld [vmem:[#allocation4 + $0x20] ss:$8 sps:$4 sm:$0xff]   ;;  %vm3392_vm14 = vcmask 89088  }
 0xbf6   : > { %3106 = vst.msk [vmem:[#allocation4 + $0x8] sm:$0xf] %vm2748_vm9, %v3102_v60  ;;  %v3212_v53 = vpop.permute.xlu0 %3211 }
 0xbf7   : > { %3216 = vst.msk [vmem:[#allocation4 + $0x88] sm:$0xf] %vm2748_vm9, %v3212_v53  ;;  %3326 = vmatpush1.bf16.msra.mxu0 %v4651_v61  ;;  %vm3396_vm9 = vcmask 1044480  }
 0xbf8   : > { %3327 = vmatprep.subr.bf16.mxu0 %v4693_v1  ;;  %v3398_v20 = vsel %vm3396_vm9, 4294967295, %v4702_v16 }
 0xbf9   : > { %v4652_v0 = vld [vmem:[#allocation4 + $0x10] ss:$8 sps:$4 sm:$0xff]   ;;  %v3399_v3 = vsel %vm3397_vm2, %v3398_v20, 0 }
 0xbfa   : > { %v3401_v43 = vand.u32 %v4658_v26, %v3399_v3  ;;  %v3657_v3 = vld [vmem:[%s6133_s17 + $0x8] sm:$0xff] }
 0xbfb   : > { %3328 = vmatpush1.bf16.msra.mxu0 %v4652_v0 }
 0xbfc   : > { %3329 = vmatprep.subr.bf16.mxu0 %v4693_v1  ;;  %4494 = vmatpush3.bf16.msra.mxu1 %v3401_v43 }
 0xbfd   : > { %v4653_v5 = vld [vmem:[#allocation4] ss:$8 sps:$4 sm:$0xff]   ;;  %4021 = vmatprep.subr.bf16.mxu1 %v4693_v1 }
 0xbfe   : > { %v4654_v8 = vld [vmem:[#allocation4 + $0x80] ss:$8 sps:$4 sm:$0xff]  }
 0xbff   : > { %3330 = vmatpush1.bf16.msra.mxu0 %v4653_v5  ;;  %v3242_v17 = vpop.permute.xlu1 %3241 }
 0xc00   : > { %3345 = vmatprep.subr.bf16.mxu0 %v4693_v1 }
 0xc03   : > { %3346 = vmatpush2.bf16.msra.mxu0 %v4654_v8  ;;  %v3247_v29 = vpop.permute.xlu0 %3246 }
 0xc04   : > { %3734 = vmatprep.subr.bf16.mxu0 %v4693_v1 }
 0xc06   : > { %3348 = vmatmul.mubr.bf16.vlgmr.msra.gmra.mxu0 %v4657_v14 }
 0xcc6   : > { %v3349_v18 = vpop.f32.mrf.mxu0 }
 0xcc7   : > { %v3350_v19 = vadd.f32 %v3349_v18, %v3242_v17 }
 0xcc8   : > { %v3351_v22 = vpop.f32.mrf.mxu0 }
 0xcc9   : > { %vm3356_vm12 = vcmp.gt.f32.partialorder %v3350_v19, 0.0  ;;  %v3358_v49 = vmul.f32 0.01, %v3350_v19 }
 0xcca   : > { %v3352_v4 = vpop.f32.mrf.mxu0 }
 0xccb   : > { %v3360_v50 = vsel %vm3356_vm12, %v3350_v19, %v3358_v49  ;;  %v3353_v6 = vadd.f32 %v3352_v4, %v3247_v29  ;;  %vm3458_vm12 = vcmask 27648  }
 0xccc   : > { %3362 = vst.msk [vmem:[%s776_s8] sm:$0xff] %vm889_vm0, %v3360_v50  ;;  %v3354_v13 = vpop.f32.mrf.mxu0 }
 0xccd   : > { %vm3357_vm5 = vcmp.gt.f32.partialorder %v3353_v6, 0.0  ;;  %v3359_v27 = vmul.f32 0.01, %v3353_v6  ;;  %v3656_v13 = vld [vmem:[%s6133_s17] sm:$0xff] }
 0xccf   : > { %v3361_v7 = vsel %vm3357_vm5, %v3353_v6, %v3359_v27  ;;  %vm6246_vm5 = vcmask 1039360   ;;  %v4668_v27 = vld [vmem:[%s6132_s16 + $0x4] ss:$8 sps:$4 sm:$0xff]  }
 0xcd0   : > { %3363 = vst.msk [vmem:[%s776_s8 + $0x8] sm:$0xff] %vm889_vm0, %v3361_v7  ;;  %v4565_v31 = vpack.i.bf16 %v3361_v7, %v3360_v50  ;;  %vm6247_vm6 = vmmov %vm6246_vm5  ;;  %4437 = vmatprep.mubr.msk.bf16.mxu0 %vm889_vm0, %v4668_v27 }
 0xcd2   : > { %4566 = vrot.lane.b32.xlu1 %v4565_v31, %s6229_s1 }
 0xcd6   : > { %3592 = vrot.lane.b32.xlu1 %v3480_v34, %s6228_s27 }
 0xcda   : > { %3548 = vrot.lane.b32.xlu1 %v3480_v34, %s6229_s1 }
 0xcde   : > { %3481 = vrot.lane.b32.xlu1 %v3480_v34, %s6242_s25 }
 0xd44   : > { %v4567_v52 = vpop.permute.xlu1 %4566 }
 0xd45   : > { %v4569_v33 = vunpack.i.h.bf16 %v4567_v52  ;;  %v4568_v35 = vunpack.i.l.bf16 %v4567_v52 }
 0xd47   : > { %v3373_v16 = vmax.f32 %v3361_v7, %v4569_v33  ;;  %v3372_v24 = vmax.f32 %v3360_v50, %v4568_v35 }
 0xd48   : > { %v5901_v41 = vpop.permute.xlu1 %3592 }
 0xd49   : > { %v4570_v42 = vpack.i.bf16 %v3373_v16, %v3372_v24  ;;  %vm3594_vm9 = vcmp.ne.s16.totalorder %v5901_v41, 0 }
 0xd4b   : > { %4571 = vrot.lane.b32.xlu0 %v4570_v42, %s6245_s4 }
 0xd4c   : > { %v3549_v46 = vpop.permute.xlu1 %3548 }
 0xd4d   : > { %v3550_v9 = vrot.slane %v3549_v46, 4 }
 0xd4f   : > { %3575 = vrot.lane.b32.xlu0 %v3524_v36, %s6228_s27  ;;  %v5915_v30 = vsel %vm6246_vm5, %v3550_v9, %v3549_v46 }
 0xd50   : > { %vm3552_vm3 = vcmp.ne.s16.totalorder %v5915_v30, 0  ;;  %v3482_v53 = vpop.permute.xlu1 %3481 }
 0xd51   : > { %v3483_v14 = vrot.slane %v3482_v53, 4 }
 0xd53   : > { %3525 = vrot.lane.b32.xlu0 %v3524_v36, %s6229_s1  ;;  %v5942_v19 = vsel %vm2820_vm15, %v3483_v14, %v3482_v53  ;;  %vm3512_vm15 = vcmask 15360  }
 0xd54   : > { %vm3485_vm1 = vcmp.ne.s16.totalorder %v5942_v19, 0  ;;  %v4680_v19 = vld [vmem:[%s6134_s18 + $0x4] ss:$8 sps:$4 sm:$0xff]  }
 0xd57   : > { %3621 = vrot.lane.b32.xlu0 %v3524_v36, %s6243_s2 }
 0xdbd   : > { %v4572_v2 = vpop.permute.xlu0 %4571 }
 0xdbe   : > { %v4574_v63 = vunpack.i.h.bf16 %v4572_v2  ;;  %v4573_v37 = vunpack.i.l.bf16 %v4572_v2 }
 0xdc0   : > { %v3383_v38 = vmax.f32 %v3373_v16, %v4574_v63  ;;  %v3382_v39 = vmax.f32 %v3372_v24, %v4573_v37 }
 0xdc1   : > { %v5903_v10 = vpop.permute.xlu0 %3575 }
 0xdc2   : > { %v3384_v28 = vpack.c.bf16 %v3383_v38, %v3382_v39  ;;  %vm3577_vm2 = vcmp.ne.s16.totalorder %v5903_v10, 0 }
 0xdc4   : > { %4496 = vmatmul.mubr.msk.bf16.vlgmr.msra.gmra.mxu1 %vm3392_vm14, %v3384_v28 }
 0xdc5   : > { %v3526_v23 = vpop.permute.xlu0 %3525  ;;  %4451 = vmatprep.mubr.msk.bf16.mxu1 %vm889_vm0, %v4680_v19 }
 0xdc6   : > { %v3527_v56 = vrot.slane %v3526_v23, 4 }
 0xdc8   : > { %v5926_v61 = vsel %vm6247_vm6, %v3527_v56, %v3526_v23 }
 0xdc9   : > { %vm3529_vm8 = vcmp.ne.s16.totalorder %v5926_v61, 0  ;;  %v5949_v49 = vpop.permute.xlu0 %3621 }
 0xdca   : > { %vm3623_vm14 = vcmp.ne.s16.totalorder %v5949_v49, 0 }
 0xe84   : > { %v3437_v59 = vpop.f32.mrf.mxu1 }
 0xe85   : > { %v4470_v12 = vpack.c.bf16 %v3437_v59, %v3437_v59 }
 0xe86   : > { %v4497_v25 = vpop.f32.mrf.mxu1 }
 0xe87   : > { %3459 = vst.msk [vmem:[#allocation2 + $0x4] sm:$0xf] %vm3458_vm12, %v4470_v12 }
 0xe88   : > { %v3440_v40 = vpop.f32.mrf.mxu1 }
 0xe89   : > { %v4471_v62 = vpack.c.bf16 %v3440_v40, %v3440_v40 }
 0xe8a   : > { %v4498_v44 = vpop.f32.mrf.mxu1 }
 0xe8b   : > { %3460 = vst.msk [vmem:[#allocation2 + $0x14] sm:$0xf] %vm3458_vm12, %v4471_v62 }
 0xe8e   : > { %v3607_v45 = vld [vmem:[#allocation2 + $0x4] sm:$0xf] }
 0xe8f   : > { %3611 = vrot.lane.b32.xlu1 %v3607_v45, %s4717_s3  ;;  %v3590_v48 = vld [vmem:[#allocation2 + $0x4] sm:$0xf] }
 0xe90   : > { %v3569_v47 = vld [vmem:[#allocation2 + $0x4] sm:$0xf]  ;;  %v3595_v54 = vsel %vm3594_vm9, %v3590_v48, 0 }
 0xe91   : > { %3571 = vst.msk [vmem:[#allocation4 + $0x40] sm:$0xf] %vm3458_vm12, %v3569_v47  ;;  %v3573_v55 = vld [vmem:[#allocation2 + $0x4] sm:$0xf] }
 0xe92   : > { %v3608_v51 = vld [vmem:[#allocation2 + $0x14] sm:$0xf]  ;;  %v3578_v32 = vsel %vm3577_vm2, %v3573_v55, 0  ;;  %v3546_v11 = vld [vmem:[#allocation2] sm:$0xff] }
 0xe93   : > { %3599 = vrot.lane.b32.xlu1 %v3595_v54, %s6229_s1  ;;  %3613 = vrot.lane.b32.xlu0 %v3608_v51, %s4717_s3  ;;  %v3591_v21 = vld [vmem:[#allocation2 + $0x14] sm:$0xf]  ;;  %v3553_v0 = vsel %vm3552_vm3, %v3546_v11, 0  ;;  %v3530_v17 = vsel %vm3529_vm8, %v3546_v11, 0  ;;  %v3486_v29 = vsel %vm3485_vm1, %v3546_v11, 0 }
 0xe94   : > { %v3570_v57 = vld [vmem:[#allocation2 + $0x14] sm:$0xf]  ;;  %v3596_v58 = vsel %vm3594_vm9, %v3591_v21, 0  ;;  %v3619_v4 = vld [vmem:[#allocation2 + $0x4] sm:$0xf] }
 0xe95   : > { %3572 = vst.msk [vmem:[#allocation4 + $0x48] sm:$0xf] %vm3458_vm12, %v3570_v57  ;;  %v3574_v60 = vld [vmem:[#allocation2 + $0x14] sm:$0xf]  ;;  %v3624_v50 = vsel %vm3623_vm14, %v3619_v4, 0 }
 0xe96   : > { %v3579_v5 = vsel %vm3577_vm2, %v3574_v60, 0  ;;  %v3547_v8 = vld [vmem:[#allocation2 + $0x10] sm:$0xff] }
 0xe97   : > { %3582 = vrot.lane.b32.xlu1 %v3578_v32, %s6229_s1  ;;  %3601 = vrot.lane.b32.xlu0 %v3596_v58, %s6229_s1  ;;  %v3554_v18 = vsel %vm3552_vm3, %v3547_v8, 0  ;;  %v3531_v22 = vsel %vm3529_vm8, %v3547_v8, 0  ;;  %v3487_v6 = vsel %vm3485_vm1, %v3547_v8, 0  ;;  %v3620_v26 = vld [vmem:[#allocation2 + $0x14] sm:$0xf] }
 0xe98   : > { %v3625_v20 = vsel %vm3623_vm14, %v3620_v26, 0 }
 0xe9b   : > { %3557 = vrot.lane.b32.xlu1 %v3553_v0, %s6228_s27  ;;  %3584 = vrot.lane.b32.xlu0 %v3579_v5, %s6229_s1  ;;  %v4670_v0 = vld [vmem:[%s6132_s16] ss:$8 sps:$4 sm:$0xff]  }
 0xe9c   : > { %v4662_v48 = vld [vmem:[#allocation4 + $0x40] ss:$8 sps:$4 sm:$0xff]  }
 0xe9f   : > { %3534 = vrot.lane.b32.xlu1 %v3530_v17, %s6228_s27  ;;  %3559 = vrot.lane.b32.xlu0 %v3554_v18, %s6228_s27 }
 0xea3   : > { %3506 = vrot.lane.b32.xlu1 %v3546_v11, %s4718_s28  ;;  %3536 = vrot.lane.b32.xlu0 %v3531_v22, %s6228_s27 }
 0xea7   : > { %3490 = vrot.lane.b32.xlu1 %v3486_v29, %s6243_s2  ;;  %3508 = vrot.lane.b32.xlu0 %v3547_v8, %s4718_s28 }
 0xeab   : > { %3628 = vrot.lane.b32.xlu1 %v3624_v50, %s6242_s25  ;;  %3492 = vrot.lane.b32.xlu0 %v3487_v6, %s6243_s2 }
 0xeaf   : > { %3660 = vperm.xlu1 %4534, %v3656_v13   ;;  %3630 = vrot.lane.b32.xlu0 %v3625_v20, %s6242_s25 }
 0xeb3   : > { %3665 = vperm.xlu0 %4533, %v3657_v3  }
 0xf01   : > { %v3612_v43 = vpop.permute.xlu1 %3611 }
 0xf02   : > { %3617 = vst.msk [vmem:[#allocation4 + $0x70] sm:$0xf] %vm3458_vm12, %v3612_v43 }
 0xf05   : > { %v3600_v7 = vpop.permute.xlu1 %3599  ;;  %v3614_v31 = vpop.permute.xlu0 %3613 }
 0xf06   : > { %3605 = vst.msk [vmem:[#allocation4 + $0x60] sm:$0xf] %vm3458_vm12, %v3600_v7  ;;  %3618 = vst.msk [vmem:[#allocation4 + $0x78] sm:$0xf] %vm3458_vm12, %v3614_v31 }
 0xf09   : > { %v3583_v52 = vpop.permute.xlu1 %3582  ;;  %v3602_v15 = vpop.permute.xlu0 %3601 }
 0xf0a   : > { %3588 = vst.msk [vmem:[#allocation4 + $0x50] sm:$0xf] %vm3458_vm12, %v3583_v52  ;;  %3606 = vst.msk [vmem:[#allocation4 + $0x68] sm:$0xf] %vm3458_vm12, %v3602_v15 }
 0xf0d   : > { %v3558_v33 = vpop.permute.xlu1 %3557  ;;  %v3585_v35 = vpop.permute.xlu0 %3584  ;;  %v4659_v16 = vld [vmem:[#allocation4 + $0x70] ss:$8 sps:$4 sm:$0xff]  }
 0xf0e   : > { %v3561_v24 = vrot.slane %v3558_v33, 4  ;;  %3589 = vst.msk [vmem:[#allocation4 + $0x58] sm:$0xf] %vm3458_vm12, %v3585_v35  ;;  %3735 = vmatpush1.bf16.msra.mxu0 %v4659_v16 }
 0xf0f   : > { %3736 = vmatprep.subr.bf16.mxu0 %v4693_v1 }
 0xf10   : > { %v3563_v34 = vsel %vm975_vm10, %v3558_v33, %v3561_v24 }
 0xf11   : > { %3567 = vst.msk [vmem:[#allocation4 + $0x30] sm:$0xf] %vm3458_vm12, %v3563_v34  ;;  %v3535_v42 = vpop.permute.xlu1 %3534  ;;  %v3560_v36 = vpop.permute.xlu0 %3559  ;;  %v4660_v2 = vld [vmem:[#allocation4 + $0x60] ss:$8 sps:$4 sm:$0xff]  }
 0xf12   : > { %v3538_v63 = vrot.slane %v3535_v42, 4  ;;  %v3562_v37 = vrot.slane %v3560_v36, 4  ;;  %3737 = vmatpush1.bf16.msra.mxu0 %v4660_v2 }
 0xf13   : > { %3738 = vmatprep.subr.bf16.mxu0 %v4693_v1 }
 0xf14   : > { %v3540_v38 = vsel %vm975_vm10, %v3535_v42, %v3538_v63  ;;  %v3564_v39 = vsel %vm975_vm10, %v3560_v36, %v3562_v37 }
 0xf15   : > { %3544 = vst.msk [vmem:[#allocation4 + $0x20] sm:$0xf] %vm3458_vm12, %v3540_v38  ;;  %3568 = vst.msk [vmem:[#allocation4 + $0x38] sm:$0xf] %vm3458_vm12, %v3564_v39  ;;  %v3507_v28 = vpop.permute.xlu1 %3506  ;;  %v3537_v59 = vpop.permute.xlu0 %3536  ;;  %v4661_v12 = vld [vmem:[#allocation4 + $0x50] ss:$8 sps:$4 sm:$0xff]  }
 0xf16   : > { %v3510_v25 = vrot.slane %v3507_v28, 4  ;;  %v3539_v40 = vrot.slane %v3537_v59, 4  ;;  %3739 = vmatpush1.bf16.msra.mxu0 %v4661_v12 }
 0xf17   : > { %3740 = vmatprep.subr.bf16.mxu0 %v4693_v1 }
 0xf18   : > { %v3513_v62 = vsel %vm3512_vm15, %v3507_v28, %v3510_v25  ;;  %v3541_v44 = vsel %vm975_vm10, %v3537_v59, %v3539_v40  ;;  %v3943_v59 = vld [vmem:[%s6135_s19] sm:$0xff]  ;;  %v3944_v25 = vld [vmem:[%s6135_s19 + $0x8] sm:$0xff] }
 0xf19   : > { %3517 = vst.msk [vmem:[#allocation4 + $0x10] sm:$0xf] %vm3458_vm12, %v3513_v62  ;;  %3545 = vst.msk [vmem:[#allocation4 + $0x28] sm:$0xf] %vm3458_vm12, %v3541_v44  ;;  %v3491_v45 = vpop.permute.xlu1 %3490  ;;  %v3509_v46 = vpop.permute.xlu0 %3508 }
 0xf1a   : > { %v3494_v9 = vrot.slane %v3491_v45, 4  ;;  %v3511_v47 = vrot.slane %v3509_v46, 4  ;;  %3741 = vmatpush1.bf16.msra.mxu0 %v4662_v48 }
 0xf1b   : > { %3742 = vmatprep.subr.bf16.mxu0 %v4693_v1 }
 0xf1c   : > { %v3496_v23 = vsel %vm2833_vm7, %v3491_v45, %v3494_v9  ;;  %v3514_v54 = vsel %vm3512_vm15, %v3509_v46, %v3511_v47  ;;  %v4663_v51 = vld [vmem:[#allocation4 + $0x30] ss:$8 sps:$4 sm:$0xff]  }
 0xf1d   : > { %3500 = vst.msk [vmem:[#allocation4] sm:$0xf] %vm3458_vm12, %v3496_v23  ;;  %3518 = vst.msk [vmem:[#allocation4 + $0x18] sm:$0xf] %vm3458_vm12, %v3514_v54  ;;  %v3629_v55 = vpop.permute.xlu1 %3628  ;;  %v3493_v21 = vpop.permute.xlu0 %3492 }
 0xf1e   : > { %3634 = vst.msk [vmem:[#allocation4 + $0x80] sm:$0xf] %vm3458_vm12, %v3629_v55  ;;  %v3495_v56 = vrot.slane %v3493_v21, 4  ;;  %3743 = vmatpush1.bf16.msra.mxu0 %v4663_v51 }
 0xf1f   : > { %3744 = vmatprep.subr.bf16.mxu0 %v4693_v1 }
 0xf20   : > { %v3497_v57 = vsel %vm2833_vm7, %v3493_v21, %v3495_v56  ;;  %v4664_v32 = vld [vmem:[#allocation4 + $0x20] ss:$8 sps:$4 sm:$0xff]  }
 0xf21   : > { %3501 = vst.msk [vmem:[#allocation4 + $0x8] sm:$0xf] %vm3458_vm12, %v3497_v57  ;;  %v3631_v58 = vpop.permute.xlu0 %3630 }
 0xf22   : > { %3635 = vst.msk [vmem:[#allocation4 + $0x88] sm:$0xf] %vm3458_vm12, %v3631_v58  ;;  %3745 = vmatpush1.bf16.msra.mxu0 %v4664_v32 }
 0xf23   : > { %3746 = vmatprep.subr.bf16.mxu0 %v4693_v1 }
 0xf24   : > { %v4665_v11 = vld [vmem:[#allocation4 + $0x10] ss:$8 sps:$4 sm:$0xff]  }
 0xf26   : > { %3747 = vmatpush1.bf16.msra.mxu0 %v4665_v11 }
 0xf27   : > { %3748 = vmatprep.subr.bf16.mxu0 %v4693_v1 }
 0xf28   : > { %v4666_v60 = vld [vmem:[#allocation4] ss:$8 sps:$4 sm:$0xff]  }
 0xf29   : > { %v4667_v53 = vld [vmem:[#allocation4 + $0x80] ss:$8 sps:$4 sm:$0xff]  }
 0xf2a   : > { %3749 = vmatpush1.bf16.msra.mxu0 %v4666_v60  ;;  %v3661_v5 = vpop.permute.xlu1 %3660 }
 0xf2b   : > { %3764 = vmatprep.subr.bf16.mxu0 %v4693_v1 }
 0xf2e   : > { %3765 = vmatpush2.bf16.msra.mxu0 %v4667_v53  ;;  %v3666_v22 = vpop.permute.xlu0 %3665 }
 0xf31   : > { %3767 = vmatmul.mubr.bf16.vlgmr.msra.gmra.mxu0 %v4670_v0 }
 0xff1   : > { %v3768_v8 = vpop.f32.mrf.mxu0 }
 0xff2   : > { %v3769_v14 = vadd.f32 %v3768_v8, %v3661_v5 }
 0xff3   : > { %v3770_v17 = vpop.f32.mrf.mxu0 }
 0xff4   : > { %vm3775_vm13 = vcmp.gt.f32.partialorder %v3769_v14, 0.0  ;;  %v3777_v18 = vmul.f32 0.01, %v3769_v14 }
 0xff5   : > { %v3771_v29 = vpop.f32.mrf.mxu0 }
 0xff6   : > { %v3779_v4 = vsel %vm3775_vm13, %v3769_v14, %v3777_v18  ;;  %v3772_v50 = vadd.f32 %v3771_v29, %v3666_v22 }
 0xff7   : > { %v4472_v6 = vpack.c.bf16 %v3779_v4, %v3779_v4  ;;  %v3773_v26 = vpop.f32.mrf.mxu0 }
 0xff8   : > { %vm3776_vm4 = vcmp.gt.f32.partialorder %v3772_v50, 0.0  ;;  %v3778_v13 = vmul.f32 0.01, %v3772_v50 }
 0xff9   : > { %3793 = vst.msk [vmem:[#allocation3 + $0x4] sm:$0xf] %vm3458_vm12, %v4472_v6 }
 0xffa   : > { %v3780_v20 = vsel %vm3776_vm4, %v3772_v50, %v3778_v13 }
 0xffb   : > { %v4473_v27 = vpack.c.bf16 %v3780_v20, %v3780_v20 }
 0xffd   : > { %3794 = vst.msk [vmem:[#allocation3 + $0x14] sm:$0xf] %vm3458_vm12, %v4473_v27 }
0x1000   : > { %v3897_v3 = vld [vmem:[#allocation3 + $0x4] sm:$0xf] }
0x1001   : > { %3901 = vrot.lane.b32.xlu1 %v3897_v3, %s4717_s3  ;;  %v3883_v43 = vld [vmem:[#allocation3 + $0x4] sm:$0xf] }
0x1002   : > { %v3865_v7 = vld [vmem:[#allocation3 + $0x4] sm:$0xf]  ;;  %v3885_v31 = vsel %vm3594_vm9, %v3883_v43, 0 }
0x1003   : > { %3867 = vst.msk [vmem:[#allocation4 + $0x40] sm:$0xf] %vm3458_vm12, %v3865_v7  ;;  %v3869_v15 = vld [vmem:[#allocation3 + $0x4] sm:$0xf] }
0x1004   : > { %v3898_v52 = vld [vmem:[#allocation3 + $0x14] sm:$0xf]  ;;  %v3871_v16 = vsel %vm3577_vm2, %v3869_v15, 0  ;;  %v3847_v34 = vld [vmem:[#allocation3] sm:$0xff] }
0x1005   : > { %3889 = vrot.lane.b32.xlu1 %v3885_v31, %s6229_s1  ;;  %3903 = vrot.lane.b32.xlu0 %v3898_v52, %s4717_s3  ;;  %v3884_v33 = vld [vmem:[#allocation3 + $0x14] sm:$0xf]  ;;  %v3849_v36 = vsel %vm3552_vm3, %v3847_v34, 0  ;;  %v3831_v41 = vsel %vm3529_vm8, %v3847_v34, 0  ;;  %v3797_v10 = vsel %vm3485_vm1, %v3847_v34, 0 }
0x1006   : > { %v3866_v35 = vld [vmem:[#allocation3 + $0x14] sm:$0xf]  ;;  %v3886_v24 = vsel %vm3594_vm9, %v3884_v33, 0  ;;  %v3909_v30 = vld [vmem:[#allocation3 + $0x4] sm:$0xf] }
0x1007   : > { %3868 = vst.msk [vmem:[#allocation4 + $0x48] sm:$0xf] %vm3458_vm12, %v3866_v35  ;;  %v3870_v42 = vld [vmem:[#allocation3 + $0x14] sm:$0xf]  ;;  %v3911_v39 = vsel %vm3623_vm14, %v3909_v30, 0 }
0x1008   : > { %v3872_v2 = vsel %vm3577_vm2, %v3870_v42, 0  ;;  %v3848_v63 = vld [vmem:[#allocation3 + $0x10] sm:$0xff]  ;;  %v4682_v15 = vld [vmem:[%s6134_s18] ss:$8 sps:$4 sm:$0xff]  }
0x1009   : > { %3875 = vrot.lane.b32.xlu1 %v3871_v16, %s6229_s1  ;;  %3891 = vrot.lane.b32.xlu0 %v3886_v24, %s6229_s1  ;;  %v3850_v37 = vsel %vm3552_vm3, %v3848_v63, 0  ;;  %v3832_v38 = vsel %vm3529_vm8, %v3848_v63, 0  ;;  %v3798_v28 = vsel %vm3485_vm1, %v3848_v63, 0  ;;  %v3910_v61 = vld [vmem:[#allocation3 + $0x14] sm:$0xf] }
0x100a   : > { %v3912_v12 = vsel %vm3623_vm14, %v3910_v61, 0 }
0x100d   : > { %3853 = vrot.lane.b32.xlu1 %v3849_v36, %s6228_s27  ;;  %3877 = vrot.lane.b32.xlu0 %v3872_v2, %s6229_s1 }
0x100e   : > { %v4674_v18 = vld [vmem:[#allocation4 + $0x40] ss:$8 sps:$4 sm:$0xff]  }
0x1011   : > { %3835 = vrot.lane.b32.xlu1 %v3831_v41, %s6228_s27  ;;  %3855 = vrot.lane.b32.xlu0 %v3850_v37, %s6228_s27 }
0x1015   : > { %3817 = vrot.lane.b32.xlu1 %v3847_v34, %s4718_s28  ;;  %3837 = vrot.lane.b32.xlu0 %v3832_v38, %s6228_s27  ;;  %s781_s27 = scalar_lea.vmem %s6139_s23, %s5309_s30 }
0x1019   : > { %3801 = vrot.lane.b32.xlu1 %v3797_v10, %s6243_s2  ;;  %3819 = vrot.lane.b32.xlu0 %v3848_v63, %s4718_s28 }
0x101d   : > { %3915 = vrot.lane.b32.xlu1 %v3911_v39, %s6242_s25  ;;  %3803 = vrot.lane.b32.xlu0 %v3798_v28, %s6243_s2 }
0x1021   : > { %3947 = vperm.xlu1 %4534, %v3943_v59   ;;  %3917 = vrot.lane.b32.xlu0 %v3912_v12, %s6242_s25 }
0x1025   : > { %3952 = vperm.xlu0 %4533, %v3944_v25  }
0x1073   : > { %v3902_v40 = vpop.permute.xlu1 %3901 }
0x1074   : > { %3907 = vst.msk [vmem:[#allocation4 + $0x70] sm:$0xf] %vm3458_vm12, %v3902_v40 }
0x1077   : > { %v3890_v62 = vpop.permute.xlu1 %3889  ;;  %v3904_v49 = vpop.permute.xlu0 %3903 }
0x1078   : > { %3895 = vst.msk [vmem:[#allocation4 + $0x60] sm:$0xf] %vm3458_vm12, %v3890_v62  ;;  %3908 = vst.msk [vmem:[#allocation4 + $0x78] sm:$0xf] %vm3458_vm12, %v3904_v49 }
0x107b   : > { %v3876_v44 = vpop.permute.xlu1 %3875  ;;  %v3892_v45 = vpop.permute.xlu0 %3891 }
0x107c   : > { %3881 = vst.msk [vmem:[#allocation4 + $0x50] sm:$0xf] %vm3458_vm12, %v3876_v44  ;;  %3896 = vst.msk [vmem:[#allocation4 + $0x68] sm:$0xf] %vm3458_vm12, %v3892_v45 }
0x107f   : > { %v3854_v46 = vpop.permute.xlu1 %3853  ;;  %v3878_v48 = vpop.permute.xlu0 %3877  ;;  %v4671_v9 = vld [vmem:[#allocation4 + $0x70] ss:$8 sps:$4 sm:$0xff]  }
0x1080   : > { %v3857_v47 = vrot.slane %v3854_v46, 4  ;;  %3882 = vst.msk [vmem:[#allocation4 + $0x58] sm:$0xf] %vm3458_vm12, %v3878_v48  ;;  %4022 = vmatpush1.bf16.msra.mxu1 %v4671_v9 }
0x1081   : > { %4023 = vmatprep.subr.bf16.mxu1 %v4693_v1 }
0x1082   : > { %v3859_v23 = vsel %vm975_vm10, %v3854_v46, %v3857_v47 }
0x1083   : > { %3863 = vst.msk [vmem:[#allocation4 + $0x30] sm:$0xf] %vm3458_vm12, %v3859_v23  ;;  %v3836_v54 = vpop.permute.xlu1 %3835  ;;  %v3856_v51 = vpop.permute.xlu0 %3855  ;;  %v4672_v55 = vld [vmem:[#allocation4 + $0x60] ss:$8 sps:$4 sm:$0xff]  }
0x1084   : > { %v3839_v21 = vrot.slane %v3836_v54, 4  ;;  %v3858_v56 = vrot.slane %v3856_v51, 4  ;;  %4024 = vmatpush1.bf16.msra.mxu1 %v4672_v55 }
0x1085   : > { %4025 = vmatprep.subr.bf16.mxu1 %v4693_v1 }
0x1086   : > { %v3841_v57 = vsel %vm975_vm10, %v3836_v54, %v3839_v21  ;;  %v3860_v32 = vsel %vm975_vm10, %v3856_v51, %v3858_v56 }
0x1087   : > { %3845 = vst.msk [vmem:[#allocation4 + $0x20] sm:$0xf] %vm3458_vm12, %v3841_v57  ;;  %3864 = vst.msk [vmem:[#allocation4 + $0x38] sm:$0xf] %vm3458_vm12, %v3860_v32  ;;  %v3818_v58 = vpop.permute.xlu1 %3817  ;;  %v3838_v11 = vpop.permute.xlu0 %3837  ;;  %v4673_v60 = vld [vmem:[#allocation4 + $0x50] ss:$8 sps:$4 sm:$0xff]  }
0x1088   : > { %v3821_v53 = vrot.slane %v3818_v58, 4  ;;  %v3840_v0 = vrot.slane %v3838_v11, 4  ;;  %4026 = vmatpush1.bf16.msra.mxu1 %v4673_v60 }
0x1089   : > { %4027 = vmatprep.subr.bf16.mxu1 %v4693_v1 }
0x108a   : > { %v3823_v5 = vsel %vm3512_vm15, %v3818_v58, %v3821_v53  ;;  %v3842_v8 = vsel %vm975_vm10, %v3838_v11, %v3840_v0 }
0x108b   : > { %3827 = vst.msk [vmem:[#allocation4 + $0x10] sm:$0xf] %vm3458_vm12, %v3823_v5  ;;  %3846 = vst.msk [vmem:[#allocation4 + $0x28] sm:$0xf] %vm3458_vm12, %v3842_v8  ;;  %v3802_v14 = vpop.permute.xlu1 %3801  ;;  %v3820_v17 = vpop.permute.xlu0 %3819 }
0x108c   : > { %v3805_v22 = vrot.slane %v3802_v14, 4  ;;  %v3822_v29 = vrot.slane %v3820_v17, 4  ;;  %4028 = vmatpush1.bf16.msra.mxu1 %v4674_v18 }
0x108d   : > { %4029 = vmatprep.subr.bf16.mxu1 %v4693_v1 }
0x108e   : > { %v3807_v4 = vsel %vm2833_vm7, %v3802_v14, %v3805_v22  ;;  %v3824_v50 = vsel %vm3512_vm15, %v3820_v17, %v3822_v29  ;;  %v4675_v6 = vld [vmem:[#allocation4 + $0x30] ss:$8 sps:$4 sm:$0xff]  }
0x108f   : > { %3811 = vst.msk [vmem:[#allocation4] sm:$0xf] %vm3458_vm12, %v3807_v4  ;;  %3828 = vst.msk [vmem:[#allocation4 + $0x18] sm:$0xf] %vm3458_vm12, %v3824_v50  ;;  %v3916_v26 = vpop.permute.xlu1 %3915  ;;  %v3804_v13 = vpop.permute.xlu0 %3803 }
0x1090   : > { %3921 = vst.msk [vmem:[#allocation4 + $0x80] sm:$0xf] %vm3458_vm12, %v3916_v26  ;;  %v3806_v20 = vrot.slane %v3804_v13, 4  ;;  %4030 = vmatpush1.bf16.msra.mxu1 %v4675_v6 }
0x1091   : > { %4031 = vmatprep.subr.bf16.mxu1 %v4693_v1 }
0x1092   : > { %v3808_v27 = vsel %vm2833_vm7, %v3804_v13, %v3806_v20  ;;  %v4676_v3 = vld [vmem:[#allocation4 + $0x20] ss:$8 sps:$4 sm:$0xff]  }
0x1093   : > { %3812 = vst.msk [vmem:[#allocation4 + $0x8] sm:$0xf] %vm3458_vm12, %v3808_v27  ;;  %v3918_v43 = vpop.permute.xlu0 %3917 }
0x1094   : > { %3922 = vst.msk [vmem:[#allocation4 + $0x88] sm:$0xf] %vm3458_vm12, %v3918_v43  ;;  %4032 = vmatpush1.bf16.msra.mxu1 %v4676_v3 }
0x1095   : > { %4033 = vmatprep.subr.bf16.mxu1 %v4693_v1 }
0x1096   : > { %v4677_v7 = vld [vmem:[#allocation4 + $0x10] ss:$8 sps:$4 sm:$0xff]  }
0x1098   : > { %4034 = vmatpush1.bf16.msra.mxu1 %v4677_v7 }
0x1099   : > { %4035 = vmatprep.subr.bf16.mxu1 %v4693_v1 }
0x109a   : > { %v4678_v31 = vld [vmem:[#allocation4] ss:$8 sps:$4 sm:$0xff]  }
0x109b   : > { %v4679_v52 = vld [vmem:[#allocation4 + $0x80] ss:$8 sps:$4 sm:$0xff]  }
0x109c   : > { %4036 = vmatpush1.bf16.msra.mxu1 %v4678_v31  ;;  %v3948_v33 = vpop.permute.xlu1 %3947 }
0x109d   : > { %4051 = vmatprep.subr.bf16.mxu1 %v4693_v1 }
0x10a0   : > { %4052 = vmatpush2.bf16.msra.mxu1 %v4679_v52  ;;  %v3953_v42 = vpop.permute.xlu0 %3952 }
0x10a3   : > { %4054 = vmatmul.mubr.bf16.vlgmr.msra.gmra.mxu1 %v4682_v15 }
0x1163   : > { %v4055_v35 = vpop.f32.mrf.mxu1 }
0x1164   : > { %v4056_v16 = vadd.f32 %v4055_v35, %v3948_v33 }
0x1165   : > { %v4057_v24 = vpop.f32.mrf.mxu1 }
0x1166   : > { %vm4062_vm0 = vcmp.gt.f32.partialorder %v4056_v16, 0.0  ;;  %v4064_v34 = vmul.f32 0.01, %v4056_v16 }
0x1167   : > { %v4058_v36 = vpop.f32.mrf.mxu1 }
0x1168   : > { %v4066_v1 = vsel %vm4062_vm0, %v4056_v16, %v4064_v34  ;;  %v4059_v2 = vadd.f32 %v4058_v36, %v3953_v42 }
0x1169   : > { %4069 = vst.msk [vmem:[%s781_s27] sm:$0xff] %vm2804_vm11, %v4066_v1  ;;  %v4060_v63 = vpop.f32.mrf.mxu1 }
0x116a   : > { %vm4063_vm7 = vcmp.gt.f32.partialorder %v4059_v2, 0.0  ;;  %v4065_v41 = vmul.f32 0.01, %v4059_v2 }
0x116c   : > { %v4067_v37 = vsel %vm4063_vm7, %v4059_v2, %v4065_v41 }
0x116d   : > { %4070 = vst.msk [vmem:[%s781_s27 + $0x8] sm:$0xff] %vm2804_vm11, %v4067_v37  ;;  %v4575_v38 = vpack.i.bf16 %v4067_v37, %v4066_v1 }
0x116f   : > { %4576 = vrot.lane.b32.xlu1 %v4575_v38, %s6229_s1 }
0x11e1   : > { %v4577_v10 = vpop.permute.xlu1 %4576 }
0x11e2   : > { %v4579_v30 = vunpack.i.h.bf16 %v4577_v10  ;;  %v4578_v39 = vunpack.i.l.bf16 %v4577_v10 }
0x11e4   : > { %v4080_v28 = vmax.f32 %v4067_v37, %v4579_v30  ;;  %v4079_v61 = vmax.f32 %v4066_v1, %v4578_v39 }
0x11e6   : > { %v4580_v59 = vpack.i.bf16 %v4080_v28, %v4079_v61 }
0x11e8   : > { %4581 = vrot.lane.b32.xlu0 %v4580_v59, %s4717_s3 }
0x125a   : > { %v4582_v12 = vpop.permute.xlu0 %4581 }
0x125b   : > { %v4584_v19 = vunpack.i.h.bf16 %v4582_v12  ;;  %v4583_v25 = vunpack.i.l.bf16 %v4582_v12 }
0x125d   : > { %v4090_v40 = vmax.f32 %v4080_v28, %v4584_v19  ;;  %v4089_v62 = vmax.f32 %v4079_v61, %v4583_v25 }
0x125f   : > { %v4091_v49 = vpack.c.bf16 %v4090_v40, %v4089_v62 }
0x1261   : > { %v4092_v44 = vunpack.c.l.bf16 %v4091_v49  ;;  %v4093_v45 = vunpack.c.h.bf16 %v4091_v49 }
0x1263   : > { %4095 = vst.msk [vmem:[%s786_s7] sm:$0xff] %vm975_vm10, %v4092_v44  ;;  %4096 = vst.msk [vmem:[%s786_s7 + $0x8] sm:$0xff] %vm975_vm10, %v4093_v45 }
0x1264 PF: > { %s35_s5 = sadd.s32 1, %s4691_s5  }
0x1265   : > { %p32_p4 = scmp.ge.s32.totalorder %s35_s5, 4  }
0x1267   :  { %34 = sbr.rel (!%p32_p4) target bundleno = 10 (0xa), region = 178 }

</bundles_post_ra>
